<compile_context>
chip_gen: v6e
topology: v6e:2x2x1
jax: 0.10.0
libtpu: 0.0.40
codegen_flags: <defaults>
</compile_context>

<pallas_src>
import jax
import jax.numpy as jnp
from jax.experimental import pallas as pl
from jax.experimental.pallas import tpu as pltpu

LRELU_SLOPE = 0.1
BN_EPS = 1e-5


def _lrelu(x):
    return jnp.where(x > 0, x, LRELU_SLOPE * x)


# ----------------------------------------------------------------------------
# In-kernel building blocks (operate on (C, spatial) register values).
# ----------------------------------------------------------------------------
def _conv3x3_pad_bn_lrelu(x, w36, shift_col, add_col, border, h, w, res=None):
    """lrelu( BN( ZeroPad2d(1)( conv3x3_VALID(x) + b ) ) [+ res] ).

    x        : (Cin, h*w) register value, channel-major flat spatial layout.
    w36      : (Cout, 9*Cin) BN-folded weights, tap-major columns (t = 3*ki+kj).
    shift_col: (Cout, 1)  BN shift  (value the zero-padded border takes).
    add_col  : (Cout, 1)  b*scale + shift (interior additive term).
    border   : (1, h*w) bool, True on the 1-pixel border.
    """
    cin = x.shape[0]
    hw = h * w
    acc = None
    for t in range(9):
        ki, kj = t // 3, t % 3
        d = (ki - 1) * w + (kj - 1)               # flat input offset of the tap
        xt = x if d == 0 else pltpu.roll(x, (-d) % hw, 1)
        wt = w36[:, t * cin:(t + 1) * cin]        # (Cout, Cin)
        r = jnp.dot(wt, xt, preferred_element_type=jnp.float32)
        acc = r if acc is None else acc + r
    # Interior: conv + (b*scale + shift).  Border (also where roll wrap-around
    # lands): exactly the BN shift, as in pad -> BatchNorm.
    y = jnp.where(border, shift_col, acc + add_col)
    if res is not None:
        y = y + res                                # pre-activation residual
    return _lrelu(y)


def _conv1x1_bn_lrelu(x, w, bias_col):
    """lrelu( (w*scale) @ x + (b*scale + shift) )."""
    return _lrelu(jnp.dot(w, x, preferred_element_type=jnp.float32) + bias_col)


def _make_kernel(c, cout, h, w, nb):
    """Builds the fused ResBlock kernel for static geometry (c, cout, h, w, nb)."""
    hs, ws = h // 2, w // 2
    hws = hs * ws

    def kernel(x_ref, w3_ref, w1_ref, vec_ref, m_ref, s_ref, o_ref):
        w3 = w3_ref[...]                 # (c, 5*9*c)   five 3x3 layers
        w1 = w1_ref[...]                 # (rows, 3*c)  [conv0 | conv2 | conv_sc]
        vec = vec_ref[...]               # (rows, 13)   per-channel columns
        masks = m_ref[...]               # (2, h*w)     border masks (f32 0/1)
        s = s_ref[...]                   # (h*w, hws)   stride-2 selection matrix

        border = masks[0:1, :] > 0.5             # (1, h*w)   full grid
        border_s = masks[1:2, :hws] > 0.5        # (1, hws)   subsampled grid

        def w3l(layer):
            return w3[:, layer * 9 * c:(layer + 1) * 9 * c]

        def vcol(rows, j):
            return vec[:rows, j:j + 1]

        for b in range(nb):              # static unroll over the batch block
            x = x_ref[b]                 # (c, h*w)

            # ResConvBlock 0: h0 = lrelu(n1(pad(c1(x)))); x = lrelu(n2(pad(c2(h0))) + x)
            t0 = _conv3x3_pad_bn_lrelu(x, w3l(0), vcol(c, 0), vcol(c, 1), border, h, w)
            x = _conv3x3_pad_bn_lrelu(t0, w3l(1), vcol(c, 2), vcol(c, 3), border, h, w, res=x)
            # ResConvBlock 1
            t1 = _conv3x3_pad_bn_lrelu(x, w3l(2), vcol(c, 4), vcol(c, 5), border, h, w)
            x = _conv3x3_pad_bn_lrelu(t1, w3l(3), vcol(c, 6), vcol(c, 7), border, h, w, res=x)

            # ResBottleNeck: both stride-2 1x1 convs read the same subsample.
            x_sub = jnp.dot(x, s, preferred_element_type=jnp.float32)        # (c, hws)
            sc = _conv1x1_bn_lrelu(x_sub, w1[:cout, 2 * c:3 * c], vcol(cout, 12))
            t = _conv1x1_bn_lrelu(x_sub, w1[:c, 0:c], vcol(c, 10))
            t = _conv3x3_pad_bn_lrelu(t, w3l(4), vcol(c, 8), vcol(c, 9), border_s, hs, ws)
            t = _conv1x1_bn_lrelu(t, w1[:cout, c:2 * c], vcol(cout, 11))
            o_ref[b] = t + sc            # x + shortcut (no activation after add)

    return kernel


# ----------------------------------------------------------------------------
# Deterministic parameter construction (PyTorch OIHW weights + eval-BN affine).
# ----------------------------------------------------------------------------
def _bn_params(key, ch):
    k1, k2, k3, k4 = jax.random.split(key, 4)
    gamma = 1.0 + 0.1 * jax.random.normal(k1, (ch,), jnp.float32)
    beta = 0.1 * jax.random.normal(k2, (ch,), jnp.float32)
    mean = 0.1 * jax.random.normal(k3, (ch,), jnp.float32)
    var = 1.0 + 0.1 * jax.random.uniform(k4, (ch,), jnp.float32)
    scale = gamma / jnp.sqrt(var + BN_EPS)
    shift = beta - mean * scale
    return scale, shift


def _conv_params(key, cin, cout, k):
    k1, k2 = jax.random.split(key)
    w = 0.1 * jax.random.normal(k1, (cout, cin, k, k), jnp.float32)   # OIHW
    b = 0.1 * jax.random.normal(k2, (cout,), jnp.float32)
    return w, b


def init_res_conv_block(key, filters):
    ks = jax.random.split(key, 4)
    w1, b1 = _conv_params(ks[0], filters, filters, 3)
    w2, b2 = _conv_params(ks[1], filters, filters, 3)
    s1, t1 = _bn_params(ks[2], filters)
    s2, t2 = _bn_params(ks[3], filters)
    return dict(w1=w1, b1=b1, s1=s1, t1=t1, w2=w2, b2=b2, s2=s2, t2=t2)


def init_res_bottleneck(key, cin, cout):
    ks = jax.random.split(key, 8)
    w1, b1 = _conv_params(ks[0], cin, cin, 3)    # conv1: 3x3
    w2, b2 = _conv_params(ks[1], cin, cout, 1)   # conv2: 1x1
    w0, b0 = _conv_params(ks[2], cin, cin, 1)    # conv0: 1x1 stride 2
    wc, bc = _conv_params(ks[3], cin, cout, 1)   # conv : 1x1 stride 2 (shortcut)
    s0, t0 = _bn_params(ks[4], cin)
    s1, t1 = _bn_params(ks[5], cin)
    s2, t2 = _bn_params(ks[6], cout)
    sc, tc = _bn_params(ks[7], cout)
    return dict(w1=w1, b1=b1, s1=s1, t1=t1, w2=w2, b2=b2, s2=s2, t2=t2,
                w0=w0, b0=b0, s0=s0, t0=t0, wc=wc, bc=bc, sc=sc, tc=tc)


def init_res_block(key, cin, cout):
    k0, k1, k2 = jax.random.split(key, 3)
    return dict(conv0=init_res_conv_block(k0, cin),
                conv1=init_res_conv_block(k1, cin),
                conv=init_res_bottleneck(k2, cin, cout))


# ----------------------------------------------------------------------------
# BN folding + packing of all layer parameters into three slabs.
# ----------------------------------------------------------------------------
def _fold3(w, b, scale, shift):
    """OIHW 3x3 conv + eval BN -> (Cout, 9*Cin) tap-major folded weight,
    border value (= shift) and interior additive term (= b*scale + shift)."""
    cout, cin = w.shape[0], w.shape[1]
    wf = w * scale[:, None, None, None]
    w36 = jnp.transpose(wf, (0, 2, 3, 1)).reshape(cout, 9 * cin)
    return w36, shift, b * scale + shift


def _fold1(w, b, scale, shift):
    """OIHW 1x1 conv + eval BN -> (Cout, Cin) weight and total bias."""
    return w[:, :, 0, 0] * scale[:, None], b * scale + shift


def _pack_params(params, c, cout):
    rows = max(c, cout)

    def padrows(a):
        if a.shape[0] == rows:
            return a
        return jnp.concatenate(
            [a, jnp.zeros((rows - a.shape[0],) + a.shape[1:], a.dtype)], axis=0)

    w3_parts, vec_parts = [], []
    for blk in ("conv0", "conv1"):                         # the two ResConvBlocks
        q = params[blk]
        for wk, bk, sk, tk in (("w1", "b1", "s1", "t1"), ("w2", "b2", "s2", "t2")):
            w36, sh, ad = _fold3(q[wk], q[bk], q[sk], q[tk])
            w3_parts.append(w36)
            vec_parts += [padrows(sh[:, None]), padrows(ad[:, None])]
    q = params["conv"]                                     # the bottleneck
    w36, sh, ad = _fold3(q["w1"], q["b1"], q["s1"], q["t1"])
    w3_parts.append(w36)
    vec_parts += [padrows(sh[:, None]), padrows(ad[:, None])]

    w0, c0 = _fold1(q["w0"], q["b0"], q["s0"], q["t0"])    # (c, c)
    w2, c2 = _fold1(q["w2"], q["b2"], q["s2"], q["t2"])    # (cout, c)
    wc, cc = _fold1(q["wc"], q["bc"], q["sc"], q["tc"])    # (cout, c)
    w1_slab = jnp.concatenate([padrows(w0), padrows(w2), padrows(wc)], axis=1)
    vec_parts += [padrows(c0[:, None]), padrows(c2[:, None]), padrows(cc[:, None])]

    w3_slab = jnp.concatenate(w3_parts, axis=1)            # (c, 5*9*c)
    vec_slab = jnp.concatenate(vec_parts, axis=1)          # (rows, 13)
    return w3_slab, w1_slab, vec_slab


def _host_border_mask(h, w):
    """(h*w,) f32 mask: 1.0 on the 1-pixel ZeroPad2d border, 0.0 inside."""
    p = jnp.arange(h * w)
    row, col = p // w, p % w
    m = (row == 0) | (row == h - 1) | (col == 0) | (col == w - 1)
    return m.astype(jnp.float32)


# ----------------------------------------------------------------------------
# Public wrapper: (N, C, H, W) in, (N, Cout, H/2, W/2) out, one pallas_call.
# ----------------------------------------------------------------------------
def res_block(x_nchw, params, block_batch=2):
    n, c, h, w = x_nchw.shape
    assert h % 2 == 0 and w % 2 == 0 and h >= 6 and w >= 6, (h, w)
    cout = params["conv"]["wc"].shape[0]
    hw, hs, ws = h * w, h // 2, w // 2
    hws = hs * ws

    nb = block_batch if (block_batch and n % block_batch == 0) else 1
    x = x_nchw.astype(jnp.float32).reshape(n, c, hw)       # NCHW -> (N, C, H*W): free

    w3_slab, w1_slab, vec_slab = _pack_params(params, c, cout)

    # Border masks for the full and the subsampled grids, packed into one slab.
    mask_full = _host_border_mask(h, w)
    mask_sub = jnp.zeros((hw,), jnp.float32).at[:hws].set(_host_border_mask(hs, ws))
    masks = jnp.stack([mask_full, mask_sub])               # (2, H*W)

    # Stride-2 subsample expressed as a (H*W, Hs*Ws) 0/1 selection matmul.
    q = jnp.arange(hws)
    sel = 2 * (q // ws) * w + 2 * (q % ws)
    s_mat = (jnp.arange(hw)[:, None] == sel[None, :]).astype(jnp.float32)

    consts = (w3_slab, w1_slab, vec_slab, masks, s_mat)

    def rep(a):                                            # replicated constant input
        return pl.BlockSpec(a.shape, lambda i: (0, 0))

    out = pl.pallas_call(
        _make_kernel(c, cout, h, w, nb),
        out_shape=jax.ShapeDtypeStruct((n, cout, hws), jnp.float32),
        grid=(n // nb,),
        in_specs=[pl.BlockSpec((nb, c, hw), lambda i: (i, 0, 0))]
                 + [rep(a) for a in consts],
        out_specs=pl.BlockSpec((nb, cout, hws), lambda i: (i, 0, 0)),
        compiler_params=pltpu.CompilerParams(
            dimension_semantics=("parallel",)),
    )(x, *consts)
    return out.reshape(n, cout, hs, ws)                    # -> NCHW, free reshape


# ----------------------------------------------------------------------------
# Pure-JAX reference (NCHW, eval-mode BN) used only for the correctness check.
# ----------------------------------------------------------------------------
def _ref_conv(x, w, b, stride=1):
    y = jax.lax.conv_general_dilated(
        x, w, window_strides=(stride, stride), padding="VALID",
        dimension_numbers=("NCHW", "OIHW", "NCHW"),
        precision=jax.lax.Precision.HIGHEST)
    return y + b[None, :, None, None]


def _ref_bn(x, scale, shift):
    return x * scale[None, :, None, None] + shift[None, :, None, None]


def _ref_pad(x):
    return jnp.pad(x, ((0, 0), (0, 0), (1, 1), (1, 1)))


def _ref_res_conv_block(x, p):
    sc = x
    x = _lrelu(_ref_bn(_ref_pad(_ref_conv(x, p["w1"], p["b1"])), p["s1"], p["t1"]))
    x = _lrelu(_ref_bn(_ref_pad(_ref_conv(x, p["w2"], p["b2"])), p["s2"], p["t2"]) + sc)
    return x


def _ref_bottleneck(x, p):
    sc = x
    x = _lrelu(_ref_bn(_ref_conv(x, p["w0"], p["b0"], 2), p["s0"], p["t0"]))
    x = _lrelu(_ref_bn(_ref_pad(_ref_conv(x, p["w1"], p["b1"])), p["s1"], p["t1"]))
    x = _lrelu(_ref_bn(_ref_conv(x, p["w2"], p["b2"]), p["s2"], p["t2"]))
    sc = _lrelu(_ref_bn(_ref_conv(sc, p["wc"], p["bc"], 2), p["sc"], p["tc"]))
    return x + sc


def _ref_res_block(x, params):
    x = _ref_res_conv_block(x, params["conv0"])
    x = _ref_res_conv_block(x, params["conv1"])
    return _ref_bottleneck(x, params["conv"])


# ----------------------------------------------------------------------------
if __name__ == "__main__":
    key = jax.random.PRNGKey(0)
    kp, kx = jax.random.split(key)
    in_filters, out_filters = 4, 8

    params = init_res_block(kp, in_filters, out_filters)
    x = jax.random.normal(kx, (2, in_filters, 16, 16), jnp.float32)   # NCHW

    y = jax.jit(res_block)(x, params)
    jax.block_until_ready(y)
    assert y.shape == (2, out_filters, 8, 8), y.shape
    assert bool(jnp.all(jnp.isfinite(y)))

    y_ref = _ref_res_block(x, params)
    err = float(jnp.max(jnp.abs(y - y_ref)))
    assert err < 2e-2, f"max abs error vs pure-JAX reference: {err}"
    print("KERNEL_OK")
</pallas_src>

<mosaic_0001>
module attributes {stable_mosaic.version = 11 : i64} {
  func.func @kernel(%arg0: i32, %arg1: memref<2x4x256xf32, #tpu.memory_space<vmem>>, %arg2: memref<4x180xf32, #tpu.memory_space<vmem>>, %arg3: memref<8x12xf32, #tpu.memory_space<vmem>>, %arg4: memref<8x13xf32, #tpu.memory_space<vmem>>, %arg5: memref<2x256xf32, #tpu.memory_space<vmem>>, %arg6: memref<256x64xf32, #tpu.memory_space<vmem>>, %arg7: memref<2x8x64xf32, #tpu.memory_space<vmem>>) attributes {dimension_semantics = [#tpu.dimension_semantics<parallel>], iteration_bounds = array<i64: 1>, scalar_prefetch = 0 : i64, scratch_operands = 0 : i64, tpu.core_type = #tpu.core_type<tc>, window_params = [{transform_indices = @transform_0, window_bounds = array<i64: 2, 4, 256>}, {pipeline_mode = #tpu.pipeline_mode<synchronous>, transform_indices = @transform_1, window_bounds = array<i64: 4, 180>}, {pipeline_mode = #tpu.pipeline_mode<synchronous>, transform_indices = @transform_2, window_bounds = array<i64: 8, 12>}, {pipeline_mode = #tpu.pipeline_mode<synchronous>, transform_indices = @transform_3, window_bounds = array<i64: 8, 13>}, {pipeline_mode = #tpu.pipeline_mode<synchronous>, transform_indices = @transform_4, window_bounds = array<i64: 2, 256>}, {pipeline_mode = #tpu.pipeline_mode<synchronous>, transform_indices = @transform_5, window_bounds = array<i64: 256, 64>}, {transform_indices = @transform_6, window_bounds = array<i64: 2, 8, 64>}]} {
    %c0 = arith.constant 0 : index
    %c0_0 = arith.constant 0 : index
    %0 = vector.load %arg2[%c0, %c0_0] : memref<4x180xf32, #tpu.memory_space<vmem>>, vector<4x180xf32>
    %c0_1 = arith.constant 0 : index
    %c0_2 = arith.constant 0 : index
    %1 = vector.load %arg3[%c0_1, %c0_2] : memref<8x12xf32, #tpu.memory_space<vmem>>, vector<8x12xf32>
    %c0_3 = arith.constant 0 : index
    %c0_4 = arith.constant 0 : index
    %2 = vector.load %arg4[%c0_3, %c0_4] : memref<8x13xf32, #tpu.memory_space<vmem>>, vector<8x13xf32>
    %c0_5 = arith.constant 0 : index
    %c0_6 = arith.constant 0 : index
    %3 = vector.load %arg5[%c0_5, %c0_6] : memref<2x256xf32, #tpu.memory_space<vmem>>, vector<2x256xf32>
    %c0_7 = arith.constant 0 : index
    %c0_8 = arith.constant 0 : index
    %4 = vector.load %arg6[%c0_7, %c0_8] : memref<256x64xf32, #tpu.memory_space<vmem>>, vector<256x64xf32>
    %5 = vector.extract_strided_slice %3 {offsets = [0, 0], sizes = [1, 256], strides = [1, 1]} : vector<2x256xf32> to vector<1x256xf32>
    %cst = arith.constant 5.000000e-01 : f32
    %6 = vector.broadcast %cst : f32 to vector<1x256xf32>
    %7 = arith.cmpf ogt, %5, %6 : vector<1x256xf32>
    %8 = vector.extract_strided_slice %3 {offsets = [1, 0], sizes = [1, 64], strides = [1, 1]} : vector<2x256xf32> to vector<1x64xf32>
    %cst_9 = arith.constant 5.000000e-01 : f32
    %9 = vector.broadcast %cst_9 : f32 to vector<1x64xf32>
    %10 = arith.cmpf ogt, %8, %9 : vector<1x64xf32>
    %c0_10 = arith.constant 0 : index
    %c0_11 = arith.constant 0 : index
    %c0_12 = arith.constant 0 : index
    %11 = vector.load %arg1[%c0_10, %c0_11, %c0_12] : memref<2x4x256xf32, #tpu.memory_space<vmem>>, vector<1x4x256xf32>
    %12 = vector.shape_cast %11 : vector<1x4x256xf32> to vector<4x256xf32>
    %13 = vector.extract_strided_slice %0 {offsets = [0, 0], sizes = [4, 36], strides = [1, 1]} : vector<4x180xf32> to vector<4x36xf32>
    %14 = vector.extract_strided_slice %2 {offsets = [0, 0], sizes = [4, 1], strides = [1, 1]} : vector<8x13xf32> to vector<4x1xf32>
    %15 = vector.extract_strided_slice %2 {offsets = [0, 1], sizes = [4, 1], strides = [1, 1]} : vector<8x13xf32> to vector<4x1xf32>
    %c17_i32 = arith.constant 17 : i32
    %16 = tpu.dynamic_rotate %12 by %c17_i32 dim 1 : vector<4x256xf32>, i32 -> vector<4x256xf32>
    %17 = vector.extract_strided_slice %13 {offsets = [0, 0], sizes = [4, 4], strides = [1, 1]} : vector<4x36xf32> to vector<4x4xf32>
    %cst_13 = arith.constant dense<0.000000e+00> : vector<4x256xf32>
    %18 = tpu.matmul %17, %16, %cst_13 {dimension_numbers = #tpu.dot_dimension_numbers<[1], [0], [0], [1], [0, 0, 1, 1], [], []>} : vector<4x4xf32>, vector<4x256xf32>, vector<4x256xf32> -> vector<4x256xf32>
    %c16_i32 = arith.constant 16 : i32
    %19 = tpu.dynamic_rotate %12 by %c16_i32 dim 1 : vector<4x256xf32>, i32 -> vector<4x256xf32>
    %20 = vector.extract_strided_slice %13 {offsets = [0, 4], sizes = [4, 4], strides = [1, 1]} : vector<4x36xf32> to vector<4x4xf32>
    %cst_14 = arith.constant dense<0.000000e+00> : vector<4x256xf32>
    %21 = tpu.matmul %20, %19, %cst_14 {dimension_numbers = #tpu.dot_dimension_numbers<[1], [0], [0], [1], [0, 0, 1, 1], [], []>} : vector<4x4xf32>, vector<4x256xf32>, vector<4x256xf32> -> vector<4x256xf32>
    %22 = arith.addf %18, %21 : vector<4x256xf32>
    %c15_i32 = arith.constant 15 : i32
    %23 = tpu.dynamic_rotate %12 by %c15_i32 dim 1 : vector<4x256xf32>, i32 -> vector<4x256xf32>
    %24 = vector.extract_strided_slice %13 {offsets = [0, 8], sizes = [4, 4], strides = [1, 1]} : vector<4x36xf32> to vector<4x4xf32>
    %cst_15 = arith.constant dense<0.000000e+00> : vector<4x256xf32>
    %25 = tpu.matmul %24, %23, %cst_15 {dimension_numbers = #tpu.dot_dimension_numbers<[1], [0], [0], [1], [0, 0, 1, 1], [], []>} : vector<4x4xf32>, vector<4x256xf32>, vector<4x256xf32> -> vector<4x256xf32>
    %26 = arith.addf %22, %25 : vector<4x256xf32>
    %c1_i32 = arith.constant 1 : i32
    %27 = tpu.dynamic_rotate %12 by %c1_i32 dim 1 : vector<4x256xf32>, i32 -> vector<4x256xf32>
    %28 = vector.extract_strided_slice %13 {offsets = [0, 12], sizes = [4, 4], strides = [1, 1]} : vector<4x36xf32> to vector<4x4xf32>
    %cst_16 = arith.constant dense<0.000000e+00> : vector<4x256xf32>
    %29 = tpu.matmul %28, %27, %cst_16 {dimension_numbers = #tpu.dot_dimension_numbers<[1], [0], [0], [1], [0, 0, 1, 1], [], []>} : vector<4x4xf32>, vector<4x256xf32>, vector<4x256xf32> -> vector<4x256xf32>
    %30 = arith.addf %26, %29 : vector<4x256xf32>
    %31 = vector.extract_strided_slice %13 {offsets = [0, 16], sizes = [4, 4], strides = [1, 1]} : vector<4x36xf32> to vector<4x4xf32>
    %cst_17 = arith.constant dense<0.000000e+00> : vector<4x256xf32>
    %32 = tpu.matmul %31, %12, %cst_17 {dimension_numbers = #tpu.dot_dimension_numbers<[1], [0], [0], [1], [0, 0, 1, 1], [], []>} : vector<4x4xf32>, vector<4x256xf32>, vector<4x256xf32> -> vector<4x256xf32>
    %33 = arith.addf %30, %32 : vector<4x256xf32>
    %c255_i32 = arith.constant 255 : i32
    %34 = tpu.dynamic_rotate %12 by %c255_i32 dim 1 : vector<4x256xf32>, i32 -> vector<4x256xf32>
    %35 = vector.extract_strided_slice %13 {offsets = [0, 20], sizes = [4, 4], strides = [1, 1]} : vector<4x36xf32> to vector<4x4xf32>
    %cst_18 = arith.constant dense<0.000000e+00> : vector<4x256xf32>
    %36 = tpu.matmul %35, %34, %cst_18 {dimension_numbers = #tpu.dot_dimension_numbers<[1], [0], [0], [1], [0, 0, 1, 1], [], []>} : vector<4x4xf32>, vector<4x256xf32>, vector<4x256xf32> -> vector<4x256xf32>
    %37 = arith.addf %33, %36 : vector<4x256xf32>
    %c241_i32 = arith.constant 241 : i32
    %38 = tpu.dynamic_rotate %12 by %c241_i32 dim 1 : vector<4x256xf32>, i32 -> vector<4x256xf32>
    %39 = vector.extract_strided_slice %13 {offsets = [0, 24], sizes = [4, 4], strides = [1, 1]} : vector<4x36xf32> to vector<4x4xf32>
    %cst_19 = arith.constant dense<0.000000e+00> : vector<4x256xf32>
    %40 = tpu.matmul %39, %38, %cst_19 {dimension_numbers = #tpu.dot_dimension_numbers<[1], [0], [0], [1], [0, 0, 1, 1], [], []>} : vector<4x4xf32>, vector<4x256xf32>, vector<4x256xf32> -> vector<4x256xf32>
    %41 = arith.addf %37, %40 : vector<4x256xf32>
    %c240_i32 = arith.constant 240 : i32
    %42 = tpu.dynamic_rotate %12 by %c240_i32 dim 1 : vector<4x256xf32>, i32 -> vector<4x256xf32>
    %43 = vector.extract_strided_slice %13 {offsets = [0, 28], sizes = [4, 4], strides = [1, 1]} : vector<4x36xf32> to vector<4x4xf32>
    %cst_20 = arith.constant dense<0.000000e+00> : vector<4x256xf32>
    %44 = tpu.matmul %43, %42, %cst_20 {dimension_numbers = #tpu.dot_dimension_numbers<[1], [0], [0], [1], [0, 0, 1, 1], [], []>} : vector<4x4xf32>, vector<4x256xf32>, vector<4x256xf32> -> vector<4x256xf32>
    %45 = arith.addf %41, %44 : vector<4x256xf32>
    %c239_i32 = arith.constant 239 : i32
    %46 = tpu.dynamic_rotate %12 by %c239_i32 dim 1 : vector<4x256xf32>, i32 -> vector<4x256xf32>
    %47 = vector.extract_strided_slice %13 {offsets = [0, 32], sizes = [4, 4], strides = [1, 1]} : vector<4x36xf32> to vector<4x4xf32>
    %cst_21 = arith.constant dense<0.000000e+00> : vector<4x256xf32>
    %48 = tpu.matmul %47, %46, %cst_21 {dimension_numbers = #tpu.dot_dimension_numbers<[1], [0], [0], [1], [0, 0, 1, 1], [], []>} : vector<4x4xf32>, vector<4x256xf32>, vector<4x256xf32> -> vector<4x256xf32>
    %49 = arith.addf %45, %48 : vector<4x256xf32>
    %50 = vector.broadcast %15 : vector<4x1xf32> to vector<4x256xf32>
    %51 = arith.addf %49, %50 : vector<4x256xf32>
    %52 = vector.shape_cast %7 : vector<1x256xi1> to vector<1x256xi1>
    %53 = vector.broadcast %52 : vector<1x256xi1> to vector<4x256xi1>
    %54 = vector.shape_cast %14 : vector<4x1xf32> to vector<4x1xf32>
    %55 = vector.broadcast %54 : vector<4x1xf32> to vector<4x256xf32>
    %56 = arith.select %53, %55, %51 : vector<4x256xi1>, vector<4x256xf32>
    %cst_22 = arith.constant 0.000000e+00 : f32
    %57 = vector.broadcast %cst_22 : f32 to vector<4x256xf32>
    %58 = arith.cmpf ogt, %56, %57 : vector<4x256xf32>
    %cst_23 = arith.constant 1.000000e-01 : f32
    %59 = vector.broadcast %cst_23 : f32 to vector<4x256xf32>
    %60 = arith.mulf %59, %56 : vector<4x256xf32>
    %61 = arith.select %58, %56, %60 : vector<4x256xi1>, vector<4x256xf32>
    %62 = vector.extract_strided_slice %0 {offsets = [0, 36], sizes = [4, 36], strides = [1, 1]} : vector<4x180xf32> to vector<4x36xf32>
    %63 = vector.extract_strided_slice %2 {offsets = [0, 2], sizes = [4, 1], strides = [1, 1]} : vector<8x13xf32> to vector<4x1xf32>
    %64 = vector.extract_strided_slice %2 {offsets = [0, 3], sizes = [4, 1], strides = [1, 1]} : vector<8x13xf32> to vector<4x1xf32>
    %c17_i32_24 = arith.constant 17 : i32
    %65 = tpu.dynamic_rotate %61 by %c17_i32_24 dim 1 : vector<4x256xf32>, i32 -> vector<4x256xf32>
    %66 = vector.extract_strided_slice %62 {offsets = [0, 0], sizes = [4, 4], strides = [1, 1]} : vector<4x36xf32> to vector<4x4xf32>
    %cst_25 = arith.constant dense<0.000000e+00> : vector<4x256xf32>
    %67 = tpu.matmul %66, %65, %cst_25 {dimension_numbers = #tpu.dot_dimension_numbers<[1], [0], [0], [1], [0, 0, 1, 1], [], []>} : vector<4x4xf32>, vector<4x256xf32>, vector<4x256xf32> -> vector<4x256xf32>
    %c16_i32_26 = arith.constant 16 : i32
    %68 = tpu.dynamic_rotate %61 by %c16_i32_26 dim 1 : vector<4x256xf32>, i32 -> vector<4x256xf32>
    %69 = vector.extract_strided_slice %62 {offsets = [0, 4], sizes = [4, 4], strides = [1, 1]} : vector<4x36xf32> to vector<4x4xf32>
    %cst_27 = arith.constant dense<0.000000e+00> : vector<4x256xf32>
    %70 = tpu.matmul %69, %68, %cst_27 {dimension_numbers = #tpu.dot_dimension_numbers<[1], [0], [0], [1], [0, 0, 1, 1], [], []>} : vector<4x4xf32>, vector<4x256xf32>, vector<4x256xf32> -> vector<4x256xf32>
    %71 = arith.addf %67, %70 : vector<4x256xf32>
    %c15_i32_28 = arith.constant 15 : i32
    %72 = tpu.dynamic_rotate %61 by %c15_i32_28 dim 1 : vector<4x256xf32>, i32 -> vector<4x256xf32>
    %73 = vector.extract_strided_slice %62 {offsets = [0, 8], sizes = [4, 4], strides = [1, 1]} : vector<4x36xf32> to vector<4x4xf32>
    %cst_29 = arith.constant dense<0.000000e+00> : vector<4x256xf32>
    %74 = tpu.matmul %73, %72, %cst_29 {dimension_numbers = #tpu.dot_dimension_numbers<[1], [0], [0], [1], [0, 0, 1, 1], [], []>} : vector<4x4xf32>, vector<4x256xf32>, vector<4x256xf32> -> vector<4x256xf32>
    %75 = arith.addf %71, %74 : vector<4x256xf32>
    %c1_i32_30 = arith.constant 1 : i32
    %76 = tpu.dynamic_rotate %61 by %c1_i32_30 dim 1 : vector<4x256xf32>, i32 -> vector<4x256xf32>
    %77 = vector.extract_strided_slice %62 {offsets = [0, 12], sizes = [4, 4], strides = [1, 1]} : vector<4x36xf32> to vector<4x4xf32>
    %cst_31 = arith.constant dense<0.000000e+00> : vector<4x256xf32>
    %78 = tpu.matmul %77, %76, %cst_31 {dimension_numbers = #tpu.dot_dimension_numbers<[1], [0], [0], [1], [0, 0, 1, 1], [], []>} : vector<4x4xf32>, vector<4x256xf32>, vector<4x256xf32> -> vector<4x256xf32>
    %79 = arith.addf %75, %78 : vector<4x256xf32>
    %80 = vector.extract_strided_slice %62 {offsets = [0, 16], sizes = [4, 4], strides = [1, 1]} : vector<4x36xf32> to vector<4x4xf32>
    %cst_32 = arith.constant dense<0.000000e+00> : vector<4x256xf32>
    %81 = tpu.matmul %80, %61, %cst_32 {dimension_numbers = #tpu.dot_dimension_numbers<[1], [0], [0], [1], [0, 0, 1, 1], [], []>} : vector<4x4xf32>, vector<4x256xf32>, vector<4x256xf32> -> vector<4x256xf32>
    %82 = arith.addf %79, %81 : vector<4x256xf32>
    %c255_i32_33 = arith.constant 255 : i32
    %83 = tpu.dynamic_rotate %61 by %c255_i32_33 dim 1 : vector<4x256xf32>, i32 -> vector<4x256xf32>
    %84 = vector.extract_strided_slice %62 {offsets = [0, 20], sizes = [4, 4], strides = [1, 1]} : vector<4x36xf32> to vector<4x4xf32>
    %cst_34 = arith.constant dense<0.000000e+00> : vector<4x256xf32>
    %85 = tpu.matmul %84, %83, %cst_34 {dimension_numbers = #tpu.dot_dimension_numbers<[1], [0], [0], [1], [0, 0, 1, 1], [], []>} : vector<4x4xf32>, vector<4x256xf32>, vector<4x256xf32> -> vector<4x256xf32>
    %86 = arith.addf %82, %85 : vector<4x256xf32>
    %c241_i32_35 = arith.constant 241 : i32
    %87 = tpu.dynamic_rotate %61 by %c241_i32_35 dim 1 : vector<4x256xf32>, i32 -> vector<4x256xf32>
    %88 = vector.extract_strided_slice %62 {offsets = [0, 24], sizes = [4, 4], strides = [1, 1]} : vector<4x36xf32> to vector<4x4xf32>
    %cst_36 = arith.constant dense<0.000000e+00> : vector<4x256xf32>
    %89 = tpu.matmul %88, %87, %cst_36 {dimension_numbers = #tpu.dot_dimension_numbers<[1], [0], [0], [1], [0, 0, 1, 1], [], []>} : vector<4x4xf32>, vector<4x256xf32>, vector<4x256xf32> -> vector<4x256xf32>
    %90 = arith.addf %86, %89 : vector<4x256xf32>
    %c240_i32_37 = arith.constant 240 : i32
    %91 = tpu.dynamic_rotate %61 by %c240_i32_37 dim 1 : vector<4x256xf32>, i32 -> vector<4x256xf32>
    %92 = vector.extract_strided_slice %62 {offsets = [0, 28], sizes = [4, 4], strides = [1, 1]} : vector<4x36xf32> to vector<4x4xf32>
    %cst_38 = arith.constant dense<0.000000e+00> : vector<4x256xf32>
    %93 = tpu.matmul %92, %91, %cst_38 {dimension_numbers = #tpu.dot_dimension_numbers<[1], [0], [0], [1], [0, 0, 1, 1], [], []>} : vector<4x4xf32>, vector<4x256xf32>, vector<4x256xf32> -> vector<4x256xf32>
    %94 = arith.addf %90, %93 : vector<4x256xf32>
    %c239_i32_39 = arith.constant 239 : i32
    %95 = tpu.dynamic_rotate %61 by %c239_i32_39 dim 1 : vector<4x256xf32>, i32 -> vector<4x256xf32>
    %96 = vector.extract_strided_slice %62 {offsets = [0, 32], sizes = [4, 4], strides = [1, 1]} : vector<4x36xf32> to vector<4x4xf32>
    %cst_40 = arith.constant dense<0.000000e+00> : vector<4x256xf32>
    %97 = tpu.matmul %96, %95, %cst_40 {dimension_numbers = #tpu.dot_dimension_numbers<[1], [0], [0], [1], [0, 0, 1, 1], [], []>} : vector<4x4xf32>, vector<4x256xf32>, vector<4x256xf32> -> vector<4x256xf32>
    %98 = arith.addf %94, %97 : vector<4x256xf32>
    %99 = vector.broadcast %64 : vector<4x1xf32> to vector<4x256xf32>
    %100 = arith.addf %98, %99 : vector<4x256xf32>
    %101 = vector.shape_cast %7 : vector<1x256xi1> to vector<1x256xi1>
    %102 = vector.broadcast %101 : vector<1x256xi1> to vector<4x256xi1>
    %103 = vector.shape_cast %63 : vector<4x1xf32> to vector<4x1xf32>
    %104 = vector.broadcast %103 : vector<4x1xf32> to vector<4x256xf32>
    %105 = arith.select %102, %104, %100 : vector<4x256xi1>, vector<4x256xf32>
    %106 = arith.addf %105, %12 : vector<4x256xf32>
    %cst_41 = arith.constant 0.000000e+00 : f32
    %107 = vector.broadcast %cst_41 : f32 to vector<4x256xf32>
    %108 = arith.cmpf ogt, %106, %107 : vector<4x256xf32>
    %cst_42 = arith.constant 1.000000e-01 : f32
    %109 = vector.broadcast %cst_42 : f32 to vector<4x256xf32>
    %110 = arith.mulf %109, %106 : vector<4x256xf32>
    %111 = arith.select %108, %106, %110 : vector<4x256xi1>, vector<4x256xf32>
    %112 = vector.extract_strided_slice %0 {offsets = [0, 72], sizes = [4, 36], strides = [1, 1]} : vector<4x180xf32> to vector<4x36xf32>
    %113 = vector.extract_strided_slice %2 {offsets = [0, 4], sizes = [4, 1], strides = [1, 1]} : vector<8x13xf32> to vector<4x1xf32>
    %114 = vector.extract_strided_slice %2 {offsets = [0, 5], sizes = [4, 1], strides = [1, 1]} : vector<8x13xf32> to vector<4x1xf32>
    %c17_i32_43 = arith.constant 17 : i32
    %115 = tpu.dynamic_rotate %111 by %c17_i32_43 dim 1 : vector<4x256xf32>, i32 -> vector<4x256xf32>
    %116 = vector.extract_strided_slice %112 {offsets = [0, 0], sizes = [4, 4], strides = [1, 1]} : vector<4x36xf32> to vector<4x4xf32>
    %cst_44 = arith.constant dense<0.000000e+00> : vector<4x256xf32>
    %117 = tpu.matmul %116, %115, %cst_44 {dimension_numbers = #tpu.dot_dimension_numbers<[1], [0], [0], [1], [0, 0, 1, 1], [], []>} : vector<4x4xf32>, vector<4x256xf32>, vector<4x256xf32> -> vector<4x256xf32>
    %c16_i32_45 = arith.constant 16 : i32
    %118 = tpu.dynamic_rotate %111 by %c16_i32_45 dim 1 : vector<4x256xf32>, i32 -> vector<4x256xf32>
    %119 = vector.extract_strided_slice %112 {offsets = [0, 4], sizes = [4, 4], strides = [1, 1]} : vector<4x36xf32> to vector<4x4xf32>
    %cst_46 = arith.constant dense<0.000000e+00> : vector<4x256xf32>
    %120 = tpu.matmul %119, %118, %cst_46 {dimension_numbers = #tpu.dot_dimension_numbers<[1], [0], [0], [1], [0, 0, 1, 1], [], []>} : vector<4x4xf32>, vector<4x256xf32>, vector<4x256xf32> -> vector<4x256xf32>
    %121 = arith.addf %117, %120 : vector<4x256xf32>
    %c15_i32_47 = arith.constant 15 : i32
    %122 = tpu.dynamic_rotate %111 by %c15_i32_47 dim 1 : vector<4x256xf32>, i32 -> vector<4x256xf32>
    %123 = vector.extract_strided_slice %112 {offsets = [0, 8], sizes = [4, 4], strides = [1, 1]} : vector<4x36xf32> to vector<4x4xf32>
    %cst_48 = arith.constant dense<0.000000e+00> : vector<4x256xf32>
    %124 = tpu.matmul %123, %122, %cst_48 {dimension_numbers = #tpu.dot_dimension_numbers<[1], [0], [0], [1], [0, 0, 1, 1], [], []>} : vector<4x4xf32>, vector<4x256xf32>, vector<4x256xf32> -> vector<4x256xf32>
    %125 = arith.addf %121, %124 : vector<4x256xf32>
    %c1_i32_49 = arith.constant 1 : i32
    %126 = tpu.dynamic_rotate %111 by %c1_i32_49 dim 1 : vector<4x256xf32>, i32 -> vector<4x256xf32>
    %127 = vector.extract_strided_slice %112 {offsets = [0, 12], sizes = [4, 4], strides = [1, 1]} : vector<4x36xf32> to vector<4x4xf32>
    %cst_50 = arith.constant dense<0.000000e+00> : vector<4x256xf32>
    %128 = tpu.matmul %127, %126, %cst_50 {dimension_numbers = #tpu.dot_dimension_numbers<[1], [0], [0], [1], [0, 0, 1, 1], [], []>} : vector<4x4xf32>, vector<4x256xf32>, vector<4x256xf32> -> vector<4x256xf32>
    %129 = arith.addf %125, %128 : vector<4x256xf32>
    %130 = vector.extract_strided_slice %112 {offsets = [0, 16], sizes = [4, 4], strides = [1, 1]} : vector<4x36xf32> to vector<4x4xf32>
    %cst_51 = arith.constant dense<0.000000e+00> : vector<4x256xf32>
    %131 = tpu.matmul %130, %111, %cst_51 {dimension_numbers = #tpu.dot_dimension_numbers<[1], [0], [0], [1], [0, 0, 1, 1], [], []>} : vector<4x4xf32>, vector<4x256xf32>, vector<4x256xf32> -> vector<4x256xf32>
    %132 = arith.addf %129, %131 : vector<4x256xf32>
    %c255_i32_52 = arith.constant 255 : i32
    %133 = tpu.dynamic_rotate %111 by %c255_i32_52 dim 1 : vector<4x256xf32>, i32 -> vector<4x256xf32>
    %134 = vector.extract_strided_slice %112 {offsets = [0, 20], sizes = [4, 4], strides = [1, 1]} : vector<4x36xf32> to vector<4x4xf32>
    %cst_53 = arith.constant dense<0.000000e+00> : vector<4x256xf32>
    %135 = tpu.matmul %134, %133, %cst_53 {dimension_numbers = #tpu.dot_dimension_numbers<[1], [0], [0], [1], [0, 0, 1, 1], [], []>} : vector<4x4xf32>, vector<4x256xf32>, vector<4x256xf32> -> vector<4x256xf32>
    %136 = arith.addf %132, %135 : vector<4x256xf32>
    %c241_i32_54 = arith.constant 241 : i32
    %137 = tpu.dynamic_rotate %111 by %c241_i32_54 dim 1 : vector<4x256xf32>, i32 -> vector<4x256xf32>
    %138 = vector.extract_strided_slice %112 {offsets = [0, 24], sizes = [4, 4], strides = [1, 1]} : vector<4x36xf32> to vector<4x4xf32>
    %cst_55 = arith.constant dense<0.000000e+00> : vector<4x256xf32>
    %139 = tpu.matmul %138, %137, %cst_55 {dimension_numbers = #tpu.dot_dimension_numbers<[1], [0], [0], [1], [0, 0, 1, 1], [], []>} : vector<4x4xf32>, vector<4x256xf32>, vector<4x256xf32> -> vector<4x256xf32>
    %140 = arith.addf %136, %139 : vector<4x256xf32>
    %c240_i32_56 = arith.constant 240 : i32
    %141 = tpu.dynamic_rotate %111 by %c240_i32_56 dim 1 : vector<4x256xf32>, i32 -> vector<4x256xf32>
    %142 = vector.extract_strided_slice %112 {offsets = [0, 28], sizes = [4, 4], strides = [1, 1]} : vector<4x36xf32> to vector<4x4xf32>
    %cst_57 = arith.constant dense<0.000000e+00> : vector<4x256xf32>
    %143 = tpu.matmul %142, %141, %cst_57 {dimension_numbers = #tpu.dot_dimension_numbers<[1], [0], [0], [1], [0, 0, 1, 1], [], []>} : vector<4x4xf32>, vector<4x256xf32>, vector<4x256xf32> -> vector<4x256xf32>
    %144 = arith.addf %140, %143 : vector<4x256xf32>
    %c239_i32_58 = arith.constant 239 : i32
    %145 = tpu.dynamic_rotate %111 by %c239_i32_58 dim 1 : vector<4x256xf32>, i32 -> vector<4x256xf32>
    %146 = vector.extract_strided_slice %112 {offsets = [0, 32], sizes = [4, 4], strides = [1, 1]} : vector<4x36xf32> to vector<4x4xf32>
    %cst_59 = arith.constant dense<0.000000e+00> : vector<4x256xf32>
    %147 = tpu.matmul %146, %145, %cst_59 {dimension_numbers = #tpu.dot_dimension_numbers<[1], [0], [0], [1], [0, 0, 1, 1], [], []>} : vector<4x4xf32>, vector<4x256xf32>, vector<4x256xf32> -> vector<4x256xf32>
    %148 = arith.addf %144, %147 : vector<4x256xf32>
    %149 = vector.broadcast %114 : vector<4x1xf32> to vector<4x256xf32>
    %150 = arith.addf %148, %149 : vector<4x256xf32>
    %151 = vector.shape_cast %7 : vector<1x256xi1> to vector<1x256xi1>
    %152 = vector.broadcast %151 : vector<1x256xi1> to vector<4x256xi1>
    %153 = vector.shape_cast %113 : vector<4x1xf32> to vector<4x1xf32>
    %154 = vector.broadcast %153 : vector<4x1xf32> to vector<4x256xf32>
    %155 = arith.select %152, %154, %150 : vector<4x256xi1>, vector<4x256xf32>
    %cst_60 = arith.constant 0.000000e+00 : f32
    %156 = vector.broadcast %cst_60 : f32 to vector<4x256xf32>
    %157 = arith.cmpf ogt, %155, %156 : vector<4x256xf32>
    %cst_61 = arith.constant 1.000000e-01 : f32
    %158 = vector.broadcast %cst_61 : f32 to vector<4x256xf32>
    %159 = arith.mulf %158, %155 : vector<4x256xf32>
    %160 = arith.select %157, %155, %159 : vector<4x256xi1>, vector<4x256xf32>
    %161 = vector.extract_strided_slice %0 {offsets = [0, 108], sizes = [4, 36], strides = [1, 1]} : vector<4x180xf32> to vector<4x36xf32>
    %162 = vector.extract_strided_slice %2 {offsets = [0, 6], sizes = [4, 1], strides = [1, 1]} : vector<8x13xf32> to vector<4x1xf32>
    %163 = vector.extract_strided_slice %2 {offsets = [0, 7], sizes = [4, 1], strides = [1, 1]} : vector<8x13xf32> to vector<4x1xf32>
    %c17_i32_62 = arith.constant 17 : i32
    %164 = tpu.dynamic_rotate %160 by %c17_i32_62 dim 1 : vector<4x256xf32>, i32 -> vector<4x256xf32>
    %165 = vector.extract_strided_slice %161 {offsets = [0, 0], sizes = [4, 4], strides = [1, 1]} : vector<4x36xf32> to vector<4x4xf32>
    %cst_63 = arith.constant dense<0.000000e+00> : vector<4x256xf32>
    %166 = tpu.matmul %165, %164, %cst_63 {dimension_numbers = #tpu.dot_dimension_numbers<[1], [0], [0], [1], [0, 0, 1, 1], [], []>} : vector<4x4xf32>, vector<4x256xf32>, vector<4x256xf32> -> vector<4x256xf32>
    %c16_i32_64 = arith.constant 16 : i32
    %167 = tpu.dynamic_rotate %160 by %c16_i32_64 dim 1 : vector<4x256xf32>, i32 -> vector<4x256xf32>
    %168 = vector.extract_strided_slice %161 {offsets = [0, 4], sizes = [4, 4], strides = [1, 1]} : vector<4x36xf32> to vector<4x4xf32>
    %cst_65 = arith.constant dense<0.000000e+00> : vector<4x256xf32>
    %169 = tpu.matmul %168, %167, %cst_65 {dimension_numbers = #tpu.dot_dimension_numbers<[1], [0], [0], [1], [0, 0, 1, 1], [], []>} : vector<4x4xf32>, vector<4x256xf32>, vector<4x256xf32> -> vector<4x256xf32>
    %170 = arith.addf %166, %169 : vector<4x256xf32>
    %c15_i32_66 = arith.constant 15 : i32
    %171 = tpu.dynamic_rotate %160 by %c15_i32_66 dim 1 : vector<4x256xf32>, i32 -> vector<4x256xf32>
    %172 = vector.extract_strided_slice %161 {offsets = [0, 8], sizes = [4, 4], strides = [1, 1]} : vector<4x36xf32> to vector<4x4xf32>
    %cst_67 = arith.constant dense<0.000000e+00> : vector<4x256xf32>
    %173 = tpu.matmul %172, %171, %cst_67 {dimension_numbers = #tpu.dot_dimension_numbers<[1], [0], [0], [1], [0, 0, 1, 1], [], []>} : vector<4x4xf32>, vector<4x256xf32>, vector<4x256xf32> -> vector<4x256xf32>
    %174 = arith.addf %170, %173 : vector<4x256xf32>
    %c1_i32_68 = arith.constant 1 : i32
    %175 = tpu.dynamic_rotate %160 by %c1_i32_68 dim 1 : vector<4x256xf32>, i32 -> vector<4x256xf32>
    %176 = vector.extract_strided_slice %161 {offsets = [0, 12], sizes = [4, 4], strides = [1, 1]} : vector<4x36xf32> to vector<4x4xf32>
    %cst_69 = arith.constant dense<0.000000e+00> : vector<4x256xf32>
    %177 = tpu.matmul %176, %175, %cst_69 {dimension_numbers = #tpu.dot_dimension_numbers<[1], [0], [0], [1], [0, 0, 1, 1], [], []>} : vector<4x4xf32>, vector<4x256xf32>, vector<4x256xf32> -> vector<4x256xf32>
    %178 = arith.addf %174, %177 : vector<4x256xf32>
    %179 = vector.extract_strided_slice %161 {offsets = [0, 16], sizes = [4, 4], strides = [1, 1]} : vector<4x36xf32> to vector<4x4xf32>
    %cst_70 = arith.constant dense<0.000000e+00> : vector<4x256xf32>
    %180 = tpu.matmul %179, %160, %cst_70 {dimension_numbers = #tpu.dot_dimension_numbers<[1], [0], [0], [1], [0, 0, 1, 1], [], []>} : vector<4x4xf32>, vector<4x256xf32>, vector<4x256xf32> -> vector<4x256xf32>
    %181 = arith.addf %178, %180 : vector<4x256xf32>
    %c255_i32_71 = arith.constant 255 : i32
    %182 = tpu.dynamic_rotate %160 by %c255_i32_71 dim 1 : vector<4x256xf32>, i32 -> vector<4x256xf32>
    %183 = vector.extract_strided_slice %161 {offsets = [0, 20], sizes = [4, 4], strides = [1, 1]} : vector<4x36xf32> to vector<4x4xf32>
    %cst_72 = arith.constant dense<0.000000e+00> : vector<4x256xf32>
    %184 = tpu.matmul %183, %182, %cst_72 {dimension_numbers = #tpu.dot_dimension_numbers<[1], [0], [0], [1], [0, 0, 1, 1], [], []>} : vector<4x4xf32>, vector<4x256xf32>, vector<4x256xf32> -> vector<4x256xf32>
    %185 = arith.addf %181, %184 : vector<4x256xf32>
    %c241_i32_73 = arith.constant 241 : i32
    %186 = tpu.dynamic_rotate %160 by %c241_i32_73 dim 1 : vector<4x256xf32>, i32 -> vector<4x256xf32>
    %187 = vector.extract_strided_slice %161 {offsets = [0, 24], sizes = [4, 4], strides = [1, 1]} : vector<4x36xf32> to vector<4x4xf32>
    %cst_74 = arith.constant dense<0.000000e+00> : vector<4x256xf32>
    %188 = tpu.matmul %187, %186, %cst_74 {dimension_numbers = #tpu.dot_dimension_numbers<[1], [0], [0], [1], [0, 0, 1, 1], [], []>} : vector<4x4xf32>, vector<4x256xf32>, vector<4x256xf32> -> vector<4x256xf32>
    %189 = arith.addf %185, %188 : vector<4x256xf32>
    %c240_i32_75 = arith.constant 240 : i32
    %190 = tpu.dynamic_rotate %160 by %c240_i32_75 dim 1 : vector<4x256xf32>, i32 -> vector<4x256xf32>
    %191 = vector.extract_strided_slice %161 {offsets = [0, 28], sizes = [4, 4], strides = [1, 1]} : vector<4x36xf32> to vector<4x4xf32>
    %cst_76 = arith.constant dense<0.000000e+00> : vector<4x256xf32>
    %192 = tpu.matmul %191, %190, %cst_76 {dimension_numbers = #tpu.dot_dimension_numbers<[1], [0], [0], [1], [0, 0, 1, 1], [], []>} : vector<4x4xf32>, vector<4x256xf32>, vector<4x256xf32> -> vector<4x256xf32>
    %193 = arith.addf %189, %192 : vector<4x256xf32>
    %c239_i32_77 = arith.constant 239 : i32
    %194 = tpu.dynamic_rotate %160 by %c239_i32_77 dim 1 : vector<4x256xf32>, i32 -> vector<4x256xf32>
    %195 = vector.extract_strided_slice %161 {offsets = [0, 32], sizes = [4, 4], strides = [1, 1]} : vector<4x36xf32> to vector<4x4xf32>
    %cst_78 = arith.constant dense<0.000000e+00> : vector<4x256xf32>
    %196 = tpu.matmul %195, %194, %cst_78 {dimension_numbers = #tpu.dot_dimension_numbers<[1], [0], [0], [1], [0, 0, 1, 1], [], []>} : vector<4x4xf32>, vector<4x256xf32>, vector<4x256xf32> -> vector<4x256xf32>
    %197 = arith.addf %193, %196 : vector<4x256xf32>
    %198 = vector.broadcast %163 : vector<4x1xf32> to vector<4x256xf32>
    %199 = arith.addf %197, %198 : vector<4x256xf32>
    %200 = vector.shape_cast %7 : vector<1x256xi1> to vector<1x256xi1>
    %201 = vector.broadcast %200 : vector<1x256xi1> to vector<4x256xi1>
    %202 = vector.shape_cast %162 : vector<4x1xf32> to vector<4x1xf32>
    %203 = vector.broadcast %202 : vector<4x1xf32> to vector<4x256xf32>
    %204 = arith.select %201, %203, %199 : vector<4x256xi1>, vector<4x256xf32>
    %205 = arith.addf %204, %111 : vector<4x256xf32>
    %cst_79 = arith.constant 0.000000e+00 : f32
    %206 = vector.broadcast %cst_79 : f32 to vector<4x256xf32>
    %207 = arith.cmpf ogt, %205, %206 : vector<4x256xf32>
    %cst_80 = arith.constant 1.000000e-01 : f32
    %208 = vector.broadcast %cst_80 : f32 to vector<4x256xf32>
    %209 = arith.mulf %208, %205 : vector<4x256xf32>
    %210 = arith.select %207, %205, %209 : vector<4x256xi1>, vector<4x256xf32>
    %cst_81 = arith.constant dense<0.000000e+00> : vector<4x64xf32>
    %211 = tpu.matmul %210, %4, %cst_81 {dimension_numbers = #tpu.dot_dimension_numbers<[1], [0], [0], [1], [0, 0, 1, 1], [], []>} : vector<4x256xf32>, vector<256x64xf32>, vector<4x64xf32> -> vector<4x64xf32>
    %212 = vector.extract_strided_slice %1 {offsets = [0, 8], sizes = [8, 4], strides = [1, 1]} : vector<8x12xf32> to vector<8x4xf32>
    %213 = vector.extract_strided_slice %2 {offsets = [0, 12], sizes = [8, 1], strides = [1, 1]} : vector<8x13xf32> to vector<8x1xf32>
    %cst_82 = arith.constant dense<0.000000e+00> : vector<8x64xf32>
    %214 = tpu.matmul %212, %211, %cst_82 {dimension_numbers = #tpu.dot_dimension_numbers<[1], [0], [0], [1], [0, 0, 1, 1], [], []>} : vector<8x4xf32>, vector<4x64xf32>, vector<8x64xf32> -> vector<8x64xf32>
    %215 = vector.broadcast %213 : vector<8x1xf32> to vector<8x64xf32>
    %216 = arith.addf %214, %215 : vector<8x64xf32>
    %cst_83 = arith.constant 0.000000e+00 : f32
    %217 = vector.broadcast %cst_83 : f32 to vector<8x64xf32>
    %218 = arith.cmpf ogt, %216, %217 : vector<8x64xf32>
    %cst_84 = arith.constant 1.000000e-01 : f32
    %219 = vector.broadcast %cst_84 : f32 to vector<8x64xf32>
    %220 = arith.mulf %219, %216 : vector<8x64xf32>
    %221 = arith.select %218, %216, %220 : vector<8x64xi1>, vector<8x64xf32>
    %222 = vector.extract_strided_slice %1 {offsets = [0, 0], sizes = [4, 4], strides = [1, 1]} : vector<8x12xf32> to vector<4x4xf32>
    %223 = vector.extract_strided_slice %2 {offsets = [0, 10], sizes = [4, 1], strides = [1, 1]} : vector<8x13xf32> to vector<4x1xf32>
    %cst_85 = arith.constant dense<0.000000e+00> : vector<4x64xf32>
    %224 = tpu.matmul %222, %211, %cst_85 {dimension_numbers = #tpu.dot_dimension_numbers<[1], [0], [0], [1], [0, 0, 1, 1], [], []>} : vector<4x4xf32>, vector<4x64xf32>, vector<4x64xf32> -> vector<4x64xf32>
    %225 = vector.broadcast %223 : vector<4x1xf32> to vector<4x64xf32>
    %226 = arith.addf %224, %225 : vector<4x64xf32>
    %cst_86 = arith.constant 0.000000e+00 : f32
    %227 = vector.broadcast %cst_86 : f32 to vector<4x64xf32>
    %228 = arith.cmpf ogt, %226, %227 : vector<4x64xf32>
    %cst_87 = arith.constant 1.000000e-01 : f32
    %229 = vector.broadcast %cst_87 : f32 to vector<4x64xf32>
    %230 = arith.mulf %229, %226 : vector<4x64xf32>
    %231 = arith.select %228, %226, %230 : vector<4x64xi1>, vector<4x64xf32>
    %232 = vector.extract_strided_slice %0 {offsets = [0, 144], sizes = [4, 36], strides = [1, 1]} : vector<4x180xf32> to vector<4x36xf32>
    %233 = vector.extract_strided_slice %2 {offsets = [0, 8], sizes = [4, 1], strides = [1, 1]} : vector<8x13xf32> to vector<4x1xf32>
    %234 = vector.extract_strided_slice %2 {offsets = [0, 9], sizes = [4, 1], strides = [1, 1]} : vector<8x13xf32> to vector<4x1xf32>
    %c9_i32 = arith.constant 9 : i32
    %235 = tpu.dynamic_rotate %231 by %c9_i32 dim 1 : vector<4x64xf32>, i32 -> vector<4x64xf32>
    %236 = vector.extract_strided_slice %232 {offsets = [0, 0], sizes = [4, 4], strides = [1, 1]} : vector<4x36xf32> to vector<4x4xf32>
    %cst_88 = arith.constant dense<0.000000e+00> : vector<4x64xf32>
    %237 = tpu.matmul %236, %235, %cst_88 {dimension_numbers = #tpu.dot_dimension_numbers<[1], [0], [0], [1], [0, 0, 1, 1], [], []>} : vector<4x4xf32>, vector<4x64xf32>, vector<4x64xf32> -> vector<4x64xf32>
    %c8_i32 = arith.constant 8 : i32
    %238 = tpu.dynamic_rotate %231 by %c8_i32 dim 1 : vector<4x64xf32>, i32 -> vector<4x64xf32>
    %239 = vector.extract_strided_slice %232 {offsets = [0, 4], sizes = [4, 4], strides = [1, 1]} : vector<4x36xf32> to vector<4x4xf32>
    %cst_89 = arith.constant dense<0.000000e+00> : vector<4x64xf32>
    %240 = tpu.matmul %239, %238, %cst_89 {dimension_numbers = #tpu.dot_dimension_numbers<[1], [0], [0], [1], [0, 0, 1, 1], [], []>} : vector<4x4xf32>, vector<4x64xf32>, vector<4x64xf32> -> vector<4x64xf32>
    %241 = arith.addf %237, %240 : vector<4x64xf32>
    %c7_i32 = arith.constant 7 : i32
    %242 = tpu.dynamic_rotate %231 by %c7_i32 dim 1 : vector<4x64xf32>, i32 -> vector<4x64xf32>
    %243 = vector.extract_strided_slice %232 {offsets = [0, 8], sizes = [4, 4], strides = [1, 1]} : vector<4x36xf32> to vector<4x4xf32>
    %cst_90 = arith.constant dense<0.000000e+00> : vector<4x64xf32>
    %244 = tpu.matmul %243, %242, %cst_90 {dimension_numbers = #tpu.dot_dimension_numbers<[1], [0], [0], [1], [0, 0, 1, 1], [], []>} : vector<4x4xf32>, vector<4x64xf32>, vector<4x64xf32> -> vector<4x64xf32>
    %245 = arith.addf %241, %244 : vector<4x64xf32>
    %c1_i32_91 = arith.constant 1 : i32
    %246 = tpu.dynamic_rotate %231 by %c1_i32_91 dim 1 : vector<4x64xf32>, i32 -> vector<4x64xf32>
    %247 = vector.extract_strided_slice %232 {offsets = [0, 12], sizes = [4, 4], strides = [1, 1]} : vector<4x36xf32> to vector<4x4xf32>
    %cst_92 = arith.constant dense<0.000000e+00> : vector<4x64xf32>
    %248 = tpu.matmul %247, %246, %cst_92 {dimension_numbers = #tpu.dot_dimension_numbers<[1], [0], [0], [1], [0, 0, 1, 1], [], []>} : vector<4x4xf32>, vector<4x64xf32>, vector<4x64xf32> -> vector<4x64xf32>
    %249 = arith.addf %245, %248 : vector<4x64xf32>
    %250 = vector.extract_strided_slice %232 {offsets = [0, 16], sizes = [4, 4], strides = [1, 1]} : vector<4x36xf32> to vector<4x4xf32>
    %cst_93 = arith.constant dense<0.000000e+00> : vector<4x64xf32>
    %251 = tpu.matmul %250, %231, %cst_93 {dimension_numbers = #tpu.dot_dimension_numbers<[1], [0], [0], [1], [0, 0, 1, 1], [], []>} : vector<4x4xf32>, vector<4x64xf32>, vector<4x64xf32> -> vector<4x64xf32>
    %252 = arith.addf %249, %251 : vector<4x64xf32>
    %c63_i32 = arith.constant 63 : i32
    %253 = tpu.dynamic_rotate %231 by %c63_i32 dim 1 : vector<4x64xf32>, i32 -> vector<4x64xf32>
    %254 = vector.extract_strided_slice %232 {offsets = [0, 20], sizes = [4, 4], strides = [1, 1]} : vector<4x36xf32> to vector<4x4xf32>
    %cst_94 = arith.constant dense<0.000000e+00> : vector<4x64xf32>
    %255 = tpu.matmul %254, %253, %cst_94 {dimension_numbers = #tpu.dot_dimension_numbers<[1], [0], [0], [1], [0, 0, 1, 1], [], []>} : vector<4x4xf32>, vector<4x64xf32>, vector<4x64xf32> -> vector<4x64xf32>
    %256 = arith.addf %252, %255 : vector<4x64xf32>
    %c57_i32 = arith.constant 57 : i32
    %257 = tpu.dynamic_rotate %231 by %c57_i32 dim 1 : vector<4x64xf32>, i32 -> vector<4x64xf32>
    %258 = vector.extract_strided_slice %232 {offsets = [0, 24], sizes = [4, 4], strides = [1, 1]} : vector<4x36xf32> to vector<4x4xf32>
    %cst_95 = arith.constant dense<0.000000e+00> : vector<4x64xf32>
    %259 = tpu.matmul %258, %257, %cst_95 {dimension_numbers = #tpu.dot_dimension_numbers<[1], [0], [0], [1], [0, 0, 1, 1], [], []>} : vector<4x4xf32>, vector<4x64xf32>, vector<4x64xf32> -> vector<4x64xf32>
    %260 = arith.addf %256, %259 : vector<4x64xf32>
    %c56_i32 = arith.constant 56 : i32
    %261 = tpu.dynamic_rotate %231 by %c56_i32 dim 1 : vector<4x64xf32>, i32 -> vector<4x64xf32>
    %262 = vector.extract_strided_slice %232 {offsets = [0, 28], sizes = [4, 4], strides = [1, 1]} : vector<4x36xf32> to vector<4x4xf32>
    %cst_96 = arith.constant dense<0.000000e+00> : vector<4x64xf32>
    %263 = tpu.matmul %262, %261, %cst_96 {dimension_numbers = #tpu.dot_dimension_numbers<[1], [0], [0], [1], [0, 0, 1, 1], [], []>} : vector<4x4xf32>, vector<4x64xf32>, vector<4x64xf32> -> vector<4x64xf32>
    %264 = arith.addf %260, %263 : vector<4x64xf32>
    %c55_i32 = arith.constant 55 : i32
    %265 = tpu.dynamic_rotate %231 by %c55_i32 dim 1 : vector<4x64xf32>, i32 -> vector<4x64xf32>
    %266 = vector.extract_strided_slice %232 {offsets = [0, 32], sizes = [4, 4], strides = [1, 1]} : vector<4x36xf32> to vector<4x4xf32>
    %cst_97 = arith.constant dense<0.000000e+00> : vector<4x64xf32>
    %267 = tpu.matmul %266, %265, %cst_97 {dimension_numbers = #tpu.dot_dimension_numbers<[1], [0], [0], [1], [0, 0, 1, 1], [], []>} : vector<4x4xf32>, vector<4x64xf32>, vector<4x64xf32> -> vector<4x64xf32>
    %268 = arith.addf %264, %267 : vector<4x64xf32>
    %269 = vector.broadcast %234 : vector<4x1xf32> to vector<4x64xf32>
    %270 = arith.addf %268, %269 : vector<4x64xf32>
    %271 = vector.shape_cast %10 : vector<1x64xi1> to vector<1x64xi1>
    %272 = vector.broadcast %271 : vector<1x64xi1> to vector<4x64xi1>
    %273 = vector.shape_cast %233 : vector<4x1xf32> to vector<4x1xf32>
    %274 = vector.broadcast %273 : vector<4x1xf32> to vector<4x64xf32>
    %275 = arith.select %272, %274, %270 : vector<4x64xi1>, vector<4x64xf32>
    %cst_98 = arith.constant 0.000000e+00 : f32
    %276 = vector.broadcast %cst_98 : f32 to vector<4x64xf32>
    %277 = arith.cmpf ogt, %275, %276 : vector<4x64xf32>
    %cst_99 = arith.constant 1.000000e-01 : f32
    %278 = vector.broadcast %cst_99 : f32 to vector<4x64xf32>
    %279 = arith.mulf %278, %275 : vector<4x64xf32>
    %280 = arith.select %277, %275, %279 : vector<4x64xi1>, vector<4x64xf32>
    %281 = vector.extract_strided_slice %1 {offsets = [0, 4], sizes = [8, 4], strides = [1, 1]} : vector<8x12xf32> to vector<8x4xf32>
    %282 = vector.extract_strided_slice %2 {offsets = [0, 11], sizes = [8, 1], strides = [1, 1]} : vector<8x13xf32> to vector<8x1xf32>
    %cst_100 = arith.constant dense<0.000000e+00> : vector<8x64xf32>
    %283 = tpu.matmul %281, %280, %cst_100 {dimension_numbers = #tpu.dot_dimension_numbers<[1], [0], [0], [1], [0, 0, 1, 1], [], []>} : vector<8x4xf32>, vector<4x64xf32>, vector<8x64xf32> -> vector<8x64xf32>
    %284 = vector.broadcast %282 : vector<8x1xf32> to vector<8x64xf32>
    %285 = arith.addf %283, %284 : vector<8x64xf32>
    %cst_101 = arith.constant 0.000000e+00 : f32
    %286 = vector.broadcast %cst_101 : f32 to vector<8x64xf32>
    %287 = arith.cmpf ogt, %285, %286 : vector<8x64xf32>
    %cst_102 = arith.constant 1.000000e-01 : f32
    %288 = vector.broadcast %cst_102 : f32 to vector<8x64xf32>
    %289 = arith.mulf %288, %285 : vector<8x64xf32>
    %290 = arith.select %287, %285, %289 : vector<8x64xi1>, vector<8x64xf32>
    %291 = arith.addf %290, %221 : vector<8x64xf32>
    %c0_103 = arith.constant 0 : index
    %c0_104 = arith.constant 0 : index
    %c0_105 = arith.constant 0 : index
    %292 = vector.load %arg7[%c0_103, %c0_104, %c0_105] : memref<2x8x64xf32, #tpu.memory_space<vmem>>, vector<1x8x64xf32>
    %293 = vector.shape_cast %292 : vector<1x8x64xf32> to vector<8x64xf32>
    %294 = vector.shape_cast %291 : vector<8x64xf32> to vector<1x8x64xf32>
    tpu.vector_store %arg7[%c0_103, %c0_104, %c0_105], %294 {strides = array<i32>} : memref<2x8x64xf32, #tpu.memory_space<vmem>>, vector<1x8x64xf32>,
    %c1 = arith.constant 1 : index
    %c0_106 = arith.constant 0 : index
    %c0_107 = arith.constant 0 : index
    %295 = vector.load %arg1[%c1, %c0_106, %c0_107] : memref<2x4x256xf32, #tpu.memory_space<vmem>>, vector<1x4x256xf32>
    %296 = vector.shape_cast %295 : vector<1x4x256xf32> to vector<4x256xf32>
    %297 = vector.extract_strided_slice %0 {offsets = [0, 0], sizes = [4, 36], strides = [1, 1]} : vector<4x180xf32> to vector<4x36xf32>
    %298 = vector.extract_strided_slice %2 {offsets = [0, 0], sizes = [4, 1], strides = [1, 1]} : vector<8x13xf32> to vector<4x1xf32>
    %299 = vector.extract_strided_slice %2 {offsets = [0, 1], sizes = [4, 1], strides = [1, 1]} : vector<8x13xf32> to vector<4x1xf32>
    %c17_i32_108 = arith.constant 17 : i32
    %300 = tpu.dynamic_rotate %296 by %c17_i32_108 dim 1 : vector<4x256xf32>, i32 -> vector<4x256xf32>
    %301 = vector.extract_strided_slice %297 {offsets = [0, 0], sizes = [4, 4], strides = [1, 1]} : vector<4x36xf32> to vector<4x4xf32>
    %cst_109 = arith.constant dense<0.000000e+00> : vector<4x256xf32>
    %302 = tpu.matmul %301, %300, %cst_109 {dimension_numbers = #tpu.dot_dimension_numbers<[1], [0], [0], [1], [0, 0, 1, 1], [], []>} : vector<4x4xf32>, vector<4x256xf32>, vector<4x256xf32> -> vector<4x256xf32>
    %c16_i32_110 = arith.constant 16 : i32
    %303 = tpu.dynamic_rotate %296 by %c16_i32_110 dim 1 : vector<4x256xf32>, i32 -> vector<4x256xf32>
    %304 = vector.extract_strided_slice %297 {offsets = [0, 4], sizes = [4, 4], strides = [1, 1]} : vector<4x36xf32> to vector<4x4xf32>
    %cst_111 = arith.constant dense<0.000000e+00> : vector<4x256xf32>
    %305 = tpu.matmul %304, %303, %cst_111 {dimension_numbers = #tpu.dot_dimension_numbers<[1], [0], [0], [1], [0, 0, 1, 1], [], []>} : vector<4x4xf32>, vector<4x256xf32>, vector<4x256xf32> -> vector<4x256xf32>
    %306 = arith.addf %302, %305 : vector<4x256xf32>
    %c15_i32_112 = arith.constant 15 : i32
    %307 = tpu.dynamic_rotate %296 by %c15_i32_112 dim 1 : vector<4x256xf32>, i32 -> vector<4x256xf32>
    %308 = vector.extract_strided_slice %297 {offsets = [0, 8], sizes = [4, 4], strides = [1, 1]} : vector<4x36xf32> to vector<4x4xf32>
    %cst_113 = arith.constant dense<0.000000e+00> : vector<4x256xf32>
    %309 = tpu.matmul %308, %307, %cst_113 {dimension_numbers = #tpu.dot_dimension_numbers<[1], [0], [0], [1], [0, 0, 1, 1], [], []>} : vector<4x4xf32>, vector<4x256xf32>, vector<4x256xf32> -> vector<4x256xf32>
    %310 = arith.addf %306, %309 : vector<4x256xf32>
    %c1_i32_114 = arith.constant 1 : i32
    %311 = tpu.dynamic_rotate %296 by %c1_i32_114 dim 1 : vector<4x256xf32>, i32 -> vector<4x256xf32>
    %312 = vector.extract_strided_slice %297 {offsets = [0, 12], sizes = [4, 4], strides = [1, 1]} : vector<4x36xf32> to vector<4x4xf32>
    %cst_115 = arith.constant dense<0.000000e+00> : vector<4x256xf32>
    %313 = tpu.matmul %312, %311, %cst_115 {dimension_numbers = #tpu.dot_dimension_numbers<[1], [0], [0], [1], [0, 0, 1, 1], [], []>} : vector<4x4xf32>, vector<4x256xf32>, vector<4x256xf32> -> vector<4x256xf32>
    %314 = arith.addf %310, %313 : vector<4x256xf32>
    %315 = vector.extract_strided_slice %297 {offsets = [0, 16], sizes = [4, 4], strides = [1, 1]} : vector<4x36xf32> to vector<4x4xf32>
    %cst_116 = arith.constant dense<0.000000e+00> : vector<4x256xf32>
    %316 = tpu.matmul %315, %296, %cst_116 {dimension_numbers = #tpu.dot_dimension_numbers<[1], [0], [0], [1], [0, 0, 1, 1], [], []>} : vector<4x4xf32>, vector<4x256xf32>, vector<4x256xf32> -> vector<4x256xf32>
    %317 = arith.addf %314, %316 : vector<4x256xf32>
    %c255_i32_117 = arith.constant 255 : i32
    %318 = tpu.dynamic_rotate %296 by %c255_i32_117 dim 1 : vector<4x256xf32>, i32 -> vector<4x256xf32>
    %319 = vector.extract_strided_slice %297 {offsets = [0, 20], sizes = [4, 4], strides = [1, 1]} : vector<4x36xf32> to vector<4x4xf32>
    %cst_118 = arith.constant dense<0.000000e+00> : vector<4x256xf32>
    %320 = tpu.matmul %319, %318, %cst_118 {dimension_numbers = #tpu.dot_dimension_numbers<[1], [0], [0], [1], [0, 0, 1, 1], [], []>} : vector<4x4xf32>, vector<4x256xf32>, vector<4x256xf32> -> vector<4x256xf32>
    %321 = arith.addf %317, %320 : vector<4x256xf32>
    %c241_i32_119 = arith.constant 241 : i32
    %322 = tpu.dynamic_rotate %296 by %c241_i32_119 dim 1 : vector<4x256xf32>, i32 -> vector<4x256xf32>
    %323 = vector.extract_strided_slice %297 {offsets = [0, 24], sizes = [4, 4], strides = [1, 1]} : vector<4x36xf32> to vector<4x4xf32>
    %cst_120 = arith.constant dense<0.000000e+00> : vector<4x256xf32>
    %324 = tpu.matmul %323, %322, %cst_120 {dimension_numbers = #tpu.dot_dimension_numbers<[1], [0], [0], [1], [0, 0, 1, 1], [], []>} : vector<4x4xf32>, vector<4x256xf32>, vector<4x256xf32> -> vector<4x256xf32>
    %325 = arith.addf %321, %324 : vector<4x256xf32>
    %c240_i32_121 = arith.constant 240 : i32
    %326 = tpu.dynamic_rotate %296 by %c240_i32_121 dim 1 : vector<4x256xf32>, i32 -> vector<4x256xf32>
    %327 = vector.extract_strided_slice %297 {offsets = [0, 28], sizes = [4, 4], strides = [1, 1]} : vector<4x36xf32> to vector<4x4xf32>
    %cst_122 = arith.constant dense<0.000000e+00> : vector<4x256xf32>
    %328 = tpu.matmul %327, %326, %cst_122 {dimension_numbers = #tpu.dot_dimension_numbers<[1], [0], [0], [1], [0, 0, 1, 1], [], []>} : vector<4x4xf32>, vector<4x256xf32>, vector<4x256xf32> -> vector<4x256xf32>
    %329 = arith.addf %325, %328 : vector<4x256xf32>
    %c239_i32_123 = arith.constant 239 : i32
    %330 = tpu.dynamic_rotate %296 by %c239_i32_123 dim 1 : vector<4x256xf32>, i32 -> vector<4x256xf32>
    %331 = vector.extract_strided_slice %297 {offsets = [0, 32], sizes = [4, 4], strides = [1, 1]} : vector<4x36xf32> to vector<4x4xf32>
    %cst_124 = arith.constant dense<0.000000e+00> : vector<4x256xf32>
    %332 = tpu.matmul %331, %330, %cst_124 {dimension_numbers = #tpu.dot_dimension_numbers<[1], [0], [0], [1], [0, 0, 1, 1], [], []>} : vector<4x4xf32>, vector<4x256xf32>, vector<4x256xf32> -> vector<4x256xf32>
    %333 = arith.addf %329, %332 : vector<4x256xf32>
    %334 = vector.broadcast %299 : vector<4x1xf32> to vector<4x256xf32>
    %335 = arith.addf %333, %334 : vector<4x256xf32>
    %336 = vector.shape_cast %7 : vector<1x256xi1> to vector<1x256xi1>
    %337 = vector.broadcast %336 : vector<1x256xi1> to vector<4x256xi1>
    %338 = vector.shape_cast %298 : vector<4x1xf32> to vector<4x1xf32>
    %339 = vector.broadcast %338 : vector<4x1xf32> to vector<4x256xf32>
    %340 = arith.select %337, %339, %335 : vector<4x256xi1>, vector<4x256xf32>
    %cst_125 = arith.constant 0.000000e+00 : f32
    %341 = vector.broadcast %cst_125 : f32 to vector<4x256xf32>
    %342 = arith.cmpf ogt, %340, %341 : vector<4x256xf32>
    %cst_126 = arith.constant 1.000000e-01 : f32
    %343 = vector.broadcast %cst_126 : f32 to vector<4x256xf32>
    %344 = arith.mulf %343, %340 : vector<4x256xf32>
    %345 = arith.select %342, %340, %344 : vector<4x256xi1>, vector<4x256xf32>
    %346 = vector.extract_strided_slice %0 {offsets = [0, 36], sizes = [4, 36], strides = [1, 1]} : vector<4x180xf32> to vector<4x36xf32>
    %347 = vector.extract_strided_slice %2 {offsets = [0, 2], sizes = [4, 1], strides = [1, 1]} : vector<8x13xf32> to vector<4x1xf32>
    %348 = vector.extract_strided_slice %2 {offsets = [0, 3], sizes = [4, 1], strides = [1, 1]} : vector<8x13xf32> to vector<4x1xf32>
    %c17_i32_127 = arith.constant 17 : i32
    %349 = tpu.dynamic_rotate %345 by %c17_i32_127 dim 1 : vector<4x256xf32>, i32 -> vector<4x256xf32>
    %350 = vector.extract_strided_slice %346 {offsets = [0, 0], sizes = [4, 4], strides = [1, 1]} : vector<4x36xf32> to vector<4x4xf32>
    %cst_128 = arith.constant dense<0.000000e+00> : vector<4x256xf32>
    %351 = tpu.matmul %350, %349, %cst_128 {dimension_numbers = #tpu.dot_dimension_numbers<[1], [0], [0], [1], [0, 0, 1, 1], [], []>} : vector<4x4xf32>, vector<4x256xf32>, vector<4x256xf32> -> vector<4x256xf32>
    %c16_i32_129 = arith.constant 16 : i32
    %352 = tpu.dynamic_rotate %345 by %c16_i32_129 dim 1 : vector<4x256xf32>, i32 -> vector<4x256xf32>
    %353 = vector.extract_strided_slice %346 {offsets = [0, 4], sizes = [4, 4], strides = [1, 1]} : vector<4x36xf32> to vector<4x4xf32>
    %cst_130 = arith.constant dense<0.000000e+00> : vector<4x256xf32>
    %354 = tpu.matmul %353, %352, %cst_130 {dimension_numbers = #tpu.dot_dimension_numbers<[1], [0], [0], [1], [0, 0, 1, 1], [], []>} : vector<4x4xf32>, vector<4x256xf32>, vector<4x256xf32> -> vector<4x256xf32>
    %355 = arith.addf %351, %354 : vector<4x256xf32>
    %c15_i32_131 = arith.constant 15 : i32
    %356 = tpu.dynamic_rotate %345 by %c15_i32_131 dim 1 : vector<4x256xf32>, i32 -> vector<4x256xf32>
    %357 = vector.extract_strided_slice %346 {offsets = [0, 8], sizes = [4, 4], strides = [1, 1]} : vector<4x36xf32> to vector<4x4xf32>
    %cst_132 = arith.constant dense<0.000000e+00> : vector<4x256xf32>
    %358 = tpu.matmul %357, %356, %cst_132 {dimension_numbers = #tpu.dot_dimension_numbers<[1], [0], [0], [1], [0, 0, 1, 1], [], []>} : vector<4x4xf32>, vector<4x256xf32>, vector<4x256xf32> -> vector<4x256xf32>
    %359 = arith.addf %355, %358 : vector<4x256xf32>
    %c1_i32_133 = arith.constant 1 : i32
    %360 = tpu.dynamic_rotate %345 by %c1_i32_133 dim 1 : vector<4x256xf32>, i32 -> vector<4x256xf32>
    %361 = vector.extract_strided_slice %346 {offsets = [0, 12], sizes = [4, 4], strides = [1, 1]} : vector<4x36xf32> to vector<4x4xf32>
    %cst_134 = arith.constant dense<0.000000e+00> : vector<4x256xf32>
    %362 = tpu.matmul %361, %360, %cst_134 {dimension_numbers = #tpu.dot_dimension_numbers<[1], [0], [0], [1], [0, 0, 1, 1], [], []>} : vector<4x4xf32>, vector<4x256xf32>, vector<4x256xf32> -> vector<4x256xf32>
    %363 = arith.addf %359, %362 : vector<4x256xf32>
    %364 = vector.extract_strided_slice %346 {offsets = [0, 16], sizes = [4, 4], strides = [1, 1]} : vector<4x36xf32> to vector<4x4xf32>
    %cst_135 = arith.constant dense<0.000000e+00> : vector<4x256xf32>
    %365 = tpu.matmul %364, %345, %cst_135 {dimension_numbers = #tpu.dot_dimension_numbers<[1], [0], [0], [1], [0, 0, 1, 1], [], []>} : vector<4x4xf32>, vector<4x256xf32>, vector<4x256xf32> -> vector<4x256xf32>
    %366 = arith.addf %363, %365 : vector<4x256xf32>
    %c255_i32_136 = arith.constant 255 : i32
    %367 = tpu.dynamic_rotate %345 by %c255_i32_136 dim 1 : vector<4x256xf32>, i32 -> vector<4x256xf32>
    %368 = vector.extract_strided_slice %346 {offsets = [0, 20], sizes = [4, 4], strides = [1, 1]} : vector<4x36xf32> to vector<4x4xf32>
    %cst_137 = arith.constant dense<0.000000e+00> : vector<4x256xf32>
    %369 = tpu.matmul %368, %367, %cst_137 {dimension_numbers = #tpu.dot_dimension_numbers<[1], [0], [0], [1], [0, 0, 1, 1], [], []>} : vector<4x4xf32>, vector<4x256xf32>, vector<4x256xf32> -> vector<4x256xf32>
    %370 = arith.addf %366, %369 : vector<4x256xf32>
    %c241_i32_138 = arith.constant 241 : i32
    %371 = tpu.dynamic_rotate %345 by %c241_i32_138 dim 1 : vector<4x256xf32>, i32 -> vector<4x256xf32>
    %372 = vector.extract_strided_slice %346 {offsets = [0, 24], sizes = [4, 4], strides = [1, 1]} : vector<4x36xf32> to vector<4x4xf32>
    %cst_139 = arith.constant dense<0.000000e+00> : vector<4x256xf32>
    %373 = tpu.matmul %372, %371, %cst_139 {dimension_numbers = #tpu.dot_dimension_numbers<[1], [0], [0], [1], [0, 0, 1, 1], [], []>} : vector<4x4xf32>, vector<4x256xf32>, vector<4x256xf32> -> vector<4x256xf32>
    %374 = arith.addf %370, %373 : vector<4x256xf32>
    %c240_i32_140 = arith.constant 240 : i32
    %375 = tpu.dynamic_rotate %345 by %c240_i32_140 dim 1 : vector<4x256xf32>, i32 -> vector<4x256xf32>
    %376 = vector.extract_strided_slice %346 {offsets = [0, 28], sizes = [4, 4], strides = [1, 1]} : vector<4x36xf32> to vector<4x4xf32>
    %cst_141 = arith.constant dense<0.000000e+00> : vector<4x256xf32>
    %377 = tpu.matmul %376, %375, %cst_141 {dimension_numbers = #tpu.dot_dimension_numbers<[1], [0], [0], [1], [0, 0, 1, 1], [], []>} : vector<4x4xf32>, vector<4x256xf32>, vector<4x256xf32> -> vector<4x256xf32>
    %378 = arith.addf %374, %377 : vector<4x256xf32>
    %c239_i32_142 = arith.constant 239 : i32
    %379 = tpu.dynamic_rotate %345 by %c239_i32_142 dim 1 : vector<4x256xf32>, i32 -> vector<4x256xf32>
    %380 = vector.extract_strided_slice %346 {offsets = [0, 32], sizes = [4, 4], strides = [1, 1]} : vector<4x36xf32> to vector<4x4xf32>
    %cst_143 = arith.constant dense<0.000000e+00> : vector<4x256xf32>
    %381 = tpu.matmul %380, %379, %cst_143 {dimension_numbers = #tpu.dot_dimension_numbers<[1], [0], [0], [1], [0, 0, 1, 1], [], []>} : vector<4x4xf32>, vector<4x256xf32>, vector<4x256xf32> -> vector<4x256xf32>
    %382 = arith.addf %378, %381 : vector<4x256xf32>
    %383 = vector.broadcast %348 : vector<4x1xf32> to vector<4x256xf32>
    %384 = arith.addf %382, %383 : vector<4x256xf32>
    %385 = vector.shape_cast %7 : vector<1x256xi1> to vector<1x256xi1>
    %386 = vector.broadcast %385 : vector<1x256xi1> to vector<4x256xi1>
    %387 = vector.shape_cast %347 : vector<4x1xf32> to vector<4x1xf32>
    %388 = vector.broadcast %387 : vector<4x1xf32> to vector<4x256xf32>
    %389 = arith.select %386, %388, %384 : vector<4x256xi1>, vector<4x256xf32>
    %390 = arith.addf %389, %296 : vector<4x256xf32>
    %cst_144 = arith.constant 0.000000e+00 : f32
    %391 = vector.broadcast %cst_144 : f32 to vector<4x256xf32>
    %392 = arith.cmpf ogt, %390, %391 : vector<4x256xf32>
    %cst_145 = arith.constant 1.000000e-01 : f32
    %393 = vector.broadcast %cst_145 : f32 to vector<4x256xf32>
    %394 = arith.mulf %393, %390 : vector<4x256xf32>
    %395 = arith.select %392, %390, %394 : vector<4x256xi1>, vector<4x256xf32>
    %396 = vector.extract_strided_slice %0 {offsets = [0, 72], sizes = [4, 36], strides = [1, 1]} : vector<4x180xf32> to vector<4x36xf32>
    %397 = vector.extract_strided_slice %2 {offsets = [0, 4], sizes = [4, 1], strides = [1, 1]} : vector<8x13xf32> to vector<4x1xf32>
    %398 = vector.extract_strided_slice %2 {offsets = [0, 5], sizes = [4, 1], strides = [1, 1]} : vector<8x13xf32> to vector<4x1xf32>
    %c17_i32_146 = arith.constant 17 : i32
    %399 = tpu.dynamic_rotate %395 by %c17_i32_146 dim 1 : vector<4x256xf32>, i32 -> vector<4x256xf32>
    %400 = vector.extract_strided_slice %396 {offsets = [0, 0], sizes = [4, 4], strides = [1, 1]} : vector<4x36xf32> to vector<4x4xf32>
    %cst_147 = arith.constant dense<0.000000e+00> : vector<4x256xf32>
    %401 = tpu.matmul %400, %399, %cst_147 {dimension_numbers = #tpu.dot_dimension_numbers<[1], [0], [0], [1], [0, 0, 1, 1], [], []>} : vector<4x4xf32>, vector<4x256xf32>, vector<4x256xf32> -> vector<4x256xf32>
    %c16_i32_148 = arith.constant 16 : i32
    %402 = tpu.dynamic_rotate %395 by %c16_i32_148 dim 1 : vector<4x256xf32>, i32 -> vector<4x256xf32>
    %403 = vector.extract_strided_slice %396 {offsets = [0, 4], sizes = [4, 4], strides = [1, 1]} : vector<4x36xf32> to vector<4x4xf32>
    %cst_149 = arith.constant dense<0.000000e+00> : vector<4x256xf32>
    %404 = tpu.matmul %403, %402, %cst_149 {dimension_numbers = #tpu.dot_dimension_numbers<[1], [0], [0], [1], [0, 0, 1, 1], [], []>} : vector<4x4xf32>, vector<4x256xf32>, vector<4x256xf32> -> vector<4x256xf32>
    %405 = arith.addf %401, %404 : vector<4x256xf32>
    %c15_i32_150 = arith.constant 15 : i32
    %406 = tpu.dynamic_rotate %395 by %c15_i32_150 dim 1 : vector<4x256xf32>, i32 -> vector<4x256xf32>
    %407 = vector.extract_strided_slice %396 {offsets = [0, 8], sizes = [4, 4], strides = [1, 1]} : vector<4x36xf32> to vector<4x4xf32>
    %cst_151 = arith.constant dense<0.000000e+00> : vector<4x256xf32>
    %408 = tpu.matmul %407, %406, %cst_151 {dimension_numbers = #tpu.dot_dimension_numbers<[1], [0], [0], [1], [0, 0, 1, 1], [], []>} : vector<4x4xf32>, vector<4x256xf32>, vector<4x256xf32> -> vector<4x256xf32>
    %409 = arith.addf %405, %408 : vector<4x256xf32>
    %c1_i32_152 = arith.constant 1 : i32
    %410 = tpu.dynamic_rotate %395 by %c1_i32_152 dim 1 : vector<4x256xf32>, i32 -> vector<4x256xf32>
    %411 = vector.extract_strided_slice %396 {offsets = [0, 12], sizes = [4, 4], strides = [1, 1]} : vector<4x36xf32> to vector<4x4xf32>
    %cst_153 = arith.constant dense<0.000000e+00> : vector<4x256xf32>
    %412 = tpu.matmul %411, %410, %cst_153 {dimension_numbers = #tpu.dot_dimension_numbers<[1], [0], [0], [1], [0, 0, 1, 1], [], []>} : vector<4x4xf32>, vector<4x256xf32>, vector<4x256xf32> -> vector<4x256xf32>
    %413 = arith.addf %409, %412 : vector<4x256xf32>
    %414 = vector.extract_strided_slice %396 {offsets = [0, 16], sizes = [4, 4], strides = [1, 1]} : vector<4x36xf32> to vector<4x4xf32>
    %cst_154 = arith.constant dense<0.000000e+00> : vector<4x256xf32>
    %415 = tpu.matmul %414, %395, %cst_154 {dimension_numbers = #tpu.dot_dimension_numbers<[1], [0], [0], [1], [0, 0, 1, 1], [], []>} : vector<4x4xf32>, vector<4x256xf32>, vector<4x256xf32> -> vector<4x256xf32>
    %416 = arith.addf %413, %415 : vector<4x256xf32>
    %c255_i32_155 = arith.constant 255 : i32
    %417 = tpu.dynamic_rotate %395 by %c255_i32_155 dim 1 : vector<4x256xf32>, i32 -> vector<4x256xf32>
    %418 = vector.extract_strided_slice %396 {offsets = [0, 20], sizes = [4, 4], strides = [1, 1]} : vector<4x36xf32> to vector<4x4xf32>
    %cst_156 = arith.constant dense<0.000000e+00> : vector<4x256xf32>
    %419 = tpu.matmul %418, %417, %cst_156 {dimension_numbers = #tpu.dot_dimension_numbers<[1], [0], [0], [1], [0, 0, 1, 1], [], []>} : vector<4x4xf32>, vector<4x256xf32>, vector<4x256xf32> -> vector<4x256xf32>
    %420 = arith.addf %416, %419 : vector<4x256xf32>
    %c241_i32_157 = arith.constant 241 : i32
    %421 = tpu.dynamic_rotate %395 by %c241_i32_157 dim 1 : vector<4x256xf32>, i32 -> vector<4x256xf32>
    %422 = vector.extract_strided_slice %396 {offsets = [0, 24], sizes = [4, 4], strides = [1, 1]} : vector<4x36xf32> to vector<4x4xf32>
    %cst_158 = arith.constant dense<0.000000e+00> : vector<4x256xf32>
    %423 = tpu.matmul %422, %421, %cst_158 {dimension_numbers = #tpu.dot_dimension_numbers<[1], [0], [0], [1], [0, 0, 1, 1], [], []>} : vector<4x4xf32>, vector<4x256xf32>, vector<4x256xf32> -> vector<4x256xf32>
    %424 = arith.addf %420, %423 : vector<4x256xf32>
    %c240_i32_159 = arith.constant 240 : i32
    %425 = tpu.dynamic_rotate %395 by %c240_i32_159 dim 1 : vector<4x256xf32>, i32 -> vector<4x256xf32>
    %426 = vector.extract_strided_slice %396 {offsets = [0, 28], sizes = [4, 4], strides = [1, 1]} : vector<4x36xf32> to vector<4x4xf32>
    %cst_160 = arith.constant dense<0.000000e+00> : vector<4x256xf32>
    %427 = tpu.matmul %426, %425, %cst_160 {dimension_numbers = #tpu.dot_dimension_numbers<[1], [0], [0], [1], [0, 0, 1, 1], [], []>} : vector<4x4xf32>, vector<4x256xf32>, vector<4x256xf32> -> vector<4x256xf32>
    %428 = arith.addf %424, %427 : vector<4x256xf32>
    %c239_i32_161 = arith.constant 239 : i32
    %429 = tpu.dynamic_rotate %395 by %c239_i32_161 dim 1 : vector<4x256xf32>, i32 -> vector<4x256xf32>
    %430 = vector.extract_strided_slice %396 {offsets = [0, 32], sizes = [4, 4], strides = [1, 1]} : vector<4x36xf32> to vector<4x4xf32>
    %cst_162 = arith.constant dense<0.000000e+00> : vector<4x256xf32>
    %431 = tpu.matmul %430, %429, %cst_162 {dimension_numbers = #tpu.dot_dimension_numbers<[1], [0], [0], [1], [0, 0, 1, 1], [], []>} : vector<4x4xf32>, vector<4x256xf32>, vector<4x256xf32> -> vector<4x256xf32>
    %432 = arith.addf %428, %431 : vector<4x256xf32>
    %433 = vector.broadcast %398 : vector<4x1xf32> to vector<4x256xf32>
    %434 = arith.addf %432, %433 : vector<4x256xf32>
    %435 = vector.shape_cast %7 : vector<1x256xi1> to vector<1x256xi1>
    %436 = vector.broadcast %435 : vector<1x256xi1> to vector<4x256xi1>
    %437 = vector.shape_cast %397 : vector<4x1xf32> to vector<4x1xf32>
    %438 = vector.broadcast %437 : vector<4x1xf32> to vector<4x256xf32>
    %439 = arith.select %436, %438, %434 : vector<4x256xi1>, vector<4x256xf32>
    %cst_163 = arith.constant 0.000000e+00 : f32
    %440 = vector.broadcast %cst_163 : f32 to vector<4x256xf32>
    %441 = arith.cmpf ogt, %439, %440 : vector<4x256xf32>
    %cst_164 = arith.constant 1.000000e-01 : f32
    %442 = vector.broadcast %cst_164 : f32 to vector<4x256xf32>
    %443 = arith.mulf %442, %439 : vector<4x256xf32>
    %444 = arith.select %441, %439, %443 : vector<4x256xi1>, vector<4x256xf32>
    %445 = vector.extract_strided_slice %0 {offsets = [0, 108], sizes = [4, 36], strides = [1, 1]} : vector<4x180xf32> to vector<4x36xf32>
    %446 = vector.extract_strided_slice %2 {offsets = [0, 6], sizes = [4, 1], strides = [1, 1]} : vector<8x13xf32> to vector<4x1xf32>
    %447 = vector.extract_strided_slice %2 {offsets = [0, 7], sizes = [4, 1], strides = [1, 1]} : vector<8x13xf32> to vector<4x1xf32>
    %c17_i32_165 = arith.constant 17 : i32
    %448 = tpu.dynamic_rotate %444 by %c17_i32_165 dim 1 : vector<4x256xf32>, i32 -> vector<4x256xf32>
    %449 = vector.extract_strided_slice %445 {offsets = [0, 0], sizes = [4, 4], strides = [1, 1]} : vector<4x36xf32> to vector<4x4xf32>
    %cst_166 = arith.constant dense<0.000000e+00> : vector<4x256xf32>
    %450 = tpu.matmul %449, %448, %cst_166 {dimension_numbers = #tpu.dot_dimension_numbers<[1], [0], [0], [1], [0, 0, 1, 1], [], []>} : vector<4x4xf32>, vector<4x256xf32>, vector<4x256xf32> -> vector<4x256xf32>
    %c16_i32_167 = arith.constant 16 : i32
    %451 = tpu.dynamic_rotate %444 by %c16_i32_167 dim 1 : vector<4x256xf32>, i32 -> vector<4x256xf32>
    %452 = vector.extract_strided_slice %445 {offsets = [0, 4], sizes = [4, 4], strides = [1, 1]} : vector<4x36xf32> to vector<4x4xf32>
    %cst_168 = arith.constant dense<0.000000e+00> : vector<4x256xf32>
    %453 = tpu.matmul %452, %451, %cst_168 {dimension_numbers = #tpu.dot_dimension_numbers<[1], [0], [0], [1], [0, 0, 1, 1], [], []>} : vector<4x4xf32>, vector<4x256xf32>, vector<4x256xf32> -> vector<4x256xf32>
    %454 = arith.addf %450, %453 : vector<4x256xf32>
    %c15_i32_169 = arith.constant 15 : i32
    %455 = tpu.dynamic_rotate %444 by %c15_i32_169 dim 1 : vector<4x256xf32>, i32 -> vector<4x256xf32>
    %456 = vector.extract_strided_slice %445 {offsets = [0, 8], sizes = [4, 4], strides = [1, 1]} : vector<4x36xf32> to vector<4x4xf32>
    %cst_170 = arith.constant dense<0.000000e+00> : vector<4x256xf32>
    %457 = tpu.matmul %456, %455, %cst_170 {dimension_numbers = #tpu.dot_dimension_numbers<[1], [0], [0], [1], [0, 0, 1, 1], [], []>} : vector<4x4xf32>, vector<4x256xf32>, vector<4x256xf32> -> vector<4x256xf32>
    %458 = arith.addf %454, %457 : vector<4x256xf32>
    %c1_i32_171 = arith.constant 1 : i32
    %459 = tpu.dynamic_rotate %444 by %c1_i32_171 dim 1 : vector<4x256xf32>, i32 -> vector<4x256xf32>
    %460 = vector.extract_strided_slice %445 {offsets = [0, 12], sizes = [4, 4], strides = [1, 1]} : vector<4x36xf32> to vector<4x4xf32>
    %cst_172 = arith.constant dense<0.000000e+00> : vector<4x256xf32>
    %461 = tpu.matmul %460, %459, %cst_172 {dimension_numbers = #tpu.dot_dimension_numbers<[1], [0], [0], [1], [0, 0, 1, 1], [], []>} : vector<4x4xf32>, vector<4x256xf32>, vector<4x256xf32> -> vector<4x256xf32>
    %462 = arith.addf %458, %461 : vector<4x256xf32>
    %463 = vector.extract_strided_slice %445 {offsets = [0, 16], sizes = [4, 4], strides = [1, 1]} : vector<4x36xf32> to vector<4x4xf32>
    %cst_173 = arith.constant dense<0.000000e+00> : vector<4x256xf32>
    %464 = tpu.matmul %463, %444, %cst_173 {dimension_numbers = #tpu.dot_dimension_numbers<[1], [0], [0], [1], [0, 0, 1, 1], [], []>} : vector<4x4xf32>, vector<4x256xf32>, vector<4x256xf32> -> vector<4x256xf32>
    %465 = arith.addf %462, %464 : vector<4x256xf32>
    %c255_i32_174 = arith.constant 255 : i32
    %466 = tpu.dynamic_rotate %444 by %c255_i32_174 dim 1 : vector<4x256xf32>, i32 -> vector<4x256xf32>
    %467 = vector.extract_strided_slice %445 {offsets = [0, 20], sizes = [4, 4], strides = [1, 1]} : vector<4x36xf32> to vector<4x4xf32>
    %cst_175 = arith.constant dense<0.000000e+00> : vector<4x256xf32>
    %468 = tpu.matmul %467, %466, %cst_175 {dimension_numbers = #tpu.dot_dimension_numbers<[1], [0], [0], [1], [0, 0, 1, 1], [], []>} : vector<4x4xf32>, vector<4x256xf32>, vector<4x256xf32> -> vector<4x256xf32>
    %469 = arith.addf %465, %468 : vector<4x256xf32>
    %c241_i32_176 = arith.constant 241 : i32
    %470 = tpu.dynamic_rotate %444 by %c241_i32_176 dim 1 : vector<4x256xf32>, i32 -> vector<4x256xf32>
    %471 = vector.extract_strided_slice %445 {offsets = [0, 24], sizes = [4, 4], strides = [1, 1]} : vector<4x36xf32> to vector<4x4xf32>
    %cst_177 = arith.constant dense<0.000000e+00> : vector<4x256xf32>
    %472 = tpu.matmul %471, %470, %cst_177 {dimension_numbers = #tpu.dot_dimension_numbers<[1], [0], [0], [1], [0, 0, 1, 1], [], []>} : vector<4x4xf32>, vector<4x256xf32>, vector<4x256xf32> -> vector<4x256xf32>
    %473 = arith.addf %469, %472 : vector<4x256xf32>
    %c240_i32_178 = arith.constant 240 : i32
    %474 = tpu.dynamic_rotate %444 by %c240_i32_178 dim 1 : vector<4x256xf32>, i32 -> vector<4x256xf32>
    %475 = vector.extract_strided_slice %445 {offsets = [0, 28], sizes = [4, 4], strides = [1, 1]} : vector<4x36xf32> to vector<4x4xf32>
    %cst_179 = arith.constant dense<0.000000e+00> : vector<4x256xf32>
    %476 = tpu.matmul %475, %474, %cst_179 {dimension_numbers = #tpu.dot_dimension_numbers<[1], [0], [0], [1], [0, 0, 1, 1], [], []>} : vector<4x4xf32>, vector<4x256xf32>, vector<4x256xf32> -> vector<4x256xf32>
    %477 = arith.addf %473, %476 : vector<4x256xf32>
    %c239_i32_180 = arith.constant 239 : i32
    %478 = tpu.dynamic_rotate %444 by %c239_i32_180 dim 1 : vector<4x256xf32>, i32 -> vector<4x256xf32>
    %479 = vector.extract_strided_slice %445 {offsets = [0, 32], sizes = [4, 4], strides = [1, 1]} : vector<4x36xf32> to vector<4x4xf32>
    %cst_181 = arith.constant dense<0.000000e+00> : vector<4x256xf32>
    %480 = tpu.matmul %479, %478, %cst_181 {dimension_numbers = #tpu.dot_dimension_numbers<[1], [0], [0], [1], [0, 0, 1, 1], [], []>} : vector<4x4xf32>, vector<4x256xf32>, vector<4x256xf32> -> vector<4x256xf32>
    %481 = arith.addf %477, %480 : vector<4x256xf32>
    %482 = vector.broadcast %447 : vector<4x1xf32> to vector<4x256xf32>
    %483 = arith.addf %481, %482 : vector<4x256xf32>
    %484 = vector.shape_cast %7 : vector<1x256xi1> to vector<1x256xi1>
    %485 = vector.broadcast %484 : vector<1x256xi1> to vector<4x256xi1>
    %486 = vector.shape_cast %446 : vector<4x1xf32> to vector<4x1xf32>
    %487 = vector.broadcast %486 : vector<4x1xf32> to vector<4x256xf32>
    %488 = arith.select %485, %487, %483 : vector<4x256xi1>, vector<4x256xf32>
    %489 = arith.addf %488, %395 : vector<4x256xf32>
    %cst_182 = arith.constant 0.000000e+00 : f32
    %490 = vector.broadcast %cst_182 : f32 to vector<4x256xf32>
    %491 = arith.cmpf ogt, %489, %490 : vector<4x256xf32>
    %cst_183 = arith.constant 1.000000e-01 : f32
    %492 = vector.broadcast %cst_183 : f32 to vector<4x256xf32>
    %493 = arith.mulf %492, %489 : vector<4x256xf32>
    %494 = arith.select %491, %489, %493 : vector<4x256xi1>, vector<4x256xf32>
    %cst_184 = arith.constant dense<0.000000e+00> : vector<4x64xf32>
    %495 = tpu.matmul %494, %4, %cst_184 {dimension_numbers = #tpu.dot_dimension_numbers<[1], [0], [0], [1], [0, 0, 1, 1], [], []>} : vector<4x256xf32>, vector<256x64xf32>, vector<4x64xf32> -> vector<4x64xf32>
    %496 = vector.extract_strided_slice %1 {offsets = [0, 8], sizes = [8, 4], strides = [1, 1]} : vector<8x12xf32> to vector<8x4xf32>
    %497 = vector.extract_strided_slice %2 {offsets = [0, 12], sizes = [8, 1], strides = [1, 1]} : vector<8x13xf32> to vector<8x1xf32>
    %cst_185 = arith.constant dense<0.000000e+00> : vector<8x64xf32>
    %498 = tpu.matmul %496, %495, %cst_185 {dimension_numbers = #tpu.dot_dimension_numbers<[1], [0], [0], [1], [0, 0, 1, 1], [], []>} : vector<8x4xf32>, vector<4x64xf32>, vector<8x64xf32> -> vector<8x64xf32>
    %499 = vector.broadcast %497 : vector<8x1xf32> to vector<8x64xf32>
    %500 = arith.addf %498, %499 : vector<8x64xf32>
    %cst_186 = arith.constant 0.000000e+00 : f32
    %501 = vector.broadcast %cst_186 : f32 to vector<8x64xf32>
    %502 = arith.cmpf ogt, %500, %501 : vector<8x64xf32>
    %cst_187 = arith.constant 1.000000e-01 : f32
    %503 = vector.broadcast %cst_187 : f32 to vector<8x64xf32>
    %504 = arith.mulf %503, %500 : vector<8x64xf32>
    %505 = arith.select %502, %500, %504 : vector<8x64xi1>, vector<8x64xf32>
    %506 = vector.extract_strided_slice %1 {offsets = [0, 0], sizes = [4, 4], strides = [1, 1]} : vector<8x12xf32> to vector<4x4xf32>
    %507 = vector.extract_strided_slice %2 {offsets = [0, 10], sizes = [4, 1], strides = [1, 1]} : vector<8x13xf32> to vector<4x1xf32>
    %cst_188 = arith.constant dense<0.000000e+00> : vector<4x64xf32>
    %508 = tpu.matmul %506, %495, %cst_188 {dimension_numbers = #tpu.dot_dimension_numbers<[1], [0], [0], [1], [0, 0, 1, 1], [], []>} : vector<4x4xf32>, vector<4x64xf32>, vector<4x64xf32> -> vector<4x64xf32>
    %509 = vector.broadcast %507 : vector<4x1xf32> to vector<4x64xf32>
    %510 = arith.addf %508, %509 : vector<4x64xf32>
    %cst_189 = arith.constant 0.000000e+00 : f32
    %511 = vector.broadcast %cst_189 : f32 to vector<4x64xf32>
    %512 = arith.cmpf ogt, %510, %511 : vector<4x64xf32>
    %cst_190 = arith.constant 1.000000e-01 : f32
    %513 = vector.broadcast %cst_190 : f32 to vector<4x64xf32>
    %514 = arith.mulf %513, %510 : vector<4x64xf32>
    %515 = arith.select %512, %510, %514 : vector<4x64xi1>, vector<4x64xf32>
    %516 = vector.extract_strided_slice %0 {offsets = [0, 144], sizes = [4, 36], strides = [1, 1]} : vector<4x180xf32> to vector<4x36xf32>
    %517 = vector.extract_strided_slice %2 {offsets = [0, 8], sizes = [4, 1], strides = [1, 1]} : vector<8x13xf32> to vector<4x1xf32>
    %518 = vector.extract_strided_slice %2 {offsets = [0, 9], sizes = [4, 1], strides = [1, 1]} : vector<8x13xf32> to vector<4x1xf32>
    %c9_i32_191 = arith.constant 9 : i32
    %519 = tpu.dynamic_rotate %515 by %c9_i32_191 dim 1 : vector<4x64xf32>, i32 -> vector<4x64xf32>
    %520 = vector.extract_strided_slice %516 {offsets = [0, 0], sizes = [4, 4], strides = [1, 1]} : vector<4x36xf32> to vector<4x4xf32>
    %cst_192 = arith.constant dense<0.000000e+00> : vector<4x64xf32>
    %521 = tpu.matmul %520, %519, %cst_192 {dimension_numbers = #tpu.dot_dimension_numbers<[1], [0], [0], [1], [0, 0, 1, 1], [], []>} : vector<4x4xf32>, vector<4x64xf32>, vector<4x64xf32> -> vector<4x64xf32>
    %c8_i32_193 = arith.constant 8 : i32
    %522 = tpu.dynamic_rotate %515 by %c8_i32_193 dim 1 : vector<4x64xf32>, i32 -> vector<4x64xf32>
    %523 = vector.extract_strided_slice %516 {offsets = [0, 4], sizes = [4, 4], strides = [1, 1]} : vector<4x36xf32> to vector<4x4xf32>
    %cst_194 = arith.constant dense<0.000000e+00> : vector<4x64xf32>
    %524 = tpu.matmul %523, %522, %cst_194 {dimension_numbers = #tpu.dot_dimension_numbers<[1], [0], [0], [1], [0, 0, 1, 1], [], []>} : vector<4x4xf32>, vector<4x64xf32>, vector<4x64xf32> -> vector<4x64xf32>
    %525 = arith.addf %521, %524 : vector<4x64xf32>
    %c7_i32_195 = arith.constant 7 : i32
    %526 = tpu.dynamic_rotate %515 by %c7_i32_195 dim 1 : vector<4x64xf32>, i32 -> vector<4x64xf32>
    %527 = vector.extract_strided_slice %516 {offsets = [0, 8], sizes = [4, 4], strides = [1, 1]} : vector<4x36xf32> to vector<4x4xf32>
    %cst_196 = arith.constant dense<0.000000e+00> : vector<4x64xf32>
    %528 = tpu.matmul %527, %526, %cst_196 {dimension_numbers = #tpu.dot_dimension_numbers<[1], [0], [0], [1], [0, 0, 1, 1], [], []>} : vector<4x4xf32>, vector<4x64xf32>, vector<4x64xf32> -> vector<4x64xf32>
    %529 = arith.addf %525, %528 : vector<4x64xf32>
    %c1_i32_197 = arith.constant 1 : i32
    %530 = tpu.dynamic_rotate %515 by %c1_i32_197 dim 1 : vector<4x64xf32>, i32 -> vector<4x64xf32>
    %531 = vector.extract_strided_slice %516 {offsets = [0, 12], sizes = [4, 4], strides = [1, 1]} : vector<4x36xf32> to vector<4x4xf32>
    %cst_198 = arith.constant dense<0.000000e+00> : vector<4x64xf32>
    %532 = tpu.matmul %531, %530, %cst_198 {dimension_numbers = #tpu.dot_dimension_numbers<[1], [0], [0], [1], [0, 0, 1, 1], [], []>} : vector<4x4xf32>, vector<4x64xf32>, vector<4x64xf32> -> vector<4x64xf32>
    %533 = arith.addf %529, %532 : vector<4x64xf32>
    %534 = vector.extract_strided_slice %516 {offsets = [0, 16], sizes = [4, 4], strides = [1, 1]} : vector<4x36xf32> to vector<4x4xf32>
    %cst_199 = arith.constant dense<0.000000e+00> : vector<4x64xf32>
    %535 = tpu.matmul %534, %515, %cst_199 {dimension_numbers = #tpu.dot_dimension_numbers<[1], [0], [0], [1], [0, 0, 1, 1], [], []>} : vector<4x4xf32>, vector<4x64xf32>, vector<4x64xf32> -> vector<4x64xf32>
    %536 = arith.addf %533, %535 : vector<4x64xf32>
    %c63_i32_200 = arith.constant 63 : i32
    %537 = tpu.dynamic_rotate %515 by %c63_i32_200 dim 1 : vector<4x64xf32>, i32 -> vector<4x64xf32>
    %538 = vector.extract_strided_slice %516 {offsets = [0, 20], sizes = [4, 4], strides = [1, 1]} : vector<4x36xf32> to vector<4x4xf32>
    %cst_201 = arith.constant dense<0.000000e+00> : vector<4x64xf32>
    %539 = tpu.matmul %538, %537, %cst_201 {dimension_numbers = #tpu.dot_dimension_numbers<[1], [0], [0], [1], [0, 0, 1, 1], [], []>} : vector<4x4xf32>, vector<4x64xf32>, vector<4x64xf32> -> vector<4x64xf32>
    %540 = arith.addf %536, %539 : vector<4x64xf32>
    %c57_i32_202 = arith.constant 57 : i32
    %541 = tpu.dynamic_rotate %515 by %c57_i32_202 dim 1 : vector<4x64xf32>, i32 -> vector<4x64xf32>
    %542 = vector.extract_strided_slice %516 {offsets = [0, 24], sizes = [4, 4], strides = [1, 1]} : vector<4x36xf32> to vector<4x4xf32>
    %cst_203 = arith.constant dense<0.000000e+00> : vector<4x64xf32>
    %543 = tpu.matmul %542, %541, %cst_203 {dimension_numbers = #tpu.dot_dimension_numbers<[1], [0], [0], [1], [0, 0, 1, 1], [], []>} : vector<4x4xf32>, vector<4x64xf32>, vector<4x64xf32> -> vector<4x64xf32>
    %544 = arith.addf %540, %543 : vector<4x64xf32>
    %c56_i32_204 = arith.constant 56 : i32
    %545 = tpu.dynamic_rotate %515 by %c56_i32_204 dim 1 : vector<4x64xf32>, i32 -> vector<4x64xf32>
    %546 = vector.extract_strided_slice %516 {offsets = [0, 28], sizes = [4, 4], strides = [1, 1]} : vector<4x36xf32> to vector<4x4xf32>
    %cst_205 = arith.constant dense<0.000000e+00> : vector<4x64xf32>
    %547 = tpu.matmul %546, %545, %cst_205 {dimension_numbers = #tpu.dot_dimension_numbers<[1], [0], [0], [1], [0, 0, 1, 1], [], []>} : vector<4x4xf32>, vector<4x64xf32>, vector<4x64xf32> -> vector<4x64xf32>
    %548 = arith.addf %544, %547 : vector<4x64xf32>
    %c55_i32_206 = arith.constant 55 : i32
    %549 = tpu.dynamic_rotate %515 by %c55_i32_206 dim 1 : vector<4x64xf32>, i32 -> vector<4x64xf32>
    %550 = vector.extract_strided_slice %516 {offsets = [0, 32], sizes = [4, 4], strides = [1, 1]} : vector<4x36xf32> to vector<4x4xf32>
    %cst_207 = arith.constant dense<0.000000e+00> : vector<4x64xf32>
    %551 = tpu.matmul %550, %549, %cst_207 {dimension_numbers = #tpu.dot_dimension_numbers<[1], [0], [0], [1], [0, 0, 1, 1], [], []>} : vector<4x4xf32>, vector<4x64xf32>, vector<4x64xf32> -> vector<4x64xf32>
    %552 = arith.addf %548, %551 : vector<4x64xf32>
    %553 = vector.broadcast %518 : vector<4x1xf32> to vector<4x64xf32>
    %554 = arith.addf %552, %553 : vector<4x64xf32>
    %555 = vector.shape_cast %10 : vector<1x64xi1> to vector<1x64xi1>
    %556 = vector.broadcast %555 : vector<1x64xi1> to vector<4x64xi1>
    %557 = vector.shape_cast %517 : vector<4x1xf32> to vector<4x1xf32>
    %558 = vector.broadcast %557 : vector<4x1xf32> to vector<4x64xf32>
    %559 = arith.select %556, %558, %554 : vector<4x64xi1>, vector<4x64xf32>
    %cst_208 = arith.constant 0.000000e+00 : f32
    %560 = vector.broadcast %cst_208 : f32 to vector<4x64xf32>
    %561 = arith.cmpf ogt, %559, %560 : vector<4x64xf32>
    %cst_209 = arith.constant 1.000000e-01 : f32
    %562 = vector.broadcast %cst_209 : f32 to vector<4x64xf32>
    %563 = arith.mulf %562, %559 : vector<4x64xf32>
    %564 = arith.select %561, %559, %563 : vector<4x64xi1>, vector<4x64xf32>
    %565 = vector.extract_strided_slice %1 {offsets = [0, 4], sizes = [8, 4], strides = [1, 1]} : vector<8x12xf32> to vector<8x4xf32>
    %566 = vector.extract_strided_slice %2 {offsets = [0, 11], sizes = [8, 1], strides = [1, 1]} : vector<8x13xf32> to vector<8x1xf32>
    %cst_210 = arith.constant dense<0.000000e+00> : vector<8x64xf32>
    %567 = tpu.matmul %565, %564, %cst_210 {dimension_numbers = #tpu.dot_dimension_numbers<[1], [0], [0], [1], [0, 0, 1, 1], [], []>} : vector<8x4xf32>, vector<4x64xf32>, vector<8x64xf32> -> vector<8x64xf32>
    %568 = vector.broadcast %566 : vector<8x1xf32> to vector<8x64xf32>
    %569 = arith.addf %567, %568 : vector<8x64xf32>
    %cst_211 = arith.constant 0.000000e+00 : f32
    %570 = vector.broadcast %cst_211 : f32 to vector<8x64xf32>
    %571 = arith.cmpf ogt, %569, %570 : vector<8x64xf32>
    %cst_212 = arith.constant 1.000000e-01 : f32
    %572 = vector.broadcast %cst_212 : f32 to vector<8x64xf32>
    %573 = arith.mulf %572, %569 : vector<8x64xf32>
    %574 = arith.select %571, %569, %573 : vector<8x64xi1>, vector<8x64xf32>
    %575 = arith.addf %574, %505 : vector<8x64xf32>
    %c1_213 = arith.constant 1 : index
    %c0_214 = arith.constant 0 : index
    %c0_215 = arith.constant 0 : index
    %576 = vector.load %arg7[%c1_213, %c0_214, %c0_215] : memref<2x8x64xf32, #tpu.memory_space<vmem>>, vector<1x8x64xf32>
    %577 = vector.shape_cast %576 : vector<1x8x64xf32> to vector<8x64xf32>
    %578 = vector.shape_cast %575 : vector<8x64xf32> to vector<1x8x64xf32>
    tpu.vector_store %arg7[%c1_213, %c0_214, %c0_215], %578 {strides = array<i32>} : memref<2x8x64xf32, #tpu.memory_space<vmem>>, vector<1x8x64xf32>,
    return
  }
  func.func @transform_0(%arg0: i32) -> (i32, i32, i32) {
    %c0_i32 = arith.constant 0 : i32
    %c0_i32_0 = arith.constant 0 : i32
    %c0_i32_1 = arith.constant 0 : i32
    return %arg0, %c0_i32, %c0_i32_0 : i32, i32, i32
  }
  func.func @transform_1(%arg0: i32) -> (i32, i32) {
    %c0_i32 = arith.constant 0 : i32
    %c0_i32_0 = arith.constant 0 : i32
    %c0_i32_1 = arith.constant 0 : i32
    return %c0_i32, %c0_i32_0 : i32, i32
  }
  func.func @transform_2(%arg0: i32) -> (i32, i32) {
    %c0_i32 = arith.constant 0 : i32
    %c0_i32_0 = arith.constant 0 : i32
    %c0_i32_1 = arith.constant 0 : i32
    return %c0_i32, %c0_i32_0 : i32, i32
  }
  func.func @transform_3(%arg0: i32) -> (i32, i32) {
    %c0_i32 = arith.constant 0 : i32
    %c0_i32_0 = arith.constant 0 : i32
    %c0_i32_1 = arith.constant 0 : i32
    return %c0_i32, %c0_i32_0 : i32, i32
  }
  func.func @transform_4(%arg0: i32) -> (i32, i32) {
    %c0_i32 = arith.constant 0 : i32
    %c0_i32_0 = arith.constant 0 : i32
    %c0_i32_1 = arith.constant 0 : i32
    return %c0_i32, %c0_i32_0 : i32, i32
  }
  func.func @transform_5(%arg0: i32) -> (i32, i32) {
    %c0_i32 = arith.constant 0 : i32
    %c0_i32_0 = arith.constant 0 : i32
    %c0_i32_1 = arith.constant 0 : i32
    return %c0_i32, %c0_i32_0 : i32, i32
  }
  func.func @transform_6(%arg0: i32) -> (i32, i32, i32) {
    %c0_i32 = arith.constant 0 : i32
    %c0_i32_0 = arith.constant 0 : i32
    %c0_i32_1 = arith.constant 0 : i32
    return %arg0, %c0_i32, %c0_i32_0 : i32, i32, i32
  }
}

</mosaic_0001>

<bundles_post_ra>
// kernel: res_block.1
= control target key start
LH: loop header
LB: loop body
LE: loop exit
PB: predicated region body
PF: predicated region fallthrough
CT: control target
= control target key end

     0   :  { %v10775_v1 = vmov 0.0   ;;  %s9054_s23 = smov 17   ;;  %s9055_s24 = smov 16   ;;  %v68_v4 = vlaneseq  ;;  %v9065_v7 = vmov 1   ;;  %v9066_v8 = vmov 0   ;;  %s10760_s0 = inlined_call_operand.vmem [shape: f32[2,4,256], index: 0, kind: input, shape index: {}]   ;;  %s10761_s1 = inlined_call_operand.vmem [shape: f32[4,180], index: 1, kind: input, shape index: {}]   ;;  %s10762_s4 = inlined_call_operand.vmem [shape: f32[2,256], index: 4, kind: input, shape index: {}]   ;;  %s10763_s3 = inlined_call_operand.vmem [shape: f32[8,13], index: 3, kind: input, shape index: {}]   ;;  %s10764_s5 = inlined_call_operand.vmem [shape: f32[256,64], index: 5, kind: input, shape index: {}]   ;;  %s10765_s2 = inlined_call_operand.vmem [shape: f32[8,12], index: 2, kind: input, shape index: {}]   ;;  %s10766_s6 = inlined_call_operand.vmem [shape: f32[2,8,64], index: 6, kind: output, shape index: {}]  }
   0x1   :  { %v9148_v0 = vld [vmem:[%s10760_s0] sm:$0xff]  ;;  %157 = vmatprep.mubr.f32.mxu0 %v10775_v1  ;;  %236 = vmatprep.mubr.f32.mxu1 %v10775_v1  ;;  %s9056_s27 = smov 15   ;;  %s9057_s28 = smov 124   ;;  %vm86_vm3 = vcmask 1043456   ;;  %vm83_vm4 = vcmask 31744  }
   0x2   :  { %64 = vrot.lane.b32.xlu1 %v9148_v0, %s9054_s23  ;;  %73 = vrot.lane.b32.xlu0 %v9148_v0, %s9055_s24  ;;  %v9158_v2 = vcombine.high %v9148_v0, %v9148_v0  ;;  %v9167_v3 = vld [vmem:[%s10761_s1] sm:$0xff]  ;;  %s9058_s29 = smov 1   ;;  %s9059_s30 = smov 120   ;;  %v873_v5 = vshrl.u32 %v68_v4, 7  ;;  %v9231_v19 = vand.u32 127, %v68_v4 }
   0x3   :  { %s9060_s7 = smov 127   ;;  %s9061_s8 = smov 116   ;;  %v26_v6 = vld [vmem:[%s10762_s4] sm:$0xf]  ;;  %9001 = vset.pattern.permute.xlu0 %v9065_v7  ;;  %9002 = vset.pattern.permute.xlu1 %v9066_v8 }
   0x4   :  { %s9062_s9 = smov 112   ;;  %s10771_s10 = smov 113   ;;  %vm59_vm0 = vcmp.gt.f32.partialorder %v26_v6, 0.5  ;;  %v9200_v9 = vsub.s32 0, %v873_v5  ;;  %v878_v10 = vsub.s32 2, %v873_v5  ;;  %v4289_v11 = vsub.s32 1, %v873_v5 }
   0x5   :  { %s9064_s11 = smov 108   ;;  %v871_v12 = vsel %vm59_vm0, 1, %v9066_v8  ;;  %s9067_s14 = smov 104   ;;  %v9227_v18 = vld [vmem:[%s10763_s3] sm:$0xff]  ;;  %vm77_vm1 = vcmp.lt.s32.totalorder %v9231_v19, 16  ;;  %vm70_vm2 = vcmp.lt.s32.totalorder %v9231_v19, 17 }
   0x6   :  { %66 = vrot.lane.b32.xlu1 %v9158_v2, %s9054_s23  ;;  %75 = vrot.lane.b32.xlu0 %v9158_v2, %s9055_s24  ;;  %v875_v13 = vrot.slane %v871_v12, %v9200_v9  ;;  %v9203_v14 = vrot.slane %v871_v12, %v878_v10  ;;  %v9205_v15 = vrot.slane %v871_v12, %v4289_v11  ;;  %s10769_s4 = smov 111   ;;  %s9069_s15 = smov 96   ;;  %vm247_vm5 = vcmp.lt.s32.totalorder %v9231_v19, 15 }
   0x7   :  { %s9070_s16 = smov 100   ;;  %vm337_vm6 = vcmp.lt.s32.totalorder %v9231_v19, 1  ;;  %vm508_vm7 = vcmp.lt.s32.totalorder %v9231_v19, 127  ;;  %vm598_vm8 = vcmp.lt.s32.totalorder %v9231_v19, 113  ;;  %vm688_vm9 = vcmp.lt.s32.totalorder %v9231_v19, 112  ;;  %s9071_s19 = smov 88  }
   0x8   :  { %v9212_v16 = vrot.slane %v875_v13, %v9200_v9  ;;  %v887_v17 = vrot.slane %v9203_v14, %v9200_v9  ;;  %vm778_vm10 = vcmp.lt.s32.totalorder %v9231_v19, 111  ;;  %s9072_s20 = smov 92   ;;  %s10768_s21 = smov 84   ;;  %v9078_v14 = vmov 3  }
   0x9   :  { %s10767_s22 = smov 80   ;;  %s9075_s25 = smov 76  }
   0xa   :  { %243 = vrot.lane.b32.xlu1 %v9148_v0, %s9056_s27  ;;  %81 = vrot.lane.b32.xlu0 %v9167_v3, %s9057_s28  ;;  %s9076_s26 = smov 72   ;;  %vm888_vm11 = vcmp.eq.s32.totalorder %v9212_v16, 1  ;;  %vm9360_vm12 = vcmp.eq.s32.totalorder %v887_v17, 1  ;;  %s9077_s12 = smov 68   ;;  %v9079_v17 = vmov 2  }
   0xb   :  { %s9080_s13 = smov 64   ;;  %s9081_s17 = smov 60  }
   0xc   :  { %s9082_s18 = smov 56  }
   0xe   :  { %333 = vrot.lane.b32.xlu1 %v9148_v0, %s9058_s29  ;;  %245 = vrot.lane.b32.xlu0 %v9158_v2, %s9056_s27 }
  0x12   :  { %250 = vrot.lane.b32.xlu1 %v9167_v3, %s9059_s30  ;;  %335 = vrot.lane.b32.xlu0 %v9158_v2, %s9058_s29 }
  0x16   :  { %504 = vrot.lane.b32.xlu1 %v9148_v0, %s9060_s7  ;;  %340 = vrot.lane.b32.xlu0 %v9167_v3, %s9061_s8 }
  0x1a   :  { %423 = vrot.lane.b32.xlu1 %v9167_v3, %s9062_s9  ;;  %506 = vrot.lane.b32.xlu0 %v9158_v2, %s9060_s7 }
  0x1e   :  { %596 = vrot.lane.b32.xlu1 %v9158_v2, %s10771_s10  ;;  %594 = vrot.lane.b32.xlu0 %v9148_v0, %s10771_s10 }
  0x22   :  { %684 = vrot.lane.b32.xlu1 %v9148_v0, %s9062_s9  ;;  %511 = vrot.lane.b32.xlu0 %v9167_v3, %s9064_s11 }
  0x26   :  { %601 = vrot.lane.b32.xlu1 %v9167_v3, %s9067_s14  ;;  %686 = vrot.lane.b32.xlu0 %v9158_v2, %s9062_s9 }
  0x2a   :  { %776 = vrot.lane.b32.xlu1 %v9158_v2, %s10769_s4  ;;  %774 = vrot.lane.b32.xlu0 %v9148_v0, %s10769_s4 }
  0x2e   :  { %781 = vrot.lane.b32.xlu1 %v9167_v3, %s9069_s15  ;;  %691 = vrot.lane.b32.xlu0 %v9167_v3, %s9070_s16 }
  0x32   :  { %866 = vperm.xlu0 %9001, %v9227_v18   ;;  %891 = vperm.xlu1 %9002, %v9227_v18  }
  0x36   :  { %914 = vrot.lane.b32.xlu1 %v9167_v3, %s9071_s19  ;;  %995 = vrot.lane.b32.xlu0 %v9167_v3, %s9072_s20 }
  0x37   :  { %9003 = vset.pattern.permute.xlu0 %v9078_v14  ;;  %9004 = vset.pattern.permute.xlu1 %v9079_v17 }
  0x3a   :  { %1082 = vrot.lane.b32.xlu1 %v9167_v3, %s10768_s21  ;;  %1171 = vrot.lane.b32.xlu0 %v9167_v3, %s10767_s22  ;;  %s9086_s22 = smov 36   ;;  %s9087_s21 = smov 40  }
  0x3e   :  { %1254 = vrot.lane.b32.xlu1 %v9167_v3, %s9075_s25  ;;  %1343 = vrot.lane.b32.xlu0 %v9167_v3, %s9076_s26  ;;  %s9083_s25 = smov 52  }
  0x74   :  { %v65_v20 = vpop.permute.xlu1 %64  ;;  %v74_v21 = vpop.permute.xlu0 %73 }
  0x78   :  { %v67_v22 = vpop.permute.xlu1 %66  ;;  %v76_v23 = vpop.permute.xlu0 %75 }
  0x79   :  { %v78_v24 = vsel %vm77_vm1, %v74_v21, %v76_v23  ;;  %v71_v25 = vsel %vm70_vm2, %v65_v20, %v67_v22  ;;  %v79_v26 = vsel %vm77_vm1, %v76_v23, %v74_v21  ;;  %v72_v27 = vsel %vm70_vm2, %v67_v22, %v65_v20 }
  0x7a   :  { %8440 = vmatprep.subr.msk.mxu0 %vm86_vm3, %v78_v24  ;;  %8443 = vmatprep.subr.msk.mxu1 %vm86_vm3, %v71_v25 }
  0x7b   :  { %8441 = vmatpush1.msk.msra.mxu0 %vm86_vm3, %v79_v26  ;;  %8444 = vmatpush1.msk.msra.mxu1 %vm86_vm3, %v72_v27 }
  0x7c   :  { %v244_v28 = vpop.permute.xlu1 %243  ;;  %v9247_v29 = vpop.permute.xlu0 %81  ;;  %8445 = vmatmul.mubr.msk.f32.vlgmr.msra.gmra.mxu1 %vm83_vm4, %v9167_v3 }
  0x7d   :  { %8442 = vmatmul.mubr.msk.f32.vlgmr.msra.gmra.mxu0 %vm83_vm4, %v9247_v29  ;;  %414 = vmatprep.mubr.f32.mxu1 %v10775_v1 }
  0x7e   :  { %324 = vmatprep.mubr.f32.mxu0 %v10775_v1 }
  0x80   :  { %v334_v30 = vpop.permute.xlu1 %333  ;;  %v246_v31 = vpop.permute.xlu0 %245 }
  0x81   :  { %v249_v32 = vsel %vm247_vm5, %v246_v31, %v244_v28  ;;  %v248_v33 = vsel %vm247_vm5, %v244_v28, %v246_v31 }
  0x82   :  { %8446 = vmatprep.subr.msk.mxu0 %vm86_vm3, %v248_v33 }
  0x83   :  { %8447 = vmatpush1.msk.msra.mxu0 %vm86_vm3, %v249_v32 }
  0x84   :  { %v9263_v34 = vpop.permute.xlu1 %250  ;;  %v336_v35 = vpop.permute.xlu0 %335  ;;  %8452 = vmatprep.subr.msk.mxu0 %vm86_vm3, %v9158_v2 }
  0x85   :  { %v339_v36 = vsel %vm337_vm6, %v336_v35, %v334_v30  ;;  %8448 = vmatmul.mubr.msk.f32.vlgmr.msra.gmra.mxu0 %vm83_vm4, %v9263_v34  ;;  %v338_v37 = vsel %vm337_vm6, %v334_v30, %v336_v35 }
  0x86   :  { %8449 = vmatprep.subr.msk.mxu1 %vm86_vm3, %v338_v37  ;;  %8453 = vmatpush1.msk.msra.mxu0 %vm86_vm3, %v9148_v0 }
  0x87   :  { %8450 = vmatpush1.msk.msra.mxu1 %vm86_vm3, %v339_v36  ;;  %495 = vmatprep.mubr.f32.mxu0 %v10775_v1 }
  0x88   :  { %v505_v38 = vpop.permute.xlu1 %504  ;;  %v9278_v39 = vpop.permute.xlu0 %340 }
  0x89   :  { %8451 = vmatmul.mubr.msk.f32.vlgmr.msra.gmra.mxu1 %vm83_vm4, %v9278_v39 }
  0x8a   :  { %585 = vmatprep.mubr.f32.mxu1 %v10775_v1 }
  0x8c   :  { %v9284_v40 = vpop.permute.xlu1 %423  ;;  %v507_v41 = vpop.permute.xlu0 %506 }
  0x8d   :  { %v509_v42 = vsel %vm508_vm7, %v505_v38, %v507_v41  ;;  %8454 = vmatmul.mubr.msk.f32.vlgmr.msra.gmra.mxu0 %vm83_vm4, %v9284_v40  ;;  %v510_v43 = vsel %vm508_vm7, %v507_v41, %v505_v38 }
  0x8e   :  { %8455 = vmatprep.subr.msk.mxu1 %vm86_vm3, %v510_v43  ;;  %675 = vmatprep.mubr.f32.mxu0 %v10775_v1 }
  0x8f   :  { %8456 = vmatpush1.msk.msra.mxu1 %vm86_vm3, %v509_v42 }
  0x90   :  { %v597_v44 = vpop.permute.xlu1 %596  ;;  %v595_v45 = vpop.permute.xlu0 %594 }
  0x91   :  { %v599_v46 = vsel %vm598_vm8, %v595_v45, %v597_v44  ;;  %v600_v47 = vsel %vm598_vm8, %v597_v44, %v595_v45 }
  0x92   :  { %8458 = vmatprep.subr.msk.mxu0 %vm86_vm3, %v600_v47 }
  0x93   :  { %8459 = vmatpush1.msk.msra.mxu0 %vm86_vm3, %v599_v46 }
  0x94   :  { %v685_v48 = vpop.permute.xlu1 %684  ;;  %v9302_v49 = vpop.permute.xlu0 %511 }
  0x95   :  { %8457 = vmatmul.mubr.msk.f32.vlgmr.msra.gmra.mxu1 %vm83_vm4, %v9302_v49 }
  0x96   :  { %765 = vmatprep.mubr.f32.mxu1 %v10775_v1 }
  0x98   :  { %v9308_v50 = vpop.permute.xlu1 %601  ;;  %v687_v51 = vpop.permute.xlu0 %686 }
  0x99   :  { %v689_v52 = vsel %vm688_vm9, %v685_v48, %v687_v51  ;;  %8460 = vmatmul.mubr.msk.f32.vlgmr.msra.gmra.mxu0 %vm83_vm4, %v9308_v50  ;;  %v690_v53 = vsel %vm688_vm9, %v687_v51, %v685_v48 }
  0x9a   :  { %8461 = vmatprep.subr.msk.mxu1 %vm86_vm3, %v690_v53  ;;  %855 = vmatprep.mubr.f32.mxu0 %v10775_v1 }
  0x9b   :  { %8462 = vmatpush1.msk.msra.mxu1 %vm86_vm3, %v689_v52 }
  0x9c   :  { %v777_v54 = vpop.permute.xlu1 %776  ;;  %v775_v55 = vpop.permute.xlu0 %774 }
  0x9d   :  { %v779_v56 = vsel %vm778_vm10, %v775_v55, %v777_v54  ;;  %v780_v57 = vsel %vm778_vm10, %v777_v54, %v775_v55 }
  0x9e   :  { %8464 = vmatprep.subr.msk.mxu0 %vm86_vm3, %v780_v57 }
  0x9f   :  { %8465 = vmatpush1.msk.msra.mxu0 %vm86_vm3, %v779_v56 }
  0xa0   :  { %v9326_v58 = vpop.permute.xlu1 %781  ;;  %v9328_v59 = vpop.permute.xlu0 %691 }
  0xa1   :  { %8463 = vmatmul.mubr.msk.f32.vlgmr.msra.gmra.mxu1 %vm83_vm4, %v9328_v59  ;;  %8466 = vmatmul.mubr.msk.f32.vlgmr.msra.gmra.mxu0 %vm83_vm4, %v9326_v58 }
  0xa2   :  { %988 = vmatprep.mubr.f32.mxu1 %v10775_v1  ;;  %1069 = vmatprep.mubr.f32.mxu0 %v10775_v1 }
  0xad   :  { %v9347_v41 = vpop.permute.xlu0 %866  ;;  %v9350_v45 = vpop.permute.xlu1 %891 }
  0xb1   :  { %v9409_v57 = vpop.permute.xlu1 %914 }
 0x13c   :  { %v238_v61 = vpop.f32.mrf.mxu1 }
 0x13d   :  { %v159_v60 = vpop.f32.mrf.mxu0 }
 0x13e   :  { %v240_v4 = vpop.f32.mrf.mxu1  ;;  %v239_v8 = vadd.f32 %v238_v61, %v159_v60  ;;  %v9411_v60 = vpop.permute.xlu0 %995 }
 0x13f   :  { %v161_v62 = vpop.f32.mrf.mxu0  ;;  %v9413_v61 = vpop.permute.xlu1 %1082 }
 0x140   :  { %v241_v11 = vadd.f32 %v240_v4, %v161_v62 }
 0x142   :  { %v9415_v62 = vpop.permute.xlu0 %1171 }
 0x145   :  { %v326_v63 = vpop.f32.mrf.mxu0 }
 0x146   :  { %v331_v12 = vadd.f32 %v326_v63, %v239_v8  ;;  %v9417_v63 = vpop.permute.xlu1 %1254  ;;  %v9419_v4 = vpop.permute.xlu0 %1343 }
 0x147   :  { %v328_v5 = vpop.f32.mrf.mxu0 }
 0x148   :  { %v332_v21 = vadd.f32 %v328_v5, %v241_v11 }
 0x149   :  { %v416_v6 = vpop.f32.mrf.mxu1 }
 0x14a   :  { %v421_v22 = vadd.f32 %v416_v6, %v331_v12 }
 0x14b   :  { %v418_v10 = vpop.f32.mrf.mxu1 }
 0x14c   :  { %v422_v24 = vadd.f32 %v418_v10, %v332_v21 }
 0x14d   :  { %v497_v7 = vpop.f32.mrf.mxu0 }
 0x14e   :  { %v502_v25 = vadd.f32 %v497_v7, %v421_v22 }
 0x14f   :  { %v499_v13 = vpop.f32.mrf.mxu0 }
 0x150   :  { %v503_v27 = vadd.f32 %v499_v13, %v422_v24 }
 0x155   :  { %v587_v20 = vpop.f32.mrf.mxu1 }
 0x156   :  { %v592_v28 = vadd.f32 %v587_v20, %v502_v25 }
 0x157   :  { %v589_v26 = vpop.f32.mrf.mxu1 }
 0x158   :  { %v593_v31 = vadd.f32 %v589_v26, %v503_v27 }
 0x159   :  { %v677_v23 = vpop.f32.mrf.mxu0 }
 0x15a   :  { %v682_v32 = vadd.f32 %v677_v23, %v592_v28 }
 0x15b   :  { %v679_v30 = vpop.f32.mrf.mxu0 }
 0x15c   :  { %v683_v36 = vadd.f32 %v679_v30, %v593_v31 }
 0x161   :  { %v767_v33 = vpop.f32.mrf.mxu1  ;;  %v857_v35 = vpop.f32.mrf.mxu0 }
 0x162   :  { %v772_v37 = vadd.f32 %v767_v33, %v682_v32 }
 0x163   :  { %v769_v38 = vpop.f32.mrf.mxu1  ;;  %v859_v44 = vpop.f32.mrf.mxu0 }
 0x164   :  { %v862_v42 = vadd.f32 %v857_v35, %v772_v37  ;;  %v773_v43 = vadd.f32 %v769_v38, %v683_v36 }
 0x166   :  { %v863_v46 = vadd.f32 %v859_v44, %v773_v43  ;;  %v869_v47 = vadd.f32 %v9347_v41, %v862_v42 }
 0x168   :  { %v870_v48 = vadd.f32 %v9347_v41, %v863_v46  ;;  %v894_v51 = vsel %vm888_vm11, %v9350_v45, %v869_v47 }
 0x169   :  { %vm896_vm13 = vcmp.gt.f32.partialorder %v894_v51, 0.0  ;;  %v898_v53 = vmul.f32 0.1, %v894_v51 }
 0x16a   :  { %v895_v55 = vsel %vm9360_vm12, %v9350_v45, %v870_v48 }
 0x16b   :  { %v9364_v54 = vsel %vm896_vm13, %v894_v51, %v898_v53  ;;  %v899_v56 = vmul.f32 0.1, %v895_v55  ;;  %vm897_vm14 = vcmp.gt.f32.partialorder %v895_v55, 0.0 }
 0x16c   :  { %1076 = vrot.lane.b32.xlu0 %v9364_v54, %s9056_s27  ;;  %908 = vrot.lane.b32.xlu1 %v9364_v54, %s9055_s24 }
 0x16d   :  { %v9377_v9 = vsel %vm897_vm14, %v895_v55, %v899_v56 }
 0x170   :  { %1426 = vrot.lane.b32.xlu0 %v9364_v54, %s10771_s10  ;;  %902 = vrot.lane.b32.xlu1 %v9364_v54, %s9054_s23 }
 0x174   :  { %910 = vrot.lane.b32.xlu0 %v9377_v9, %s9055_s24  ;;  %1165 = vrot.lane.b32.xlu1 %v9364_v54, %s9058_s29 }
 0x178   :  { %904 = vrot.lane.b32.xlu0 %v9377_v9, %s9054_s23  ;;  %1337 = vrot.lane.b32.xlu1 %v9364_v54, %s9060_s7 }
 0x17c   :  { %1604 = vrot.lane.b32.xlu0 %v9364_v54, %s10769_s4  ;;  %1515 = vrot.lane.b32.xlu1 %v9364_v54, %s9062_s9 }
 0x180   :  { %1167 = vrot.lane.b32.xlu0 %v9377_v9, %s9058_s29  ;;  %1078 = vrot.lane.b32.xlu1 %v9377_v9, %s9056_s27 }
 0x184   :  { %1339 = vrot.lane.b32.xlu0 %v9377_v9, %s9060_s7  ;;  %1432 = vrot.lane.b32.xlu1 %v9167_v3, %s9077_s12  ;;  %s9084_s12 = smov 44  }
 0x188   :  { %1517 = vrot.lane.b32.xlu0 %v9377_v9, %s9062_s9  ;;  %1428 = vrot.lane.b32.xlu1 %v9377_v9, %s10771_s10 }
 0x18c   :  { %1521 = vrot.lane.b32.xlu0 %v9167_v3, %s9080_s13  ;;  %1606 = vrot.lane.b32.xlu1 %v9377_v9, %s10769_s4 }
 0x190   :  { %1610 = vrot.lane.b32.xlu1 %v9167_v3, %s9081_s17  ;;  %1694 = vperm.xlu0 %9003, %v9227_v18   ;;  %s9085_s17 = smov 48  }
 0x194   :  { %1700 = vperm.xlu1 %9004, %v9227_v18   ;;  %1806 = vrot.lane.b32.xlu0 %v9167_v3, %s9082_s18  ;;  %s9092_s18 = smov 24  }
 0x198   :  { %1725 = vrot.lane.b32.xlu1 %v9167_v3, %s9083_s25  ;;  %1982 = vrot.lane.b32.xlu0 %v9167_v3, %s9084_s12  ;;  %s9093_s25 = smov 20   ;;  %s9094_s12 = smov 12  }
 0x19c   :  { %1893 = vrot.lane.b32.xlu1 %v9167_v3, %s9085_s17  ;;  %2154 = vrot.lane.b32.xlu0 %v9167_v3, %s9086_s22  ;;  %s9091_s22 = smov 28   ;;  %s9095_s17 = smov 8  }
 0x1a0   :  { %2065 = vrot.lane.b32.xlu1 %v9167_v3, %s9087_s21  ;;  %s9088_s21 = smov 32  }
 0x1de   :  { %v909_v5 = vpop.permute.xlu1 %908  ;;  %v1077_v6 = vpop.permute.xlu0 %1076 }
 0x1e2   :  { %v903_v7 = vpop.permute.xlu1 %902  ;;  %v1427_v8 = vpop.permute.xlu0 %1426 }
 0x1e6   :  { %v1166_v10 = vpop.permute.xlu1 %1165  ;;  %v911_v11 = vpop.permute.xlu0 %910 }
 0x1e7   :  { %v913_v12 = vsel %vm77_vm1, %v911_v11, %v909_v5  ;;  %v912_v13 = vsel %vm77_vm1, %v909_v5, %v911_v11 }
 0x1e8   :  { %8467 = vmatprep.subr.msk.mxu1 %vm86_vm3, %v912_v13 }
 0x1e9   :  { %8468 = vmatpush1.msk.msra.mxu1 %vm86_vm3, %v913_v12 }
 0x1ea   :  { %v1338_v20 = vpop.permute.xlu1 %1337  ;;  %8469 = vmatmul.mubr.msk.f32.vlgmr.msra.gmra.mxu1 %vm83_vm4, %v9409_v57  ;;  %v905_v21 = vpop.permute.xlu0 %904 }
 0x1eb   :  { %v907_v22 = vsel %vm70_vm2, %v905_v21, %v903_v7  ;;  %v906_v23 = vsel %vm70_vm2, %v903_v7, %v905_v21  ;;  %1156 = vmatprep.mubr.f32.mxu1 %v10775_v1 }
 0x1ec   :  { %8470 = vmatprep.subr.msk.mxu0 %vm86_vm3, %v906_v23 }
 0x1ed   :  { %8471 = vmatpush1.msk.msra.mxu0 %vm86_vm3, %v907_v22 }
 0x1ee   :  { %v1516_v24 = vpop.permute.xlu1 %1515  ;;  %8472 = vmatmul.mubr.msk.f32.vlgmr.msra.gmra.mxu0 %vm83_vm4, %v9411_v60  ;;  %v1605_v25 = vpop.permute.xlu0 %1604 }
 0x1ef   :  { %1245 = vmatprep.mubr.f32.mxu0 %v10775_v1 }
 0x1f2   :  { %v1079_v26 = vpop.permute.xlu1 %1078  ;;  %v1168_v27 = vpop.permute.xlu0 %1167 }
 0x1f3   :  { %v1081_v28 = vsel %vm247_vm5, %v1079_v26, %v1077_v6  ;;  %v1170_v30 = vsel %vm337_vm6, %v1168_v27, %v1166_v10  ;;  %v1080_v31 = vsel %vm247_vm5, %v1077_v6, %v1079_v26  ;;  %v1169_v32 = vsel %vm337_vm6, %v1166_v10, %v1168_v27 }
 0x1f4   :  { %8473 = vmatprep.subr.msk.mxu1 %vm86_vm3, %v1080_v31  ;;  %8476 = vmatprep.subr.msk.mxu0 %vm86_vm3, %v1169_v32 }
 0x1f5   :  { %8474 = vmatpush1.msk.msra.mxu1 %vm86_vm3, %v1081_v28  ;;  %8477 = vmatpush1.msk.msra.mxu0 %vm86_vm3, %v1170_v30 }
 0x1f6   :  { %v9451_v33 = vpop.permute.xlu1 %1432  ;;  %8475 = vmatmul.mubr.msk.f32.vlgmr.msra.gmra.mxu1 %vm83_vm4, %v9413_v61  ;;  %8478 = vmatmul.mubr.msk.f32.vlgmr.msra.gmra.mxu0 %vm83_vm4, %v9415_v62  ;;  %v1340_v35 = vpop.permute.xlu0 %1339 }
 0x1f7   :  { %8479 = vmatprep.subr.msk.mxu1 %vm86_vm3, %v9377_v9  ;;  %v1341_v36 = vsel %vm508_vm7, %v1338_v20, %v1340_v35  ;;  %v1342_v37 = vsel %vm508_vm7, %v1340_v35, %v1338_v20  ;;  %1328 = vmatprep.mubr.f32.mxu1 %v10775_v1 }
 0x1f8   :  { %8480 = vmatpush1.msk.msra.mxu1 %vm86_vm3, %v9364_v54  ;;  %8482 = vmatprep.subr.msk.mxu0 %vm86_vm3, %v1342_v37 }
 0x1f9   :  { %8483 = vmatpush1.msk.msra.mxu0 %vm86_vm3, %v1341_v36  ;;  %1417 = vmatprep.mubr.f32.mxu0 %v10775_v1 }
 0x1fa   :  { %v1429_v38 = vpop.permute.xlu1 %1428  ;;  %8481 = vmatmul.mubr.msk.f32.vlgmr.msra.gmra.mxu1 %vm83_vm4, %v9417_v63  ;;  %8484 = vmatmul.mubr.msk.f32.vlgmr.msra.gmra.mxu0 %vm83_vm4, %v9419_v4  ;;  %v1518_v42 = vpop.permute.xlu0 %1517 }
 0x1fb   :  { %v1430_v43 = vsel %vm598_vm8, %v1427_v8, %v1429_v38  ;;  %v1519_v44 = vsel %vm688_vm9, %v1516_v24, %v1518_v42  ;;  %v1431_v46 = vsel %vm598_vm8, %v1429_v38, %v1427_v8  ;;  %v1520_v47 = vsel %vm688_vm9, %v1518_v42, %v1516_v24  ;;  %1506 = vmatprep.mubr.f32.mxu1 %v10775_v1 }
 0x1fc   :  { %8485 = vmatprep.subr.msk.mxu1 %vm86_vm3, %v1431_v46  ;;  %8488 = vmatprep.subr.msk.mxu0 %vm86_vm3, %v1520_v47 }
 0x1fd   :  { %8486 = vmatpush1.msk.msra.mxu1 %vm86_vm3, %v1430_v43  ;;  %8489 = vmatpush1.msk.msra.mxu0 %vm86_vm3, %v1519_v44 }
 0x1fe   :  { %v1607_v48 = vpop.permute.xlu1 %1606  ;;  %8487 = vmatmul.mubr.msk.f32.vlgmr.msra.gmra.mxu1 %vm83_vm4, %v9451_v33  ;;  %1595 = vmatprep.mubr.f32.mxu0 %v10775_v1  ;;  %v9489_v51 = vpop.permute.xlu0 %1521 }
 0x1ff   :  { %v1608_v53 = vsel %vm778_vm10, %v1605_v25, %v1607_v48  ;;  %8490 = vmatmul.mubr.msk.f32.vlgmr.msra.gmra.mxu0 %vm83_vm4, %v9489_v51  ;;  %v1609_v54 = vsel %vm778_vm10, %v1607_v48, %v1605_v25  ;;  %1684 = vmatprep.mubr.f32.mxu1 %v10775_v1 }
 0x200   :  { %8491 = vmatprep.subr.msk.mxu1 %vm86_vm3, %v1609_v54  ;;  %1799 = vmatprep.mubr.f32.mxu0 %v10775_v1 }
 0x201   :  { %8492 = vmatpush1.msk.msra.mxu1 %vm86_vm3, %v1608_v53 }
 0x202   :  { %v9501_v55 = vpop.permute.xlu1 %1610 }
 0x203   :  { %8493 = vmatmul.mubr.msk.f32.vlgmr.msra.gmra.mxu1 %vm83_vm4, %v9501_v55 }
 0x204   :  { %1880 = vmatprep.mubr.f32.mxu1 %v10775_v1 }
 0x20b   :  { %v9512_v46 = vpop.permute.xlu0 %1694 }
 0x20f   :  { %v9514_v53 = vpop.permute.xlu1 %1700 }
 0x2aa   :  { %v990_v56 = vpop.f32.mrf.mxu1 }
 0x2ac   :  { %v992_v14 = vpop.f32.mrf.mxu1 }
 0x2ae   :  { %v1071_v9 = vpop.f32.mrf.mxu0 }
 0x2af   :  { %v1072_v5 = vadd.f32 %v1071_v9, %v990_v56 }
 0x2b0   :  { %v1073_v17 = vpop.f32.mrf.mxu0 }
 0x2b1   :  { %v1074_v8 = vadd.f32 %v1073_v17, %v992_v14 }
 0x2b6   :  { %v1158_v6 = vpop.f32.mrf.mxu1  ;;  %v1247_v7 = vpop.f32.mrf.mxu0 }
 0x2b7   :  { %v1163_v10 = vadd.f32 %v1158_v6, %v1072_v5 }
 0x2b8   :  { %v1160_v11 = vpop.f32.mrf.mxu1  ;;  %v1249_v12 = vpop.f32.mrf.mxu0 }
 0x2b9   :  { %v1252_v13 = vadd.f32 %v1247_v7, %v1163_v10  ;;  %v1164_v20 = vadd.f32 %v1160_v11, %v1074_v8  ;;  %v9090_v11 = vmov 4  }
 0x2ba   :  { %v1330_v21 = vpop.f32.mrf.mxu1  ;;  %v1419_v22 = vpop.f32.mrf.mxu0  ;;  %9006 = vset.pattern.permute.xlu1 %v9090_v11 }
 0x2bb   :  { %v1253_v23 = vadd.f32 %v1249_v12, %v1164_v20  ;;  %v1335_v24 = vadd.f32 %v1330_v21, %v1252_v13  ;;  %v9569_v12 = vpop.permute.xlu1 %1725  ;;  %v9571_v13 = vpop.permute.xlu0 %1806 }
 0x2bc   :  { %v1332_v25 = vpop.f32.mrf.mxu1  ;;  %v1421_v26 = vpop.f32.mrf.mxu0 }
 0x2bd   :  { %v1424_v27 = vadd.f32 %v1419_v22, %v1335_v24  ;;  %v1336_v28 = vadd.f32 %v1332_v25, %v1253_v23 }
 0x2be   :  { %v1508_v30 = vpop.f32.mrf.mxu1 }
 0x2bf   :  { %v1425_v31 = vadd.f32 %v1421_v26, %v1336_v28  ;;  %v1513_v32 = vadd.f32 %v1508_v30, %v1424_v27  ;;  %v1597_v35 = vpop.f32.mrf.mxu0  ;;  %v9573_v20 = vpop.permute.xlu1 %1893 }
 0x2c0   :  { %v1510_v36 = vpop.f32.mrf.mxu1  ;;  %v9575_v21 = vpop.permute.xlu0 %1982 }
 0x2c1   :  { %v1602_v37 = vadd.f32 %v1597_v35, %v1513_v32  ;;  %v1514_v38 = vadd.f32 %v1510_v36, %v1425_v31  ;;  %v1599_v42 = vpop.f32.mrf.mxu0 }
 0x2c3   :  { %v1603_v43 = vadd.f32 %v1599_v42, %v1514_v38  ;;  %v1686_v44 = vpop.f32.mrf.mxu1  ;;  %v9577_v22 = vpop.permute.xlu1 %2065 }
 0x2c4   :  { %v1691_v47 = vadd.f32 %v1686_v44, %v1602_v37  ;;  %v9579_v23 = vpop.permute.xlu0 %2154 }
 0x2c5   :  { %v1688_v48 = vpop.f32.mrf.mxu1 }
 0x2c6   :  { %v1692_v54 = vadd.f32 %v1688_v48, %v1603_v43  ;;  %v1697_v56 = vadd.f32 %v9512_v46, %v1691_v47 }
 0x2c8   :  { %v1698_v9 = vadd.f32 %v9512_v46, %v1692_v54  ;;  %v1703_v14 = vsel %vm888_vm11, %v9514_v53, %v1697_v56 }
 0x2c9   :  { %v1705_v17 = vadd.f32 %v1703_v14, %v9148_v0 }
 0x2ca   :  { %v1704_v5 = vsel %vm9360_vm12, %v9514_v53, %v1698_v9 }
 0x2cb   :  { %vm1707_vm15 = vcmp.gt.f32.partialorder %v1705_v17, 0.0  ;;  %v1709_v6 = vmul.f32 0.1, %v1705_v17  ;;  %v1706_v7 = vadd.f32 %v1704_v5, %v9158_v2  ;;  %v9089_v2 = vmov 5  }
 0x2cc   :  { %9005 = vset.pattern.permute.xlu0 %v9089_v2 }
 0x2cd   :  { %v9526_v8 = vsel %vm1707_vm15, %v1705_v17, %v1709_v6  ;;  %v1710_v10 = vmul.f32 0.1, %v1706_v7  ;;  %vm1708_vm0 = vcmp.gt.f32.partialorder %v1706_v7, 0.0 }
 0x2ce   :  { %1887 = vrot.lane.b32.xlu0 %v9526_v8, %s9056_s27  ;;  %1719 = vrot.lane.b32.xlu1 %v9526_v8, %s9055_s24 }
 0x2cf   :  { %v9536_v0 = vsel %vm1708_vm0, %v1706_v7, %v1710_v10 }
 0x2d2   :  { %2237 = vrot.lane.b32.xlu0 %v9526_v8, %s10771_s10  ;;  %1713 = vrot.lane.b32.xlu1 %v9526_v8, %s9054_s23 }
 0x2d6   :  { %1721 = vrot.lane.b32.xlu0 %v9536_v0, %s9055_s24  ;;  %1976 = vrot.lane.b32.xlu1 %v9526_v8, %s9058_s29 }
 0x2da   :  { %1715 = vrot.lane.b32.xlu0 %v9536_v0, %s9054_s23  ;;  %2148 = vrot.lane.b32.xlu1 %v9526_v8, %s9060_s7 }
 0x2de   :  { %2415 = vrot.lane.b32.xlu0 %v9526_v8, %s10769_s4  ;;  %2326 = vrot.lane.b32.xlu1 %v9526_v8, %s9062_s9 }
 0x2e2   :  { %1978 = vrot.lane.b32.xlu0 %v9536_v0, %s9058_s29  ;;  %1889 = vrot.lane.b32.xlu1 %v9536_v0, %s9056_s27 }
 0x2e6   :  { %2150 = vrot.lane.b32.xlu0 %v9536_v0, %s9060_s7  ;;  %2243 = vrot.lane.b32.xlu1 %v9167_v3, %s9088_s21  ;;  %s9096_s21 = smov 4  }
 0x2ea   :  { %2328 = vrot.lane.b32.xlu0 %v9536_v0, %s9062_s9  ;;  %2239 = vrot.lane.b32.xlu1 %v9536_v0, %s10771_s10 }
 0x2ee   :  { %2332 = vrot.lane.b32.xlu0 %v9167_v3, %s9091_s22  ;;  %2417 = vrot.lane.b32.xlu1 %v9536_v0, %s10769_s4 }
 0x2f2   :  { %2421 = vrot.lane.b32.xlu1 %v9167_v3, %s9092_s18  ;;  %2505 = vperm.xlu0 %9005, %v9227_v18  }
 0x2f6   :  { %2511 = vperm.xlu1 %9006, %v9227_v18   ;;  %2615 = vrot.lane.b32.xlu0 %v9167_v3, %s9093_s25 }
 0x2fa   :  { %2534 = vrot.lane.b32.xlu1 %v9167_v3, %s9055_s24  ;;  %2791 = vrot.lane.b32.xlu0 %v9167_v3, %s9095_s17 }
 0x2fe   :  { %2702 = vrot.lane.b32.xlu1 %v9167_v3, %s9094_s12 }
 0x302   :  { %2874 = vrot.lane.b32.xlu1 %v9167_v3, %s9096_s21 }
 0x340   :  { %v1720_v24 = vpop.permute.xlu1 %1719  ;;  %v1888_v25 = vpop.permute.xlu0 %1887 }
 0x344   :  { %v1714_v26 = vpop.permute.xlu1 %1713  ;;  %v2238_v27 = vpop.permute.xlu0 %2237 }
 0x348   :  { %v1977_v28 = vpop.permute.xlu1 %1976  ;;  %v1722_v30 = vpop.permute.xlu0 %1721 }
 0x349   :  { %v1724_v31 = vsel %vm77_vm1, %v1722_v30, %v1720_v24  ;;  %v1723_v32 = vsel %vm77_vm1, %v1720_v24, %v1722_v30 }
 0x34a   :  { %8494 = vmatprep.subr.msk.mxu0 %vm86_vm3, %v1723_v32 }
 0x34b   :  { %8495 = vmatpush1.msk.msra.mxu0 %vm86_vm3, %v1724_v31 }
 0x34c   :  { %v2149_v35 = vpop.permute.xlu1 %2148  ;;  %8496 = vmatmul.mubr.msk.f32.vlgmr.msra.gmra.mxu0 %vm83_vm4, %v9569_v12  ;;  %v1716_v36 = vpop.permute.xlu0 %1715 }
 0x34d   :  { %v1718_v37 = vsel %vm70_vm2, %v1716_v36, %v1714_v26  ;;  %v1717_v38 = vsel %vm70_vm2, %v1714_v26, %v1716_v36  ;;  %1967 = vmatprep.mubr.f32.mxu0 %v10775_v1 }
 0x34e   :  { %8497 = vmatprep.subr.msk.mxu1 %vm86_vm3, %v1717_v38 }
 0x34f   :  { %8498 = vmatpush1.msk.msra.mxu1 %vm86_vm3, %v1718_v37 }
 0x350   :  { %v2327_v42 = vpop.permute.xlu1 %2326  ;;  %8499 = vmatmul.mubr.msk.f32.vlgmr.msra.gmra.mxu1 %vm83_vm4, %v9571_v13  ;;  %v2416_v43 = vpop.permute.xlu0 %2415 }
 0x351   :  { %2056 = vmatprep.mubr.f32.mxu1 %v10775_v1 }
 0x354   :  { %v1890_v44 = vpop.permute.xlu1 %1889  ;;  %v1979_v47 = vpop.permute.xlu0 %1978 }
 0x355   :  { %v1892_v48 = vsel %vm247_vm5, %v1890_v44, %v1888_v25  ;;  %v1981_v54 = vsel %vm337_vm6, %v1979_v47, %v1977_v28  ;;  %v1891_v56 = vsel %vm247_vm5, %v1888_v25, %v1890_v44  ;;  %v1980_v9 = vsel %vm337_vm6, %v1977_v28, %v1979_v47 }
 0x356   :  { %8500 = vmatprep.subr.msk.mxu0 %vm86_vm3, %v1891_v56  ;;  %8503 = vmatprep.subr.msk.mxu1 %vm86_vm3, %v1980_v9 }
 0x357   :  { %8501 = vmatpush1.msk.msra.mxu0 %vm86_vm3, %v1892_v48  ;;  %8504 = vmatpush1.msk.msra.mxu1 %vm86_vm3, %v1981_v54 }
 0x358   :  { %v9611_v14 = vpop.permute.xlu1 %2243  ;;  %8502 = vmatmul.mubr.msk.f32.vlgmr.msra.gmra.mxu0 %vm83_vm4, %v9573_v20  ;;  %8505 = vmatmul.mubr.msk.f32.vlgmr.msra.gmra.mxu1 %vm83_vm4, %v9575_v21  ;;  %v2151_v17 = vpop.permute.xlu0 %2150 }
 0x359   :  { %10809 = vst [vmem:[#allocation2_spill] sm:$0xff] %v9611_v14  ;;  %8506 = vmatprep.subr.msk.mxu0 %vm86_vm3, %v9536_v0  ;;  %v2152_v5 = vsel %vm508_vm7, %v2149_v35, %v2151_v17  ;;  %v2153_v6 = vsel %vm508_vm7, %v2151_v17, %v2149_v35  ;;  %2139 = vmatprep.mubr.f32.mxu0 %v10775_v1 }
 0x35a   :  { %8507 = vmatpush1.msk.msra.mxu0 %vm86_vm3, %v9526_v8  ;;  %8509 = vmatprep.subr.msk.mxu1 %vm86_vm3, %v2153_v6 }
 0x35b   :  { %8510 = vmatpush1.msk.msra.mxu1 %vm86_vm3, %v2152_v5  ;;  %2228 = vmatprep.mubr.f32.mxu1 %v10775_v1 }
 0x35c   :  { %v2240_v7 = vpop.permute.xlu1 %2239  ;;  %8508 = vmatmul.mubr.msk.f32.vlgmr.msra.gmra.mxu0 %vm83_vm4, %v9577_v22  ;;  %8511 = vmatmul.mubr.msk.f32.vlgmr.msra.gmra.mxu1 %vm83_vm4, %v9579_v23  ;;  %v2329_v10 = vpop.permute.xlu0 %2328 }
 0x35d   :  { %v2241_v2 = vsel %vm598_vm8, %v2238_v27, %v2240_v7  ;;  %v2330_v11 = vsel %vm688_vm9, %v2327_v42, %v2329_v10  ;;  %v2242_v24 = vsel %vm598_vm8, %v2240_v7, %v2238_v27  ;;  %v2331_v25 = vsel %vm688_vm9, %v2329_v10, %v2327_v42  ;;  %2317 = vmatprep.mubr.f32.mxu0 %v10775_v1 }
 0x35e   :  { %8512 = vmatprep.subr.msk.mxu0 %vm86_vm3, %v2242_v24  ;;  %8515 = vmatprep.subr.msk.mxu1 %vm86_vm3, %v2331_v25 }
 0x35f   :  { %8513 = vmatpush1.msk.msra.mxu0 %vm86_vm3, %v2241_v2  ;;  %8516 = vmatpush1.msk.msra.mxu1 %vm86_vm3, %v2330_v11 }
 0x360   :  { %v2418_v26 = vpop.permute.xlu1 %2417  ;;  %8514 = vmatmul.mubr.msk.f32.vlgmr.msra.gmra.mxu0 %vm83_vm4, %v9611_v14  ;;  %2406 = vmatprep.mubr.f32.mxu1 %v10775_v1  ;;  %v9649_v27 = vpop.permute.xlu0 %2332 }
 0x361   :  { %10810 = vst [vmem:[#allocation3_spill] sm:$0xff] %v9649_v27  ;;  %v2419_v28 = vsel %vm778_vm10, %v2416_v43, %v2418_v26  ;;  %8517 = vmatmul.mubr.msk.f32.vlgmr.msra.gmra.mxu1 %vm83_vm4, %v9649_v27  ;;  %v2420_v30 = vsel %vm778_vm10, %v2418_v26, %v2416_v43  ;;  %2495 = vmatprep.mubr.f32.mxu0 %v10775_v1 }
 0x362   :  { %8518 = vmatprep.subr.msk.mxu0 %vm86_vm3, %v2420_v30  ;;  %2608 = vmatprep.mubr.f32.mxu1 %v10775_v1 }
 0x363   :  { %8519 = vmatpush1.msk.msra.mxu0 %vm86_vm3, %v2419_v28 }
 0x364   :  { %v9661_v31 = vpop.permute.xlu1 %2421 }
 0x365   :  { %10811 = vst [vmem:[#allocation4_spill] sm:$0xff] %v9661_v31  ;;  %8520 = vmatmul.mubr.msk.f32.vlgmr.msra.gmra.mxu0 %vm83_vm4, %v9661_v31 }
 0x366   :  { %2689 = vmatprep.mubr.f32.mxu0 %v10775_v1 }
 0x40c   :  { %v1801_v32 = vpop.f32.mrf.mxu0 }
 0x40e   :  { %v1803_v36 = vpop.f32.mrf.mxu0 }
 0x410   :  { %v1882_v35 = vpop.f32.mrf.mxu1 }
 0x411   :  { %v1883_v38 = vadd.f32 %v1882_v35, %v1801_v32 }
 0x412   :  { %v1884_v37 = vpop.f32.mrf.mxu1 }
 0x413   :  { %v1885_v44 = vadd.f32 %v1884_v37, %v1803_v36 }
 0x418   :  { %v1969_v42 = vpop.f32.mrf.mxu0  ;;  %v2058_v43 = vpop.f32.mrf.mxu1 }
 0x419   :  { %v1974_v47 = vadd.f32 %v1969_v42, %v1883_v38  ;;  %v9670_v38 = vpop.permute.xlu0 %2505 }
 0x41a   :  { %v1971_v48 = vpop.f32.mrf.mxu0  ;;  %v2060_v54 = vpop.f32.mrf.mxu1  ;;  %10812 = vst [vmem:[#allocation5_spill] sm:$0xff] %v9670_v38 }
 0x41b   :  { %v2063_v56 = vadd.f32 %v2058_v43, %v1974_v47  ;;  %v1975_v9 = vadd.f32 %v1971_v48, %v1885_v44  ;;  %v9672_v47 = vpop.permute.xlu1 %2511 }
 0x41c   :  { %v2141_v17 = vpop.f32.mrf.mxu0  ;;  %v2230_v5 = vpop.f32.mrf.mxu1  ;;  %10813 = vst [vmem:[#allocation6_spill] sm:$0xff] %v9672_v47 }
 0x41d   :  { %v2064_v6 = vadd.f32 %v2060_v54, %v1975_v9  ;;  %v2146_v7 = vadd.f32 %v2141_v17, %v2063_v56 }
 0x41e   :  { %v2143_v10 = vpop.f32.mrf.mxu0  ;;  %v2232_v2 = vpop.f32.mrf.mxu1 }
 0x41f   :  { %v2235_v3 = vadd.f32 %v2230_v5, %v2146_v7  ;;  %v2147_v11 = vadd.f32 %v2143_v10, %v2064_v6 }
 0x420   :  { %v2319_v24 = vpop.f32.mrf.mxu0 }
 0x421   :  { %v2236_v25 = vadd.f32 %v2232_v2, %v2147_v11  ;;  %v2324_v26 = vadd.f32 %v2319_v24, %v2235_v3  ;;  %v2408_v28 = vpop.f32.mrf.mxu1  ;;  %v9709_v2 = vld [vmem:[%s10761_s1] sm:$0xff]  ;;  %v9097_v11 = vmov 7   ;;  %v9098_v24 = vmov 6  }
 0x422   :  { %v2321_v30 = vpop.f32.mrf.mxu0  ;;  %v9713_v3 = vcombine.high %v9709_v2, %v9709_v2  ;;  %9007 = vset.pattern.permute.xlu1 %v9097_v11  ;;  %9008 = vset.pattern.permute.xlu0 %v9098_v24 }
 0x423   :  { %v2413_v32 = vadd.f32 %v2408_v28, %v2324_v26  ;;  %v2325_v35 = vadd.f32 %v2321_v30, %v2236_v25  ;;  %v2410_v36 = vpop.f32.mrf.mxu1  ;;  %v9725_v25 = vpop.permute.xlu1 %2534 }
 0x424   :  { %10814 = vst [vmem:[#allocation7_spill] sm:$0xff] %v9713_v3  ;;  %10815 = vst [vmem:[#allocation8_spill] sm:$0xff] %v9725_v25  ;;  %v9729_v28 = vpop.permute.xlu0 %2615 }
 0x425   :  { %v2497_v37 = vpop.f32.mrf.mxu0  ;;  %v2414_v42 = vadd.f32 %v2410_v36, %v2325_v35  ;;  %10817 = vst [vmem:[#allocation10_spill] sm:$0xff] %v9729_v28 }
 0x426   :  { %v2502_v43 = vadd.f32 %v2497_v37, %v2413_v32 }
 0x427   :  { %v2499_v44 = vpop.f32.mrf.mxu0  ;;  %v9727_v26 = vpop.permute.xlu1 %2702 }
 0x428   :  { %v2508_v48 = vadd.f32 %v9670_v38, %v2502_v43  ;;  %v2503_v54 = vadd.f32 %v2499_v44, %v2414_v42  ;;  %10816 = vst [vmem:[#allocation9_spill] sm:$0xff] %v9727_v26  ;;  %v9733_v32 = vpop.permute.xlu0 %2791 }
 0x429   :  { %10819 = vst [vmem:[#allocation12_spill] sm:$0xff] %v9733_v32 }
 0x42a   :  { %v2514_v56 = vsel %vm888_vm11, %v9672_v47, %v2508_v48  ;;  %v2509_v5 = vadd.f32 %v9670_v38, %v2503_v54 }
 0x42b   :  { %vm2516_vm13 = vcmp.gt.f32.partialorder %v2514_v56, 0.0  ;;  %v2518_v9 = vmul.f32 0.1, %v2514_v56  ;;  %v9731_v30 = vpop.permute.xlu1 %2874 }
 0x42c   :  { %v2515_v6 = vsel %vm9360_vm12, %v9672_v47, %v2509_v5  ;;  %10818 = vst [vmem:[#allocation11_spill] sm:$0xff] %v9731_v30 }
 0x42d   :  { %v9678_v17 = vsel %vm2516_vm13, %v2514_v56, %v2518_v9  ;;  %v2519_v7 = vmul.f32 0.1, %v2515_v6  ;;  %vm2517_vm14 = vcmp.gt.f32.partialorder %v2515_v6, 0.0  ;;  %vm9099_vm13 = vmmov 0  }
 0x42e   :  { %2696 = vrot.lane.b32.xlu0 %v9678_v17, %s9056_s27  ;;  %2528 = vrot.lane.b32.xlu1 %v9678_v17, %s9055_s24 }
 0x42f   :  { %v2521_v10 = vsel %vm2517_vm14, %v2515_v6, %v2519_v7 }
 0x432   :  { %3045 = vrot.lane.b32.xlu0 %v9678_v17, %s10771_s10  ;;  %2522 = vrot.lane.b32.xlu1 %v9678_v17, %s9054_s23 }
 0x436   :  { %3134 = vrot.lane.b32.xlu0 %v9678_v17, %s9062_s9  ;;  %2785 = vrot.lane.b32.xlu1 %v9678_v17, %s9058_s29 }
 0x43a   :  { %2530 = vrot.lane.b32.xlu0 %v2521_v10, %s9055_s24  ;;  %2957 = vrot.lane.b32.xlu1 %v9678_v17, %s9060_s7 }
 0x43e   :  { %2524 = vrot.lane.b32.xlu0 %v2521_v10, %s9054_s23  ;;  %2698 = vrot.lane.b32.xlu1 %v2521_v10, %s9056_s27 }
 0x442   :  { %2787 = vrot.lane.b32.xlu0 %v2521_v10, %s9058_s29  ;;  %3223 = vrot.lane.b32.xlu1 %v9678_v17, %s10769_s4 }
 0x446   :  { %2959 = vrot.lane.b32.xlu0 %v2521_v10, %s9060_s7  ;;  %3047 = vrot.lane.b32.xlu1 %v2521_v10, %s10771_s10  ;;  %s9107_s10 = smov 65  }
 0x44a   :  { %3051 = vrot.lane.b32.xlu0 %v9713_v3, %s9057_s28  ;;  %3136 = vrot.lane.b32.xlu1 %v2521_v10, %s9062_s9 }
 0x44e   :  { %3225 = vrot.lane.b32.xlu0 %v2521_v10, %s10769_s4  ;;  %3140 = vrot.lane.b32.xlu1 %v9713_v3, %s9059_s30 }
 0x452   :  { %3229 = vrot.lane.b32.xlu0 %v9713_v3, %s9061_s8  ;;  %3313 = vperm.xlu1 %9007, %v9227_v18   ;;  %s10829_s8 = smov 84  }
 0x456   :  { %3319 = vperm.xlu0 %9008, %v9227_v18  }
 0x4a0   :  { %v2529_v35 = vpop.permute.xlu1 %2528  ;;  %v2697_v36 = vpop.permute.xlu0 %2696 }
 0x4a4   :  { %v2523_v37 = vpop.permute.xlu1 %2522  ;;  %v3046_v42 = vpop.permute.xlu0 %3045 }
 0x4a8   :  { %v2786_v43 = vpop.permute.xlu1 %2785  ;;  %v3135_v44 = vpop.permute.xlu0 %3134 }
 0x4ac   :  { %v2958_v48 = vpop.permute.xlu1 %2957  ;;  %v2531_v54 = vpop.permute.xlu0 %2530 }
 0x4ad   :  { %v2533_v18 = vsel %vm77_vm1, %v2531_v54, %v2529_v35  ;;  %v2532_v56 = vsel %vm77_vm1, %v2529_v35, %v2531_v54 }
 0x4ae   :  { %8521 = vmatprep.subr.msk.mxu1 %vm86_vm3, %v2532_v56 }
 0x4af   :  { %8522 = vmatpush1.msk.msra.mxu1 %vm86_vm3, %v2533_v18 }
 0x4b0   :  { %v2699_v9 = vpop.permute.xlu1 %2698  ;;  %8523 = vmatmul.mubr.msk.f32.vlgmr.msra.gmra.mxu1 %vm83_vm4, %v9725_v25  ;;  %v2525_v5 = vpop.permute.xlu0 %2524 }
 0x4b1   :  { %v2701_v6 = vsel %vm247_vm5, %v2699_v9, %v2697_v36  ;;  %v2527_v7 = vsel %vm70_vm2, %v2525_v5, %v2523_v37  ;;  %v2526_v11 = vsel %vm70_vm2, %v2523_v37, %v2525_v5  ;;  %v2700_v24 = vsel %vm247_vm5, %v2697_v36, %v2699_v9  ;;  %2776 = vmatprep.mubr.f32.mxu1 %v10775_v1 }
 0x4b2   :  { %8524 = vmatprep.subr.msk.mxu0 %vm86_vm3, %v2526_v11  ;;  %8527 = vmatprep.subr.msk.mxu1 %vm86_vm3, %v2700_v24 }
 0x4b3   :  { %8525 = vmatpush1.msk.msra.mxu0 %vm86_vm3, %v2527_v7  ;;  %8528 = vmatpush1.msk.msra.mxu1 %vm86_vm3, %v2701_v6 }
 0x4b4   :  { %v3224_v35 = vpop.permute.xlu1 %3223  ;;  %8526 = vmatmul.mubr.msk.f32.vlgmr.msra.gmra.mxu0 %vm83_vm4, %v9729_v28  ;;  %8529 = vmatmul.mubr.msk.f32.vlgmr.msra.gmra.mxu1 %vm83_vm4, %v9727_v26  ;;  %v2788_v37 = vpop.permute.xlu0 %2787 }
 0x4b5   :  { %8533 = vmatprep.subr.msk.mxu1 %vm86_vm3, %v2521_v10  ;;  %v2790_v36 = vsel %vm337_vm6, %v2788_v37, %v2786_v43  ;;  %v2789_v54 = vsel %vm337_vm6, %v2786_v43, %v2788_v37  ;;  %2865 = vmatprep.mubr.f32.mxu0 %v10775_v1 }
 0x4b6   :  { %8534 = vmatpush1.msk.msra.mxu1 %vm86_vm3, %v9678_v17  ;;  %8530 = vmatprep.subr.msk.mxu0 %vm86_vm3, %v2789_v54  ;;  %v57_v54 = vld [vmem:[%s10764_s5 + $0xf0] sm:$0xff] }
 0x4b7   :  { %8531 = vmatpush1.msk.msra.mxu0 %vm86_vm3, %v2790_v36  ;;  %2948 = vmatprep.mubr.f32.mxu1 %v10775_v1  ;;  %v58_v36 = vld [vmem:[%s10764_s5 + $0xf8] sm:$0xff] }
 0x4b8   :  { %v3048_v18 = vpop.permute.xlu1 %3047  ;;  %8532 = vmatmul.mubr.msk.f32.vlgmr.msra.gmra.mxu0 %vm83_vm4, %v9733_v32  ;;  %8535 = vmatmul.mubr.msk.f32.vlgmr.msra.gmra.mxu1 %vm83_vm4, %v9731_v30  ;;  %v2960_v10 = vpop.permute.xlu0 %2959 }
 0x4b9   :  { %v3049_v43 = vsel %vm598_vm8, %v3046_v42, %v3048_v18  ;;  %v2961_v17 = vsel %vm508_vm7, %v2958_v48, %v2960_v10  ;;  %v2962_v56 = vsel %vm508_vm7, %v2960_v10, %v2958_v48  ;;  %v3050_v9 = vsel %vm598_vm8, %v3048_v18, %v3046_v42  ;;  %3036 = vmatprep.mubr.f32.mxu0 %v10775_v1  ;;  %v41_v18 = vld [vmem:[%s10764_s5 + $0x70] sm:$0xff]  ;;  %v56_v10 = vld [vmem:[%s10764_s5 + $0xe8] sm:$0xff] }
 0x4ba   :  { %8536 = vmatprep.subr.msk.mxu0 %vm86_vm3, %v2962_v56  ;;  %8539 = vmatprep.subr.msk.mxu1 %vm86_vm3, %v3050_v9  ;;  %v39_v56 = vld [vmem:[%s10764_s5 + $0x60] sm:$0xff]  ;;  %v54_v9 = vld [vmem:[%s10764_s5 + $0xd8] sm:$0xff] }
 0x4bb   :  { %8537 = vmatpush1.msk.msra.mxu0 %vm86_vm3, %v2961_v17  ;;  %8540 = vmatpush1.msk.msra.mxu1 %vm86_vm3, %v3049_v43  ;;  %v40_v43 = vld [vmem:[%s10764_s5 + $0x68] sm:$0xff]  ;;  %v55_v17 = vld [vmem:[%s10764_s5 + $0xe0] sm:$0xff] }
 0x4bc   :  { %v3137_v5 = vpop.permute.xlu1 %3136  ;;  %8538 = vmatmul.mubr.msk.f32.vlgmr.msra.gmra.mxu0 %vm83_vm4, %v9713_v3  ;;  %3125 = vmatprep.mubr.f32.mxu1 %v10775_v1  ;;  %v9791_v48 = vpop.permute.xlu0 %3051 }
 0x4bd   :  { %10820 = vst [vmem:[#allocation13_spill] sm:$0xff] %v9791_v48  ;;  %v3138_v42 = vsel %vm688_vm9, %v3135_v44, %v3137_v5  ;;  %8541 = vmatmul.mubr.msk.f32.vlgmr.msra.gmra.mxu1 %vm83_vm4, %v9791_v48  ;;  %v3139_v6 = vsel %vm688_vm9, %v3137_v5, %v3135_v44  ;;  %3214 = vmatprep.mubr.f32.mxu0 %v10775_v1  ;;  %v38_v5 = vld [vmem:[%s10764_s5 + $0x58] sm:$0xff] }
 0x4be   :  { %8542 = vmatprep.subr.msk.mxu0 %vm86_vm3, %v3139_v6  ;;  %3303 = vmatprep.mubr.f32.mxu1 %v10775_v1  ;;  %v37_v6 = vld [vmem:[%s10764_s5 + $0x50] sm:$0xff] }
 0x4bf   :  { %8543 = vmatpush1.msk.msra.mxu0 %vm86_vm3, %v3138_v42  ;;  %v53_v42 = vld [vmem:[%s10764_s5 + $0xd0] sm:$0xff] }
 0x4c0   :  { %v9803_v7 = vpop.permute.xlu1 %3140  ;;  %v3226_v11 = vpop.permute.xlu0 %3225  ;;  %8706 = vmatprep.subr.mxu0 %v58_v36  ;;  %v35_v36 = vld [vmem:[%s10764_s5 + $0x40] sm:$0xff] }
 0x4c1   :  { %10821 = vst [vmem:[#allocation14_spill] sm:$0xff] %v9803_v7  ;;  %v3227_v24 = vsel %vm778_vm10, %v3224_v35, %v3226_v11  ;;  %8544 = vmatmul.mubr.msk.f32.vlgmr.msra.gmra.mxu0 %vm83_vm4, %v9803_v7  ;;  %v3228_v44 = vsel %vm778_vm10, %v3226_v11, %v3224_v35  ;;  %v42_v35 = vld [vmem:[%s10764_s5 + $0x78] sm:$0xff]  ;;  %v52_v11 = vld [vmem:[%s10764_s5 + $0xc8] sm:$0xff] }
 0x4c2   :  { %8545 = vmatprep.subr.msk.mxu1 %vm86_vm3, %v3228_v44  ;;  %8707 = vmatpush3.msra.mxu0 %v42_v35  ;;  %v51_v44 = vld [vmem:[%s10764_s5 + $0xc0] sm:$0xff]  ;;  %v50_v35 = vld [vmem:[%s10764_s5 + $0xb8] sm:$0xff] }
 0x4c3   :  { %8546 = vmatpush1.msk.msra.mxu1 %vm86_vm3, %v3227_v24  ;;  %8708 = vmatprep.subr.mxu0 %v57_v54  ;;  %v36_v24 = vld [vmem:[%s10764_s5 + $0x48] sm:$0xff]  ;;  %v34_v54 = vld [vmem:[%s10764_s5 + $0x38] sm:$0xff] }
 0x4c4   :  { %v9813_v37 = vpop.permute.xlu0 %3229  ;;  %8824 = vmatprep.subr.mxu1 %v10775_v1  ;;  %8709 = vmatpush3.msra.mxu0 %v41_v18  ;;  %v49_v18 = vld [vmem:[%s10764_s5 + $0xb0] sm:$0xff] }
 0x4c5   :  { %10822 = vst [vmem:[#allocation15_spill] sm:$0xff] %v9813_v37  ;;  %8547 = vmatmul.mubr.msk.f32.vlgmr.msra.gmra.mxu1 %vm83_vm4, %v9813_v37  ;;  %8710 = vmatprep.subr.mxu0 %v56_v10  ;;  %v33_v10 = vld [vmem:[%s10764_s5 + $0x30] sm:$0xff] }
 0x4c6   :  { %8711 = vmatpush3.msra.mxu0 %v40_v43  ;;  %v48_v43 = vld [vmem:[%s10764_s5 + $0xa8] sm:$0xff] }
 0x4c7   :  { %8712 = vmatprep.subr.mxu0 %v55_v17  ;;  %v32_v17 = vld [vmem:[%s10764_s5 + $0x28] sm:$0xff] }
 0x4c8   :  { %8713 = vmatpush3.msra.mxu0 %v39_v56  ;;  %v47_v56 = vld [vmem:[%s10764_s5 + $0xa0] sm:$0xff] }
 0x4c9   :  { %8714 = vmatprep.subr.mxu0 %v54_v9  ;;  %v31_v9 = vld [vmem:[%s10764_s5 + $0x20] sm:$0xff] }
 0x4ca   :  { %8715 = vmatpush3.msra.mxu0 %v38_v5  ;;  %v46_v5 = vld [vmem:[%s10764_s5 + $0x98] sm:$0xff] }
 0x4cb   :  { %8716 = vmatprep.subr.mxu0 %v53_v42  ;;  %v30_v42 = vld [vmem:[%s10764_s5 + $0x18] sm:$0xff] }
 0x4cc   :  { %8717 = vmatpush3.msra.mxu0 %v37_v6  ;;  %v45_v6 = vld [vmem:[%s10764_s5 + $0x90] sm:$0xff]  ;;  %v10855_v19 = vld [vmem:[#allocation15_spill] sm:$0xff] }
 0x4cd   :  { %8718 = vmatprep.subr.mxu0 %v52_v11  ;;  %v29_v11 = vld [vmem:[%s10764_s5 + $0x10] sm:$0xff] }
 0x4ce   :  { %8719 = vmatpush3.msra.mxu0 %v36_v24  ;;  %v44_v24 = vld [vmem:[%s10764_s5 + $0x88] sm:$0xff] }
 0x4cf   :  { %8720 = vmatprep.subr.mxu0 %v51_v44  ;;  %v28_v44 = vld [vmem:[%s10764_s5 + $0x8] sm:$0xff] }
 0x4d0   :  { %8721 = vmatpush3.msra.mxu0 %v35_v36  ;;  %v43_v36 = vld [vmem:[%s10764_s5 + $0x80] sm:$0xff] }
 0x4d1   :  { %8722 = vmatprep.subr.mxu0 %v50_v35  ;;  %v27_v35 = vld [vmem:[%s10764_s5] sm:$0xff] }
 0x4d2   :  { %8723 = vmatpush3.msra.mxu0 %v34_v54  ;;  %v9917_v54 = vld [vmem:[%s10765_s2] sm:$0xff] }
 0x4d3   :  { %8724 = vmatprep.subr.mxu0 %v49_v18  ;;  %3407 = vrot.lane.b32.xlu1 %v9917_v54, %s9059_s30 }
 0x4d4   :  { %8725 = vmatpush3.msra.mxu0 %v33_v10 }
 0x4d5   :  { %8726 = vmatprep.subr.mxu0 %v48_v43 }
 0x4d6   :  { %8727 = vmatpush3.msra.mxu0 %v32_v17 }
 0x4d7   :  { %8728 = vmatprep.subr.mxu0 %v47_v56 }
 0x4d8   :  { %8729 = vmatpush3.msra.mxu0 %v31_v9 }
 0x4d9   :  { %8730 = vmatprep.subr.mxu0 %v46_v5 }
 0x4da   :  { %8731 = vmatpush3.msra.mxu0 %v30_v42 }
 0x4db   :  { %8732 = vmatprep.subr.mxu0 %v45_v6 }
 0x4dc   :  { %8733 = vmatpush3.msra.mxu0 %v29_v11 }
 0x4dd   :  { %8734 = vmatprep.subr.mxu0 %v44_v24 }
 0x4de   :  { %8735 = vmatpush3.msra.mxu0 %v28_v44 }
 0x4df   :  { %8736 = vmatprep.subr.mxu0 %v43_v36 }
 0x4e0   :  { %8737 = vmatpush3.msra.mxu0 %v27_v35 }
 0x4e1   :  { %8864 = vmatprep.subr.mxu0 %v10775_v1 }
 0x570   :  { %v2610_v18 = vpop.f32.mrf.mxu1 }
 0x572   :  { %v2612_v10 = vpop.f32.mrf.mxu1 }
 0x574   :  { %v2691_v43 = vpop.f32.mrf.mxu0  ;;  %v2778_v17 = vpop.f32.mrf.mxu1 }
 0x575   :  { %v2692_v56 = vadd.f32 %v2691_v43, %v2610_v18 }
 0x576   :  { %v2693_v9 = vpop.f32.mrf.mxu0  ;;  %v2780_v5 = vpop.f32.mrf.mxu1 }
 0x577   :  { %v2783_v42 = vadd.f32 %v2778_v17, %v2692_v56  ;;  %v2694_v6 = vadd.f32 %v2693_v9, %v2612_v10  ;;  %v9922_v9 = vpop.permute.xlu1 %3313 }
 0x578   :  { %v2867_v11 = vpop.f32.mrf.mxu0  ;;  %v2950_v24 = vpop.f32.mrf.mxu1  ;;  %10823 = vst [vmem:[#allocation16_spill] sm:$0xff] %v9922_v9 }
 0x579   :  { %v2784_v44 = vadd.f32 %v2780_v5, %v2694_v6  ;;  %v2872_v36 = vadd.f32 %v2867_v11, %v2783_v42  ;;  %v9924_v11 = vpop.permute.xlu0 %3319 }
 0x57a   :  { %v2869_v35 = vpop.f32.mrf.mxu0  ;;  %v2952_v37 = vpop.f32.mrf.mxu1  ;;  %10824 = vst [vmem:[#allocation17_spill] sm:$0xff] %v9924_v11 }
 0x57b   :  { %v2955_v7 = vadd.f32 %v2950_v24, %v2872_v36  ;;  %v2873_v1 = vadd.f32 %v2869_v35, %v2784_v44  ;;  %v10825_v24 = vmov 0.0  }
 0x57c   :  { %v3038_v48 = vpop.f32.mrf.mxu0  ;;  %8826 = vmatprep.mubr.msk.f32.mxu1 %vm9099_vm13, %v10825_v24 }
 0x57d   :  { %v2956_v30 = vadd.f32 %v2952_v37, %v2873_v1  ;;  %v3043_v32 = vadd.f32 %v3038_v48, %v2955_v7  ;;  %v3127_v26 = vpop.f32.mrf.mxu1 }
 0x57e   :  { %v3040_v28 = vpop.f32.mrf.mxu0 }
 0x57f   :  { %v3044_v25 = vadd.f32 %v3040_v28, %v2956_v30  ;;  %v3129_v47 = vpop.f32.mrf.mxu1  ;;  %v3132_v18 = vadd.f32 %v3127_v26, %v3043_v32 }
 0x581   :  { %v3216_v43 = vpop.f32.mrf.mxu0  ;;  %v3133_v38 = vadd.f32 %v3129_v47, %v3044_v25 }
 0x582   :  { %v3221_v10 = vadd.f32 %v3216_v43, %v3132_v18  ;;  %v9943_v18 = vpop.permute.xlu1 %3407 }
 0x583   :  { %v3218_v17 = vpop.f32.mrf.mxu0  ;;  %10826 = vst [vmem:[#allocation18_spill] sm:$0xff] %v9943_v18 }
 0x584   :  { %v3222_v5 = vadd.f32 %v3218_v17, %v3133_v38 }
 0x585   :  { %v3305_v56 = vpop.f32.mrf.mxu1 }
 0x586   :  { %v3310_v42 = vadd.f32 %v3305_v56, %v3221_v10 }
 0x587   :  { %v3307_v6 = vpop.f32.mrf.mxu1 }
 0x588   :  { %v3316_v1 = vadd.f32 %v9922_v9, %v3310_v42  ;;  %v3311_v48 = vadd.f32 %v3307_v6, %v3222_v5 }
 0x58a   :  { %v3317_v7 = vadd.f32 %v9922_v9, %v3311_v48  ;;  %v3322_v26 = vsel %vm888_vm11, %v9924_v11, %v3316_v1  ;;  %v10858_v52 = vld [vmem:[#allocation18_spill] sm:$0xff] }
 0x58b   :  { %v3324_v47 = vadd.f32 %v3322_v26, %v9526_v8  ;;  %v9100_v8 = vmov 10   ;;  %v9101_v26 = vmov 9  }
 0x58c   :  { %v3323_v25 = vsel %vm9360_vm12, %v9924_v11, %v3317_v7  ;;  %9009 = vset.pattern.permute.xlu1 %v9100_v8 }
 0x58d   :  { %v3325_v38 = vadd.f32 %v3323_v25, %v9536_v0  ;;  %v3328_v28 = vmul.f32 0.1, %v3324_v47  ;;  %vm3326_vm0 = vcmp.gt.f32.partialorder %v3324_v47, 0.0  ;;  %v9018_v0 = vld [vmem:[%s10763_s3] sm:$0xff] }
 0x58e   :  { %3488 = vperm.xlu1 %9009, %v9018_v0  }
 0x58f   :  { %vm3327_vm15 = vcmp.gt.f32.partialorder %v3325_v38, 0.0  ;;  %v3329_v30 = vmul.f32 0.1, %v3325_v38  ;;  %v3330_v37 = vsel %vm3326_vm0, %v3324_v47, %v3328_v28  ;;  %v9102_v47 = vmov 8   ;;  %v9994_v28 = vld [vmem:[%s10760_s0 + $0x8] sm:$0xff]  ;;  %s10831_s0 = smov 113  }
 0x590   :  { %9011 = vset.pattern.permute.xlu0 %v9102_v47  ;;  %vm10806_vm0 = vcmp.eq.s32.totalorder %v9205_v15, 1 }
 0x591   :  { %v3331_v32 = vsel %vm3327_vm15, %v3325_v38, %v3329_v30  ;;  %vm3566_vm15 = vcmask 1048064   ;;  %v10002_v30 = vcombine.high %v9994_v28, %v9994_v28 }
 0x592   :  { %3396 = vmatprep.mubr.f32.mxu0 %v3331_v32  ;;  %9010 = vset.pattern.permute.xlu1 %v9101_v26 }
 0x593   :  { %3397 = vmatmul.mubr.f32.vlgmr.msra.gmra.mxu0 %v3330_v37 }
 0x594   :  { %8866 = vmatprep.mubr.msk.f32.mxu0 %vm9099_vm13, %v10825_v24 }
 0x609   :  { %v9959_v10 = vpop.permute.xlu1 %3488 }
 0x60a   :  { %10828 = vst [vmem:[#allocation20_spill] sm:$0xff] %v9959_v10 }
 0x653   :  { %v8738_v44 = vpop.f32.mrf.mxu0 }
 0x655   :  { %v8739_v36 = vpop.f32.mrf.mxu0 }
 0x656   :  { %v8740_v35 = vadd.f32 %v8739_v36, %v8738_v44 }
 0x658   :  { %8825 = vmatpush3.msk.msra.mxu1 %vm86_vm3, %v8740_v35 }
 0x659   :  { %8827 = vmatmul.mubr.msk.f32.vlgmr.msra.gmra.mxu1 %vm83_vm4, %v9943_v18  ;;  %8829 = vmatprep.subr.mxu1 %v10825_v24 }
 0x65a   :  { %8830 = vmatpush3.msk.msra.mxu1 %vm86_vm3, %v8740_v35  ;;  %8831 = vmatprep.mubr.msk.f32.mxu1 %vm9099_vm13, %v10825_v24 }
 0x65b   :  { %8834 = vmatprep.subr.mxu1 %v10825_v24 }
 0x65d   :  { %8832 = vmatmul.mubr.msk.f32.vlgmr.msra.gmra.mxu1 %vm83_vm4, %v9917_v54 }
 0x65e   :  { %8836 = vmatprep.mubr.msk.f32.mxu1 %vm9099_vm13, %v10825_v24 }
 0x719   :  { %v9957_v43 = vpop.f32.mrf.mxu1 }
 0x71a   :  { %10827 = vst [vmem:[#allocation19_spill] sm:$0xff] %v9957_v43 }
 0x71b   :  { %v8828_v17 = vpop.f32.mrf.mxu1 }
 0x71d   :  { %v3559_v56 = vpop.f32.mrf.mxu1 }
 0x71e   :  { %v3560_v5 = vadd.f32 %v3559_v56, %v9959_v10 }
 0x71f   :  { %v8833_v42 = vpop.f32.mrf.mxu1 }
 0x720   :  { %vm3563_vm14 = vcmp.gt.f32.partialorder %v3560_v5, 0.0  ;;  %v3564_v6 = vmul.f32 0.1, %v3560_v5 }
 0x722   :  { %v9962_v1 = vsel %vm3563_vm14, %v3560_v5, %v3564_v6 }
 0x723   :  { %3567 = vrot.lane.b32.xlu0 %v9962_v1, %s9080_s13 }
 0x727   :  { %3888 = vrot.lane.b32.xlu0 %v9713_v3, %s9069_s15  ;;  %s9104_s15 = smov 73  }
 0x795   :  { %v3568_v48 = vpop.permute.xlu0 %3567 }
 0x796   :  { %v3569_v7 = vsel %vm3566_vm15, %v3568_v48, %v9962_v1 }
 0x797   :  { %3570 = vrot.lane.b32.xlu1 %v3569_v7, %s9080_s13 }
 0x79b   :  { %3573 = vrot.lane.b32.xlu1 %v9713_v3, %s9064_s11  ;;  %s9103_s11 = smov 121  }
 0x79f   :  { %3652 = vrot.lane.b32.xlu1 %v9713_v3, %s9062_s9 }
 0x7a3   :  { %3730 = vrot.lane.b32.xlu1 %v9713_v3, %s9067_s14  ;;  %s9105_s14 = smov 71  }
 0x7a7   :  { %3809 = vrot.lane.b32.xlu1 %v9713_v3, %s9070_s16  ;;  %s9106_s16 = smov 119  }
 0x809   :  { %v3571_v25 = vpop.permute.xlu1 %3570 }
 0x80a   :  { %v3572_v38 = vsel %vm3566_vm15, %v3571_v25, %v9962_v1 }
 0x80b   :  { %3968 = vrot.lane.b32.xlu1 %v3572_v38, %s9060_s7  ;;  %3576 = vrot.lane.b32.xlu0 %v3572_v38, %s9076_s26 }
 0x80f   :  { %4047 = vrot.lane.b32.xlu1 %v3572_v38, %s9103_s11  ;;  %3654 = vrot.lane.b32.xlu0 %v3572_v38, %s9104_s15 }
 0x813   :  { %4126 = vrot.lane.b32.xlu1 %v3572_v38, %s9059_s30  ;;  %3732 = vrot.lane.b32.xlu0 %v3572_v38, %s9105_s14 }
 0x817   :  { %4205 = vrot.lane.b32.xlu1 %v3572_v38, %s9106_s16  ;;  %3811 = vrot.lane.b32.xlu0 %v3572_v38, %s9107_s10 }
 0x81b   :  { %4283 = vperm.xlu1 %9010, %v9018_v0   ;;  %3966 = vrot.lane.b32.xlu0 %v9713_v3, %s9072_s20  ;;  %s10830_s20 = smov 80  }
 0x81f   :  { %4045 = vrot.lane.b32.xlu0 %v9713_v3, %s9071_s19  ;;  %4398 = vrot.lane.b32.xlu1 %v9994_v28, %s9055_s24 }
 0x823   :  { %4124 = vrot.lane.b32.xlu0 %v9713_v3, %s10829_s8  ;;  %4400 = vrot.lane.b32.xlu1 %v10002_v30, %s9055_s24 }
 0x827   :  { %4203 = vrot.lane.b32.xlu0 %v9713_v3, %s10830_s20  ;;  %4392 = vrot.lane.b32.xlu1 %v9994_v28, %s9054_s23 }
 0x82b   :  { %4293 = vperm.xlu0 %9011, %v9018_v0   ;;  %4558 = vrot.lane.b32.xlu1 %v9994_v28, %s9056_s27  ;;  %v10048_v0 = vpop.permute.xlu0 %3888 }
 0x82c   :  { %10837 = vst [vmem:[#allocation25_spill] sm:$0xff] %v10048_v0 }
 0x82f   :  { %4304 = vrot.lane.b32.xlu0 %v9917_v54, %s9057_s28  ;;  %4643 = vrot.lane.b32.xlu1 %v9994_v28, %s9058_s29  ;;  %s10832_s28 = smov 111   ;;  %v10040_v54 = vpop.permute.xlu1 %3573 }
 0x830   :  { %10833 = vst [vmem:[#allocation21_spill] sm:$0xff] %v10040_v54 }
 0x833   :  { %4394 = vrot.lane.b32.xlu0 %v10002_v30, %s9054_s23  ;;  %4805 = vrot.lane.b32.xlu1 %v9994_v28, %s9060_s7  ;;  %v10042_v32 = vpop.permute.xlu1 %3652 }
 0x834   :  { %10834 = vst [vmem:[#allocation22_spill] sm:$0xff] %v10042_v32 }
 0x837   :  { %4560 = vrot.lane.b32.xlu0 %v10002_v30, %s9056_s27  ;;  %4890 = vrot.lane.b32.xlu1 %v9994_v28, %s10831_s0  ;;  %v10044_v37 = vpop.permute.xlu1 %3730 }
 0x838   :  { %10835 = vst [vmem:[#allocation23_spill] sm:$0xff] %v10044_v37 }
 0x83b   :  { %4645 = vrot.lane.b32.xlu0 %v10002_v30, %s9058_s29  ;;  %4975 = vrot.lane.b32.xlu1 %v9994_v28, %s9062_s9  ;;  %v10046_v8 = vpop.permute.xlu1 %3809 }
 0x83c   :  { %10836 = vst [vmem:[#allocation24_spill] sm:$0xff] %v10046_v8 }
 0x83f   :  { %4807 = vrot.lane.b32.xlu0 %v10002_v30, %s9060_s7  ;;  %5060 = vrot.lane.b32.xlu1 %v9994_v28, %s10832_s28 }
 0x843   :  { %4892 = vrot.lane.b32.xlu0 %v10002_v30, %s10831_s0 }
 0x847   :  { %4977 = vrot.lane.b32.xlu0 %v10002_v30, %s9062_s9 }
 0x84b   :  { %5062 = vrot.lane.b32.xlu0 %v10002_v30, %s10832_s28 }
 0x87d   :  { %v3969_v44 = vpop.permute.xlu1 %3968  ;;  %v3577_v36 = vpop.permute.xlu0 %3576 }
 0x87e   :  { %8835 = vmatpush3.msk.msra.mxu1 %vm86_vm3, %v3577_v36 }
 0x87f   :  { %8837 = vmatmul.mubr.msk.f32.vlgmr.msra.gmra.mxu1 %vm83_vm4, %v10040_v54  ;;  %8839 = vmatprep.subr.mxu1 %v10825_v24 }
 0x880   :  { %8841 = vmatprep.mubr.msk.f32.mxu1 %vm9099_vm13, %v10825_v24 }
 0x881   :  { %v4048_v35 = vpop.permute.xlu1 %4047  ;;  %v3655_v17 = vpop.permute.xlu0 %3654 }
 0x882   :  { %8840 = vmatpush3.msk.msra.mxu1 %vm86_vm3, %v3655_v17  ;;  %8865 = vmatpush3.msk.msra.mxu0 %vm86_vm3, %v4048_v35 }
 0x883   :  { %8842 = vmatmul.mubr.msk.f32.vlgmr.msra.gmra.mxu1 %vm83_vm4, %v10042_v32  ;;  %8844 = vmatprep.subr.mxu1 %v10825_v24 }
 0x884   :  { %8846 = vmatprep.mubr.msk.f32.mxu1 %vm9099_vm13, %v10825_v24  ;;  %8874 = vmatprep.subr.mxu0 %v10825_v24 }
 0x885   :  { %v3733_v56 = vpop.permute.xlu0 %3732  ;;  %v4127_v42 = vpop.permute.xlu1 %4126 }
 0x886   :  { %8845 = vmatpush3.msk.msra.mxu1 %vm86_vm3, %v3733_v56 }
 0x887   :  { %8847 = vmatmul.mubr.msk.f32.vlgmr.msra.gmra.mxu1 %vm83_vm4, %v10044_v37  ;;  %8849 = vmatprep.subr.mxu1 %v10825_v24 }
 0x888   :  { %8851 = vmatprep.mubr.msk.f32.mxu1 %vm9099_vm13, %v10825_v24 }
 0x889   :  { %v3812_v5 = vpop.permute.xlu0 %3811 }
 0x88a   :  { %8850 = vmatpush3.msk.msra.mxu1 %vm86_vm3, %v3812_v5 }
 0x88b   :  { %8852 = vmatmul.mubr.msk.f32.vlgmr.msra.gmra.mxu1 %vm83_vm4, %v10046_v8  ;;  %8854 = vmatprep.subr.mxu1 %v10825_v24 }
 0x88c   :  { %8855 = vmatpush3.msk.msra.mxu1 %vm86_vm3, %v9962_v1  ;;  %8856 = vmatprep.mubr.msk.f32.mxu1 %vm9099_vm13, %v10825_v24  ;;  %v4206_v1 = vpop.permute.xlu1 %4205 }
 0x88d   :  { %v10078_v6 = vpop.permute.xlu0 %3966  ;;  %8859 = vmatprep.subr.mxu1 %v10825_v24 }
 0x88e   :  { %10838 = vst [vmem:[#allocation26_spill] sm:$0xff] %v10078_v6 }
 0x88f   :  { %8857 = vmatmul.mubr.msk.f32.vlgmr.msra.gmra.mxu1 %vm83_vm4, %v10048_v0 }
 0x890   :  { %8860 = vmatpush3.msk.msra.mxu1 %vm86_vm3, %v3969_v44  ;;  %8861 = vmatprep.mubr.msk.f32.mxu1 %vm9099_vm13, %v10825_v24 }
 0x891   :  { %v10086_v48 = vpop.permute.xlu0 %4045  ;;  %8869 = vmatprep.subr.mxu1 %v10825_v24 }
 0x892   :  { %10839 = vst [vmem:[#allocation27_spill] sm:$0xff] %v10086_v48  ;;  %8867 = vmatmul.mubr.msk.f32.vlgmr.msra.gmra.mxu0 %vm83_vm4, %v10086_v48 }
 0x893   :  { %8875 = vmatpush3.msk.msra.mxu0 %vm86_vm3, %v4206_v1  ;;  %8862 = vmatmul.mubr.msk.f32.vlgmr.msra.gmra.mxu1 %vm83_vm4, %v10078_v6 }
 0x894   :  { %8870 = vmatpush3.msk.msra.mxu1 %vm86_vm3, %v4127_v42  ;;  %8871 = vmatprep.mubr.msk.f32.mxu1 %vm9099_vm13, %v10825_v24 }
 0x895   :  { %v10097_v7 = vpop.permute.xlu0 %4124  ;;  %8876 = vmatprep.mubr.msk.f32.mxu0 %vm9099_vm13, %v10825_v24  ;;  %8879 = vmatprep.subr.mxu1 %v10825_v24 }
 0x896   :  { %10840 = vst [vmem:[#allocation28_spill] sm:$0xff] %v10097_v7  ;;  %v10102_v26 = vpop.permute.xlu1 %4283 }
 0x897   :  { %8872 = vmatmul.mubr.msk.f32.vlgmr.msra.gmra.mxu1 %vm83_vm4, %v10097_v7 }
 0x898   :  { %8881 = vmatprep.mubr.msk.f32.mxu1 %vm9099_vm13, %v10825_v24 }
 0x899   :  { %v10108_v47 = vpop.permute.xlu0 %4203 }
 0x89a   :  { %10841 = vst [vmem:[#allocation29_spill] sm:$0xff] %v10108_v47  ;;  %v4399_v25 = vpop.permute.xlu1 %4398  ;;  %8877 = vmatmul.mubr.msk.f32.vlgmr.msra.gmra.mxu0 %vm83_vm4, %v10108_v47 }
 0x89b   :  { %4474 = vmatprep.mubr.f32.mxu0 %v10825_v24 }
 0x89e   :  { %v4401_v38 = vpop.permute.xlu1 %4400 }
 0x89f   :  { %v4402_v44 = vsel %vm77_vm1, %v4399_v25, %v4401_v38  ;;  %v4403_v36 = vsel %vm77_vm1, %v4401_v38, %v4399_v25 }
 0x8a0   :  { %8573 = vmatprep.subr.msk.mxu0 %vm86_vm3, %v4402_v44 }
 0x8a1   :  { %8574 = vmatpush1.msk.msra.mxu0 %vm86_vm3, %v4403_v36 }
 0x8a2   :  { %8575 = vmatmul.mubr.msk.f32.vlgmr.msra.gmra.mxu0 %vm83_vm4, %v9247_v29  ;;  %v4393_v35 = vpop.permute.xlu1 %4392 }
 0x8a3   :  { %4634 = vmatprep.mubr.f32.mxu0 %v10825_v24 }
 0x8a6   :  { %v10122_v17 = vpop.permute.xlu0 %4293  ;;  %v4559_v56 = vpop.permute.xlu1 %4558 }
 0x8aa   :  { %v10124_v5 = vpop.permute.xlu0 %4304  ;;  %v4644_v42 = vpop.permute.xlu1 %4643 }
 0x8ae   :  { %v4395_v1 = vpop.permute.xlu0 %4394  ;;  %v4806_v29 = vpop.permute.xlu1 %4805 }
 0x8af   :  { %v10128_v25 = vsel %vm70_vm2, %v4393_v35, %v4395_v1  ;;  %v10132_v38 = vsel %vm70_vm2, %v4395_v1, %v4393_v35 }
 0x8b2   :  { %v4561_v44 = vpop.permute.xlu0 %4560 }
 0x8b3   :  { %v4562_v36 = vsel %vm247_vm5, %v4559_v56, %v4561_v44  ;;  %v4563_v7 = vsel %vm247_vm5, %v4561_v44, %v4559_v56 }
 0x8b4   :  { %8579 = vmatprep.subr.msk.mxu0 %vm86_vm3, %v4562_v36 }
 0x8b5   :  { %8580 = vmatpush1.msk.msra.mxu0 %vm86_vm3, %v4563_v7  ;;  %v4891_v7 = vpop.permute.xlu1 %4890 }
 0x8b6   :  { %8581 = vmatmul.mubr.msk.f32.vlgmr.msra.gmra.mxu0 %vm83_vm4, %v9263_v34  ;;  %v4646_v43 = vpop.permute.xlu0 %4645  ;;  %8585 = vmatprep.subr.msk.mxu0 %vm86_vm3, %v10002_v30 }
 0x8b7   :  { %v10146_v35 = vsel %vm337_vm6, %v4644_v42, %v4646_v43  ;;  %v10150_v1 = vsel %vm337_vm6, %v4646_v43, %v4644_v42  ;;  %8586 = vmatpush1.msk.msra.mxu0 %vm86_vm3, %v9994_v28  ;;  %4796 = vmatprep.mubr.f32.mxu0 %v10825_v24 }
 0x8b9   :  { %v4976_v42 = vpop.permute.xlu1 %4975 }
 0x8ba   :  { %8587 = vmatmul.mubr.msk.f32.vlgmr.msra.gmra.mxu0 %vm83_vm4, %v9284_v40  ;;  %v4808_v34 = vpop.permute.xlu0 %4807 }
 0x8bb   :  { %v10159_v56 = vsel %vm508_vm7, %v4806_v29, %v4808_v34  ;;  %v4810_v44 = vsel %vm508_vm7, %v4808_v34, %v4806_v29  ;;  %4966 = vmatprep.mubr.f32.mxu0 %v10825_v24 }
 0x8bd   :  { %v5061_v0 = vpop.permute.xlu1 %5060 }
 0x8be   :  { %v4893_v43 = vpop.permute.xlu0 %4892 }
 0x8bf   :  { %v4894_v36 = vsel %vm598_vm8, %v4891_v7, %v4893_v43  ;;  %v4895_v6 = vsel %vm598_vm8, %v4893_v43, %v4891_v7 }
 0x8c0   :  { %8591 = vmatprep.subr.msk.mxu0 %vm86_vm3, %v4895_v6 }
 0x8c1   :  { %8592 = vmatpush1.msk.msra.mxu0 %vm86_vm3, %v4894_v36 }
 0x8c2   :  { %8593 = vmatmul.mubr.msk.f32.vlgmr.msra.gmra.mxu0 %vm83_vm4, %v9308_v50  ;;  %v4978_v40 = vpop.permute.xlu0 %4977 }
 0x8c3   :  { %v4979_v29 = vsel %vm688_vm9, %v4976_v42, %v4978_v40  ;;  %v4980_v34 = vsel %vm688_vm9, %v4978_v40, %v4976_v42  ;;  %5136 = vmatprep.mubr.f32.mxu0 %v10825_v24 }
 0x8c6   :  { %v5063_v47 = vpop.permute.xlu0 %5062 }
 0x8c7   :  { %v5064_v7 = vsel %vm778_vm10, %v5061_v0, %v5063_v47  ;;  %v5065_v6 = vsel %vm778_vm10, %v5063_v47, %v5061_v0 }
 0x8c8   :  { %8597 = vmatprep.subr.msk.mxu0 %vm86_vm3, %v5065_v6 }
 0x8c9   :  { %8598 = vmatpush1.msk.msra.mxu0 %vm86_vm3, %v5064_v7 }
 0x8ca   :  { %8599 = vmatmul.mubr.msk.f32.vlgmr.msra.gmra.mxu0 %vm83_vm4, %v9326_v58 }
 0x8cb   :  { %5314 = vmatprep.mubr.f32.mxu0 %v10825_v24 }
 0x93f   :  { %v3648_v50 = vpop.f32.mrf.mxu1 }
 0x941   :  { %v8838_v43 = vpop.f32.mrf.mxu1 }
 0x943   :  { %v3726_v42 = vpop.f32.mrf.mxu1 }
 0x944   :  { %v3727_v37 = vadd.f32 %v3726_v42, %v3648_v50 }
 0x945   :  { %v8843_v36 = vpop.f32.mrf.mxu1 }
 0x947   :  { %v3804_v40 = vpop.f32.mrf.mxu1 }
 0x948   :  { %v3808_v54 = vadd.f32 %v3804_v40, %v3727_v37 }
 0x949   :  { %v8848_v8 = vpop.f32.mrf.mxu1 }
 0x94b   :  { %v3883_v48 = vpop.f32.mrf.mxu1 }
 0x94c   :  { %v3887_v47 = vadd.f32 %v3883_v48, %v3808_v54 }
 0x94d   :  { %v8853_v32 = vpop.f32.mrf.mxu1 }
 0x94f   :  { %v3961_v0 = vpop.f32.mrf.mxu1 }
 0x950   :  { %v3965_v10 = vadd.f32 %v3961_v0, %v3887_v47 }
 0x951   :  { %v8858_v6 = vpop.f32.mrf.mxu1 }
 0x952   :  { %v4119_v7 = vpop.f32.mrf.mxu0 }
 0x953   :  { %v4040_v18 = vpop.f32.mrf.mxu1 }
 0x954   :  { %v4044_v11 = vadd.f32 %v4040_v18, %v3965_v10  ;;  %v8868_v58 = vpop.f32.mrf.mxu0 }
 0x955   :  { %v8863_v9 = vpop.f32.mrf.mxu1 }
 0x956   :  { %v4123_v3 = vadd.f32 %v4119_v7, %v4044_v11 }
 0x957   :  { %v4198_v31 = vpop.f32.mrf.mxu1 }
 0x958   :  { %v4202_v43 = vadd.f32 %v4198_v31, %v4123_v3 }
 0x959   :  { %v8873_v27 = vpop.f32.mrf.mxu1 }
 0x95a   :  { %v4277_v36 = vpop.f32.mrf.mxu0 }
 0x95b   :  { %v4281_v14 = vadd.f32 %v4277_v36, %v4202_v43 }
 0x95c   :  { %v8878_v8 = vpop.f32.mrf.mxu0 }
 0x95d   :  { %v4286_v32 = vadd.f32 %v10102_v26, %v4281_v14 }
 0x95f   :  { %v4296_v54 = vsel %vm10806_vm0, %v10122_v17, %v4286_v32 }
 0x960   :  { %v4298_v37 = vmul.f32 0.1, %v4296_v54  ;;  %vm4297_vm14 = vcmp.gt.f32.partialorder %v4296_v54, 0.0 }
 0x962   :  { %v4299_v18 = vsel %vm4297_vm14, %v4296_v54, %v4298_v37 }
 0x963   :  { %8880 = vmatpush3.msk.msra.mxu1 %vm86_vm3, %v4299_v18 }
 0x964   :  { %8882 = vmatmul.mubr.msk.f32.vlgmr.msra.gmra.mxu1 %vm83_vm4, %v10124_v5  ;;  %8576 = vmatprep.subr.msk.mxu1 %vm86_vm3, %v10128_v25 }
 0x965   :  { %8577 = vmatpush1.msk.msra.mxu1 %vm86_vm3, %v10132_v38  ;;  %4551 = vmatprep.mubr.f32.mxu1 %v10825_v24 }
 0x966   :  { %8582 = vmatprep.subr.msk.mxu1 %vm86_vm3, %v10146_v35 }
 0x968   :  { %8578 = vmatmul.mubr.msk.f32.vlgmr.msra.gmra.mxu1 %vm83_vm4, %v9709_v2 }
 0x969   :  { %8583 = vmatpush1.msk.msra.mxu1 %vm86_vm3, %v10150_v1  ;;  %4719 = vmatprep.mubr.f32.mxu1 %v10825_v24 }
 0x96a   :  { %8588 = vmatprep.subr.msk.mxu1 %vm86_vm3, %v4810_v44 }
 0x96c   :  { %8584 = vmatmul.mubr.msk.f32.vlgmr.msra.gmra.mxu1 %vm83_vm4, %v9278_v39  ;;  %v4476_v39 = vpop.f32.mrf.mxu0 }
 0x96d   :  { %8589 = vmatpush1.msk.msra.mxu1 %vm86_vm3, %v10159_v56  ;;  %4881 = vmatprep.mubr.f32.mxu1 %v10825_v24 }
 0x96e   :  { %8594 = vmatprep.subr.msk.mxu1 %vm86_vm3, %v4980_v34  ;;  %v4478_v14 = vpop.f32.mrf.mxu0 }
 0x970   :  { %8590 = vmatmul.mubr.msk.f32.vlgmr.msra.gmra.mxu1 %vm83_vm4, %v9302_v49 }
 0x971   :  { %8595 = vmatpush1.msk.msra.mxu1 %vm86_vm3, %v4979_v29  ;;  %5051 = vmatprep.mubr.f32.mxu1 %v10825_v24 }
 0x974   :  { %8596 = vmatmul.mubr.msk.f32.vlgmr.msra.gmra.mxu1 %vm83_vm4, %v9328_v59 }
 0x975   :  { %5237 = vmatprep.mubr.f32.mxu1 %v10825_v24 }
 0x976   :  { %v4636_v27 = vpop.f32.mrf.mxu0 }
 0x978   :  { %v4638_v31 = vpop.f32.mrf.mxu0 }
 0x97a   :  { %v4798_v9 = vpop.f32.mrf.mxu0 }
 0x97c   :  { %v4800_v38 = vpop.f32.mrf.mxu0 }
 0x982   :  { %v4968_v59 = vpop.f32.mrf.mxu0 }
 0x984   :  { %v4970_v0 = vpop.f32.mrf.mxu0 }
 0x98a   :  { %v5138_v58 = vpop.f32.mrf.mxu0 }
 0x98c   :  { %v5140_v18 = vpop.f32.mrf.mxu0 }
 0xa24   :  { %v10220_v2 = vpop.f32.mrf.mxu1 }
 0xa26   :  { %v8883_v3 = vpop.f32.mrf.mxu1 }
 0xa28   :  { %v4553_v11 = vpop.f32.mrf.mxu1 }
 0xa29   :  { %v4554_v10 = vadd.f32 %v4553_v11, %v4476_v39 }
 0xa2a   :  { %v4555_v49 = vpop.f32.mrf.mxu1 }
 0xa2b   :  { %v4556_v48 = vadd.f32 %v4555_v49, %v4478_v14  ;;  %v4641_v25 = vadd.f32 %v4636_v27, %v4554_v10 }
 0xa2c   :  { %v4721_v35 = vpop.f32.mrf.mxu1 }
 0xa2d   :  { %v4726_v1 = vadd.f32 %v4721_v35, %v4641_v25  ;;  %v4642_v56 = vadd.f32 %v4638_v31, %v4556_v48 }
 0xa2e   :  { %v4723_v44 = vpop.f32.mrf.mxu1 }
 0xa2f   :  { %v4727_v29 = vadd.f32 %v4723_v44, %v4642_v56  ;;  %v4803_v34 = vadd.f32 %v4798_v9, %v4726_v1 }
 0xa30   :  { %v4883_v50 = vpop.f32.mrf.mxu1 }
 0xa31   :  { %v4888_v42 = vadd.f32 %v4883_v50, %v4803_v34  ;;  %v4804_v40 = vadd.f32 %v4800_v38, %v4727_v29 }
 0xa32   :  { %v4885_v47 = vpop.f32.mrf.mxu1 }
 0xa33   :  { %v4889_v6 = vadd.f32 %v4885_v47, %v4804_v40  ;;  %v4973_v7 = vadd.f32 %v4968_v59, %v4888_v42 }
 0xa34   :  { %v5053_v43 = vpop.f32.mrf.mxu1 }
 0xa35   :  { %v5058_v36 = vadd.f32 %v5053_v43, %v4973_v7  ;;  %v4974_v8 = vadd.f32 %v4970_v0, %v4889_v6 }
 0xa36   :  { %v5055_v32 = vpop.f32.mrf.mxu1 }
 0xa37   :  { %v5143_v54 = vadd.f32 %v5138_v58, %v5058_v36  ;;  %v5059_v37 = vadd.f32 %v5055_v32, %v4974_v8 }
 0xa39   :  { %v5145_v39 = vadd.f32 %v5143_v54, %v9347_v41  ;;  %v5144_v14 = vadd.f32 %v5140_v18, %v5059_v37 }
 0xa3b   :  { %v5147_v27 = vsel %vm888_vm11, %v9350_v45, %v5145_v39  ;;  %v5146_v31 = vadd.f32 %v5144_v14, %v9347_v41 }
 0xa3c   :  { %vm5149_vm14 = vcmp.gt.f32.partialorder %v5147_v27, 0.0  ;;  %v5151_v3 = vmul.f32 0.1, %v5147_v27 }
 0xa3d   :  { %v5148_v9 = vsel %vm9360_vm12, %v9350_v45, %v5146_v31 }
 0xa3e   :  { %v5153_v11 = vsel %vm5149_vm14, %v5147_v27, %v5151_v3  ;;  %vm5150_vm0 = vcmp.gt.f32.partialorder %v5148_v9, 0.0  ;;  %v5152_v10 = vmul.f32 0.1, %v5148_v9 }
 0xa3f   :  { %5161 = vrot.lane.b32.xlu1 %v5153_v11, %s9055_s24 }
 0xa40   :  { %v5154_v49 = vsel %vm5150_vm0, %v5148_v9, %v5152_v10 }
 0xa41   :  { %5163 = vrot.lane.b32.xlu0 %v5154_v49, %s9055_s24 }
 0xa43   :  { %5155 = vrot.lane.b32.xlu1 %v5153_v11, %s9054_s23 }
 0xa45   :  { %5157 = vrot.lane.b32.xlu0 %v5154_v49, %s9054_s23 }
 0xa47   :  { %5321 = vrot.lane.b32.xlu1 %v5153_v11, %s9056_s27 }
 0xa49   :  { %5323 = vrot.lane.b32.xlu0 %v5154_v49, %s9056_s27 }
 0xa4b   :  { %5406 = vrot.lane.b32.xlu1 %v5153_v11, %s9058_s29 }
 0xa4d   :  { %5408 = vrot.lane.b32.xlu0 %v5154_v49, %s9058_s29 }
 0xa4f   :  { %5570 = vrot.lane.b32.xlu1 %v5153_v11, %s9060_s7 }
 0xa51   :  { %5572 = vrot.lane.b32.xlu0 %v5154_v49, %s9060_s7 }
 0xa53   :  { %5655 = vrot.lane.b32.xlu1 %v5153_v11, %s10831_s0 }
 0xa55   :  { %5657 = vrot.lane.b32.xlu0 %v5154_v49, %s10831_s0 }
 0xa57   :  { %5740 = vrot.lane.b32.xlu1 %v5153_v11, %s9062_s9 }
 0xa59   :  { %5742 = vrot.lane.b32.xlu0 %v5154_v49, %s9062_s9 }
 0xa5b   :  { %5825 = vrot.lane.b32.xlu1 %v5153_v11, %s10832_s28 }
 0xa5d   :  { %5827 = vrot.lane.b32.xlu0 %v5154_v49, %s10832_s28 }
 0xab1   :  { %v5162_v41 = vpop.permute.xlu1 %5161 }
 0xab3   :  { %v5164_v45 = vpop.permute.xlu0 %5163 }
 0xab4   :  { %v5165_v48 = vsel %vm77_vm1, %v5162_v41, %v5164_v45  ;;  %v5166_v25 = vsel %vm77_vm1, %v5164_v45, %v5162_v41 }
 0xab5   :  { %8600 = vmatprep.subr.msk.mxu1 %vm86_vm3, %v5165_v48  ;;  %v5156_v38 = vpop.permute.xlu1 %5155 }
 0xab6   :  { %8601 = vmatpush1.msk.msra.mxu1 %vm86_vm3, %v5166_v25 }
 0xab7   :  { %v5158_v35 = vpop.permute.xlu0 %5157  ;;  %8602 = vmatmul.mubr.msk.f32.vlgmr.msra.gmra.mxu1 %vm83_vm4, %v9409_v57 }
 0xab8   :  { %v5159_v1 = vsel %vm70_vm2, %v5156_v38, %v5158_v35  ;;  %v5160_v56 = vsel %vm70_vm2, %v5158_v35, %v5156_v38  ;;  %5397 = vmatprep.mubr.f32.mxu1 %v10825_v24 }
 0xab9   :  { %8603 = vmatprep.subr.msk.mxu0 %vm86_vm3, %v5159_v1  ;;  %v5322_v59 = vpop.permute.xlu1 %5321 }
 0xaba   :  { %8604 = vmatpush1.msk.msra.mxu0 %vm86_vm3, %v5160_v56 }
 0xabb   :  { %v5324_v44 = vpop.permute.xlu0 %5323  ;;  %8605 = vmatmul.mubr.msk.f32.vlgmr.msra.gmra.mxu0 %vm83_vm4, %v9411_v60 }
 0xabc   :  { %v5325_v57 = vsel %vm247_vm5, %v5322_v59, %v5324_v44  ;;  %v5326_v29 = vsel %vm247_vm5, %v5324_v44, %v5322_v59  ;;  %5482 = vmatprep.mubr.f32.mxu0 %v10825_v24 }
 0xabd   :  { %8606 = vmatprep.subr.msk.mxu1 %vm86_vm3, %v5325_v57  ;;  %v5407_v34 = vpop.permute.xlu1 %5406 }
 0xabe   :  { %8607 = vmatpush1.msk.msra.mxu1 %vm86_vm3, %v5326_v29 }
 0xabf   :  { %v5409_v50 = vpop.permute.xlu0 %5408  ;;  %8608 = vmatmul.mubr.msk.f32.vlgmr.msra.gmra.mxu1 %vm83_vm4, %v9413_v61  ;;  %8612 = vmatprep.subr.msk.mxu1 %vm86_vm3, %v5154_v49 }
 0xac0   :  { %v5410_v60 = vsel %vm337_vm6, %v5407_v34, %v5409_v50  ;;  %v5411_v42 = vsel %vm337_vm6, %v5409_v50, %v5407_v34  ;;  %8613 = vmatpush1.msk.msra.mxu1 %vm86_vm3, %v5153_v11  ;;  %5561 = vmatprep.mubr.f32.mxu1 %v10825_v24 }
 0xac1   :  { %8609 = vmatprep.subr.msk.mxu0 %vm86_vm3, %v5410_v60  ;;  %v5571_v40 = vpop.permute.xlu1 %5570 }
 0xac2   :  { %8610 = vmatpush1.msk.msra.mxu0 %vm86_vm3, %v5411_v42 }
 0xac3   :  { %v5573_v0 = vpop.permute.xlu0 %5572  ;;  %8611 = vmatmul.mubr.msk.f32.vlgmr.msra.gmra.mxu0 %vm83_vm4, %v9415_v62  ;;  %8614 = vmatmul.mubr.msk.f32.vlgmr.msra.gmra.mxu1 %vm83_vm4, %v9417_v63 }
 0xac4   :  { %v5574_v61 = vsel %vm508_vm7, %v5571_v40, %v5573_v0  ;;  %v5575_v47 = vsel %vm508_vm7, %v5573_v0, %v5571_v40  ;;  %5646 = vmatprep.mubr.f32.mxu0 %v10825_v24  ;;  %5731 = vmatprep.mubr.f32.mxu1 %v10825_v24 }
 0xac5   :  { %8615 = vmatprep.subr.msk.mxu0 %vm86_vm3, %v5575_v47  ;;  %v5656_v6 = vpop.permute.xlu1 %5655 }
 0xac6   :  { %8616 = vmatpush1.msk.msra.mxu0 %vm86_vm3, %v5574_v61 }
 0xac7   :  { %v5658_v7 = vpop.permute.xlu0 %5657  ;;  %8617 = vmatmul.mubr.msk.f32.vlgmr.msra.gmra.mxu0 %vm83_vm4, %v9419_v4 }
 0xac8   :  { %v5659_v62 = vsel %vm598_vm8, %v5656_v6, %v5658_v7  ;;  %v5660_v63 = vsel %vm598_vm8, %v5658_v7, %v5656_v6  ;;  %5816 = vmatprep.mubr.f32.mxu0 %v10825_v24 }
 0xac9   :  { %8618 = vmatprep.subr.msk.mxu1 %vm86_vm3, %v5660_v63  ;;  %v5741_v58 = vpop.permute.xlu1 %5740 }
 0xaca   :  { %8619 = vmatpush1.msk.msra.mxu1 %vm86_vm3, %v5659_v62 }
 0xacb   :  { %v5743_v43 = vpop.permute.xlu0 %5742  ;;  %8620 = vmatmul.mubr.msk.f32.vlgmr.msra.gmra.mxu1 %vm83_vm4, %v9451_v33 }
 0xacc   :  { %v5744_v4 = vsel %vm688_vm9, %v5741_v58, %v5743_v43  ;;  %v5745_v36 = vsel %vm688_vm9, %v5743_v43, %v5741_v58  ;;  %5901 = vmatprep.mubr.f32.mxu1 %v10825_v24 }
 0xacd   :  { %8621 = vmatprep.subr.msk.mxu0 %vm86_vm3, %v5745_v36  ;;  %v5826_v8 = vpop.permute.xlu1 %5825 }
 0xace   :  { %8622 = vmatpush1.msk.msra.mxu0 %vm86_vm3, %v5744_v4 }
 0xacf   :  { %v5828_v32 = vpop.permute.xlu0 %5827  ;;  %8623 = vmatmul.mubr.msk.f32.vlgmr.msra.gmra.mxu0 %vm83_vm4, %v9489_v51 }
 0xad0   :  { %v5829_v33 = vsel %vm778_vm10, %v5826_v8, %v5828_v32  ;;  %v5830_v54 = vsel %vm778_vm10, %v5828_v32, %v5826_v8  ;;  %6004 = vmatprep.mubr.f32.mxu0 %v10825_v24 }
 0xad1   :  { %8624 = vmatprep.subr.msk.mxu1 %vm86_vm3, %v5830_v54 }
 0xad2   :  { %8625 = vmatpush1.msk.msra.mxu1 %vm86_vm3, %v5829_v33 }
 0xad3   :  { %8626 = vmatmul.mubr.msk.f32.vlgmr.msra.gmra.mxu1 %vm83_vm4, %v9501_v55 }
 0xad4   :  { %6081 = vmatprep.mubr.f32.mxu1 %v10825_v24 }
 0xb77   :  { %v5239_v37 = vpop.f32.mrf.mxu1 }
 0xb79   :  { %v5241_v18 = vpop.f32.mrf.mxu1 }
 0xb7b   :  { %v5316_v51 = vpop.f32.mrf.mxu0 }
 0xb7c   :  { %v5317_v31 = vadd.f32 %v5316_v51, %v5239_v37 }
 0xb7d   :  { %v5318_v14 = vpop.f32.mrf.mxu0 }
 0xb7e   :  { %v5319_v9 = vadd.f32 %v5318_v14, %v5241_v18 }
 0xb7f   :  { %v5399_v39 = vpop.f32.mrf.mxu1 }
 0xb80   :  { %v5404_v11 = vadd.f32 %v5399_v39, %v5317_v31 }
 0xb81   :  { %v5401_v27 = vpop.f32.mrf.mxu1 }
 0xb82   :  { %v5405_v41 = vadd.f32 %v5401_v27, %v5319_v9 }
 0xb83   :  { %v5484_v3 = vpop.f32.mrf.mxu0  ;;  %v5563_v10 = vpop.f32.mrf.mxu1 }
 0xb84   :  { %v5489_v45 = vadd.f32 %v5484_v3, %v5404_v11 }
 0xb85   :  { %v5486_v49 = vpop.f32.mrf.mxu0  ;;  %v5565_v25 = vpop.f32.mrf.mxu1 }
 0xb86   :  { %v5490_v48 = vadd.f32 %v5486_v49, %v5405_v41  ;;  %v5568_v55 = vadd.f32 %v5563_v10, %v5489_v45 }
 0xb87   :  { %v5648_v38 = vpop.f32.mrf.mxu0 }
 0xb88   :  { %v5569_v1 = vadd.f32 %v5565_v25, %v5490_v48  ;;  %v5653_v59 = vadd.f32 %v5648_v38, %v5568_v55  ;;  %v10842_v25 = vld [vmem:[#allocation2_spill] sm:$0xff] }
 0xb89   :  { %v5650_v56 = vpop.f32.mrf.mxu0 }
 0xb8a   :  { %v5654_v29 = vadd.f32 %v5650_v56, %v5569_v1  ;;  %v10843_v1 = vld [vmem:[#allocation3_spill] sm:$0xff] }
 0xb8b   :  { %v5733_v35 = vpop.f32.mrf.mxu1 }
 0xb8c   :  { %v5738_v34 = vadd.f32 %v5733_v35, %v5653_v59 }
 0xb8d   :  { %v5735_v44 = vpop.f32.mrf.mxu1 }
 0xb8e   :  { %v5739_v60 = vadd.f32 %v5735_v44, %v5654_v29 }
 0xb8f   :  { %v5818_v57 = vpop.f32.mrf.mxu0 }
 0xb90   :  { %v5823_v42 = vadd.f32 %v5818_v57, %v5738_v34  ;;  %v10844_v57 = vld [vmem:[#allocation4_spill] sm:$0xff] }
 0xb91   :  { %v5820_v50 = vpop.f32.mrf.mxu0 }
 0xb92   :  { %v5824_v0 = vadd.f32 %v5820_v50, %v5739_v60 }
 0xb93   :  { %v5903_v40 = vpop.f32.mrf.mxu1 }
 0xb94   :  { %v5908_v61 = vadd.f32 %v5903_v40, %v5823_v42 }
 0xb95   :  { %v5905_v47 = vpop.f32.mrf.mxu1 }
 0xb96   :  { %v5910_v6 = vadd.f32 %v5908_v61, %v9512_v46  ;;  %v5909_v7 = vadd.f32 %v5905_v47, %v5824_v0 }
 0xb98   :  { %v5912_v62 = vsel %vm888_vm11, %v9514_v53, %v5910_v6  ;;  %v5911_v63 = vadd.f32 %v5909_v7, %v9512_v46 }
 0xb99   :  { %v5914_v58 = vadd.f32 %v9994_v28, %v5912_v62 }
 0xb9a   :  { %v5913_v43 = vsel %vm9360_vm12, %v9514_v53, %v5911_v63 }
 0xb9b   :  { %vm5916_vm0 = vcmp.gt.f32.partialorder %v5914_v58, 0.0  ;;  %v5918_v4 = vmul.f32 0.1, %v5914_v58  ;;  %v5915_v36 = vadd.f32 %v5913_v43, %v10002_v30 }
 0xb9d   :  { %v10333_v8 = vsel %vm5916_vm0, %v5914_v58, %v5918_v4  ;;  %vm5917_vm14 = vcmp.gt.f32.partialorder %v5915_v36, 0.0  ;;  %v5919_v32 = vmul.f32 0.1, %v5915_v36 }
 0xb9e   :  { %5928 = vrot.lane.b32.xlu1 %v10333_v8, %s9055_s24 }
 0xb9f   :  { %v10337_v33 = vsel %vm5917_vm14, %v5915_v36, %v5919_v32 }
 0xba0   :  { %5930 = vrot.lane.b32.xlu0 %v10337_v33, %s9055_s24 }
 0xba2   :  { %5922 = vrot.lane.b32.xlu1 %v10333_v8, %s9054_s23 }
 0xba4   :  { %5924 = vrot.lane.b32.xlu0 %v10337_v33, %s9054_s23 }
 0xba6   :  { %6088 = vrot.lane.b32.xlu1 %v10333_v8, %s9056_s27 }
 0xba8   :  { %6090 = vrot.lane.b32.xlu0 %v10337_v33, %s9056_s27 }
 0xbaa   :  { %6173 = vrot.lane.b32.xlu1 %v10333_v8, %s9058_s29 }
 0xbac   :  { %6175 = vrot.lane.b32.xlu0 %v10337_v33, %s9058_s29 }
 0xbae   :  { %6337 = vrot.lane.b32.xlu1 %v10333_v8, %s9060_s7 }
 0xbb0   :  { %6339 = vrot.lane.b32.xlu0 %v10337_v33, %s9060_s7 }
 0xbb2   :  { %6422 = vrot.lane.b32.xlu1 %v10333_v8, %s10831_s0 }
 0xbb4   :  { %6424 = vrot.lane.b32.xlu0 %v10337_v33, %s10831_s0 }
 0xbb6   :  { %6507 = vrot.lane.b32.xlu1 %v10333_v8, %s9062_s9 }
 0xbb8   :  { %6509 = vrot.lane.b32.xlu0 %v10337_v33, %s9062_s9 }
 0xbba   :  { %6592 = vrot.lane.b32.xlu1 %v10333_v8, %s10832_s28 }
 0xbbc   :  { %6594 = vrot.lane.b32.xlu0 %v10337_v33, %s10832_s28 }
 0xc10   :  { %v5929_v46 = vpop.permute.xlu1 %5928 }
 0xc12   :  { %v5931_v53 = vpop.permute.xlu0 %5930 }
 0xc13   :  { %v5932_v28 = vsel %vm77_vm1, %v5929_v46, %v5931_v53  ;;  %v5933_v30 = vsel %vm77_vm1, %v5931_v53, %v5929_v46 }
 0xc14   :  { %v5923_v54 = vpop.permute.xlu1 %5922  ;;  %8627 = vmatprep.subr.msk.mxu0 %vm86_vm3, %v5932_v28 }
 0xc15   :  { %8628 = vmatpush1.msk.msra.mxu0 %vm86_vm3, %v5933_v30 }
 0xc16   :  { %8629 = vmatmul.mubr.msk.f32.vlgmr.msra.gmra.mxu0 %vm83_vm4, %v9569_v12  ;;  %v5925_v37 = vpop.permute.xlu0 %5924 }
 0xc17   :  { %v5926_v18 = vsel %vm70_vm2, %v5923_v54, %v5925_v37  ;;  %v5927_v51 = vsel %vm70_vm2, %v5925_v37, %v5923_v54  ;;  %6164 = vmatprep.mubr.f32.mxu0 %v10825_v24 }
 0xc18   :  { %v6089_v39 = vpop.permute.xlu1 %6088  ;;  %8630 = vmatprep.subr.msk.mxu1 %vm86_vm3, %v5926_v18 }
 0xc19   :  { %8631 = vmatpush1.msk.msra.mxu1 %vm86_vm3, %v5927_v51 }
 0xc1a   :  { %8632 = vmatmul.mubr.msk.f32.vlgmr.msra.gmra.mxu1 %vm83_vm4, %v9571_v13  ;;  %v6091_v14 = vpop.permute.xlu0 %6090 }
 0xc1b   :  { %v6092_v12 = vsel %vm247_vm5, %v6089_v39, %v6091_v14  ;;  %v6093_v27 = vsel %vm247_vm5, %v6091_v14, %v6089_v39  ;;  %6249 = vmatprep.mubr.f32.mxu1 %v10825_v24 }
 0xc1c   :  { %v6174_v31 = vpop.permute.xlu1 %6173  ;;  %8633 = vmatprep.subr.msk.mxu0 %vm86_vm3, %v6092_v12 }
 0xc1d   :  { %8634 = vmatpush1.msk.msra.mxu0 %vm86_vm3, %v6093_v27 }
 0xc1e   :  { %8635 = vmatmul.mubr.msk.f32.vlgmr.msra.gmra.mxu0 %vm83_vm4, %v9573_v20  ;;  %8639 = vmatprep.subr.msk.mxu0 %vm86_vm3, %v10337_v33  ;;  %v6176_v13 = vpop.permute.xlu0 %6175 }
 0xc1f   :  { %v6177_v3 = vsel %vm337_vm6, %v6174_v31, %v6176_v13  ;;  %v6178_v9 = vsel %vm337_vm6, %v6176_v13, %v6174_v31  ;;  %8640 = vmatpush1.msk.msra.mxu0 %vm86_vm3, %v10333_v8  ;;  %6328 = vmatprep.mubr.f32.mxu0 %v10825_v24 }
 0xc20   :  { %v6338_v11 = vpop.permute.xlu1 %6337  ;;  %8636 = vmatprep.subr.msk.mxu1 %vm86_vm3, %v6177_v3 }
 0xc21   :  { %8637 = vmatpush1.msk.msra.mxu1 %vm86_vm3, %v6178_v9  ;;  %v10845_v9 = vld [vmem:[#allocation5_spill] sm:$0xff] }
 0xc22   :  { %8638 = vmatmul.mubr.msk.f32.vlgmr.msra.gmra.mxu1 %vm83_vm4, %v9575_v21  ;;  %8641 = vmatmul.mubr.msk.f32.vlgmr.msra.gmra.mxu0 %vm83_vm4, %v9577_v22  ;;  %v6340_v20 = vpop.permute.xlu0 %6339 }
 0xc23   :  { %v6341_v10 = vsel %vm508_vm7, %v6338_v11, %v6340_v20  ;;  %v6342_v49 = vsel %vm508_vm7, %v6340_v20, %v6338_v11  ;;  %6413 = vmatprep.mubr.f32.mxu1 %v10825_v24  ;;  %6498 = vmatprep.mubr.f32.mxu0 %v10825_v24 }
 0xc24   :  { %v6423_v41 = vpop.permute.xlu1 %6422  ;;  %8642 = vmatprep.subr.msk.mxu1 %vm86_vm3, %v6342_v49 }
 0xc25   :  { %8643 = vmatpush1.msk.msra.mxu1 %vm86_vm3, %v6341_v10  ;;  %v10846_v10 = vld [vmem:[#allocation6_spill] sm:$0xff] }
 0xc26   :  { %8644 = vmatmul.mubr.msk.f32.vlgmr.msra.gmra.mxu1 %vm83_vm4, %v9579_v23  ;;  %v6425_v21 = vpop.permute.xlu0 %6424 }
 0xc27   :  { %v6426_v22 = vsel %vm598_vm8, %v6423_v41, %v6425_v21  ;;  %v6427_v45 = vsel %vm598_vm8, %v6425_v21, %v6423_v41  ;;  %6583 = vmatprep.mubr.f32.mxu1 %v10825_v24 }
 0xc28   :  { %v6508_v48 = vpop.permute.xlu1 %6507  ;;  %8645 = vmatprep.subr.msk.mxu0 %vm86_vm3, %v6427_v45 }
 0xc29   :  { %8646 = vmatpush1.msk.msra.mxu0 %vm86_vm3, %v6426_v22 }
 0xc2a   :  { %8647 = vmatmul.mubr.msk.f32.vlgmr.msra.gmra.mxu0 %vm83_vm4, %v10842_v25  ;;  %v6510_v38 = vpop.permute.xlu0 %6509 }
 0xc2b   :  { %v6511_v23 = vsel %vm688_vm9, %v6508_v48, %v6510_v38  ;;  %v6512_v55 = vsel %vm688_vm9, %v6510_v38, %v6508_v48  ;;  %6668 = vmatprep.mubr.f32.mxu0 %v10825_v24 }
 0xc2c   :  { %8648 = vmatprep.subr.msk.mxu1 %vm86_vm3, %v6512_v55  ;;  %v6593_v35 = vpop.permute.xlu1 %6592 }
 0xc2d   :  { %8649 = vmatpush1.msk.msra.mxu1 %vm86_vm3, %v6511_v23 }
 0xc2e   :  { %8650 = vmatmul.mubr.msk.f32.vlgmr.msra.gmra.mxu1 %vm83_vm4, %v10843_v1  ;;  %v6595_v56 = vpop.permute.xlu0 %6594 }
 0xc2f   :  { %v6596_v59 = vsel %vm778_vm10, %v6593_v35, %v6595_v56  ;;  %v6597_v44 = vsel %vm778_vm10, %v6595_v56, %v6593_v35  ;;  %6769 = vmatprep.mubr.f32.mxu1 %v10825_v24  ;;  %v10847_v56 = vld [vmem:[#allocation8_spill] sm:$0xff] }
 0xc30   :  { %8651 = vmatprep.subr.msk.mxu0 %vm86_vm3, %v6597_v44 }
 0xc31   :  { %8652 = vmatpush1.msk.msra.mxu0 %vm86_vm3, %v6596_v59 }
 0xc32   :  { %8653 = vmatmul.mubr.msk.f32.vlgmr.msra.gmra.mxu0 %vm83_vm4, %v10844_v57 }
 0xc33   :  { %6846 = vmatprep.mubr.f32.mxu0 %v10825_v24 }
 0xcd6   :  { %v6006_v29 = vpop.f32.mrf.mxu0 }
 0xcd8   :  { %v6008_v34 = vpop.f32.mrf.mxu0 }
 0xcda   :  { %v6083_v50 = vpop.f32.mrf.mxu1 }
 0xcdb   :  { %v6084_v0 = vadd.f32 %v6083_v50, %v6006_v29 }
 0xcdc   :  { %v6085_v42 = vpop.f32.mrf.mxu1 }
 0xcdd   :  { %v6086_v47 = vadd.f32 %v6085_v42, %v6008_v34  ;;  %v10848_v34 = vld [vmem:[#allocation10_spill] sm:$0xff] }
 0xcde   :  { %v6166_v60 = vpop.f32.mrf.mxu0 }
 0xcdf   :  { %v6171_v6 = vadd.f32 %v6166_v60, %v6084_v0  ;;  %v10849_v0 = vld [vmem:[#allocation9_spill] sm:$0xff] }
 0xce0   :  { %v6168_v40 = vpop.f32.mrf.mxu0 }
 0xce1   :  { %v6172_v63 = vadd.f32 %v6168_v40, %v6086_v47 }
 0xce2   :  { %v6251_v61 = vpop.f32.mrf.mxu1  ;;  %v6330_v7 = vpop.f32.mrf.mxu0 }
 0xce3   :  { %v6256_v58 = vadd.f32 %v6251_v61, %v6171_v6 }
 0xce4   :  { %v6253_v62 = vpop.f32.mrf.mxu1  ;;  %v6332_v4 = vpop.f32.mrf.mxu0 }
 0xce5   :  { %v6257_v43 = vadd.f32 %v6253_v62, %v6172_v63  ;;  %v6335_v32 = vadd.f32 %v6330_v7, %v6256_v58  ;;  %v10850_v62 = vld [vmem:[#allocation12_spill] sm:$0xff]  ;;  %v10851_v63 = vld [vmem:[#allocation11_spill] sm:$0xff] }
 0xce6   :  { %v6415_v36 = vpop.f32.mrf.mxu1 }
 0xce7   :  { %v6336_v53 = vadd.f32 %v6332_v4, %v6257_v43  ;;  %v6420_v30 = vadd.f32 %v6415_v36, %v6335_v32  ;;  %v10852_v32 = vld [vmem:[#allocation7_spill] sm:$0xff] }
 0xce8   :  { %v6417_v28 = vpop.f32.mrf.mxu1 }
 0xce9   :  { %v6421_v18 = vadd.f32 %v6417_v28, %v6336_v53 }
 0xcea   :  { %v6500_v46 = vpop.f32.mrf.mxu0 }
 0xceb   :  { %v6505_v51 = vadd.f32 %v6500_v46, %v6420_v30 }
 0xcec   :  { %v6502_v54 = vpop.f32.mrf.mxu0 }
 0xced   :  { %v6506_v14 = vadd.f32 %v6502_v54, %v6421_v18  ;;  %v10853_v54 = vld [vmem:[#allocation13_spill] sm:$0xff] }
 0xcee   :  { %v6585_v37 = vpop.f32.mrf.mxu1 }
 0xcef   :  { %v6590_v12 = vadd.f32 %v6585_v37, %v6505_v51 }
 0xcf0   :  { %v6587_v39 = vpop.f32.mrf.mxu1 }
 0xcf1   :  { %v6591_v31 = vadd.f32 %v6587_v39, %v6506_v14  ;;  %v10854_v14 = vld [vmem:[#allocation14_spill] sm:$0xff] }
 0xcf2   :  { %v6670_v27 = vpop.f32.mrf.mxu0 }
 0xcf3   :  { %v6675_v13 = vadd.f32 %v6670_v27, %v6590_v12  ;;  %v9019_v27 = vld [vmem:[%s10764_s5 + $0xf8] sm:$0xff] }
 0xcf4   :  { %v6672_v3 = vpop.f32.mrf.mxu0 }
 0xcf5   :  { %v6677_v11 = vadd.f32 %v6675_v13, %v10845_v9  ;;  %v6676_v20 = vadd.f32 %v6672_v3, %v6591_v31  ;;  %v9020_v3 = vld [vmem:[%s10764_s5 + $0x78] sm:$0xff] }
 0xcf7   :  { %v6679_v49 = vsel %vm888_vm11, %v10846_v10, %v6677_v11  ;;  %v6678_v41 = vadd.f32 %v6676_v20, %v10845_v9  ;;  %v9021_v9 = vld [vmem:[%s10764_s5 + $0xf0] sm:$0xff]  ;;  %v9023_v20 = vld [vmem:[%s10764_s5 + $0xe8] sm:$0xff] }
 0xcf8   :  { %vm6681_vm0 = vcmp.gt.f32.partialorder %v6679_v49, 0.0  ;;  %v6683_v21 = vmul.f32 0.1, %v6679_v49  ;;  %v9022_v11 = vld [vmem:[%s10764_s5 + $0x70] sm:$0xff] }
 0xcf9   :  { %v6680_v22 = vsel %vm9360_vm12, %v10846_v10, %v6678_v41  ;;  %v9024_v10 = vld [vmem:[%s10764_s5 + $0x68] sm:$0xff]  ;;  %v9026_v41 = vld [vmem:[%s10764_s5 + $0x60] sm:$0xff] }
 0xcfa   :  { %v6685_v45 = vsel %vm6681_vm0, %v6679_v49, %v6683_v21  ;;  %vm6682_vm14 = vcmp.gt.f32.partialorder %v6680_v22, 0.0  ;;  %v6684_v48 = vmul.f32 0.1, %v6680_v22  ;;  %v9025_v49 = vld [vmem:[%s10764_s5 + $0xe0] sm:$0xff]  ;;  %v9027_v21 = vld [vmem:[%s10764_s5 + $0xd8] sm:$0xff] }
 0xcfb   :  { %6693 = vrot.lane.b32.xlu1 %v6685_v45, %s9055_s24 }
 0xcfc   :  { %v6686_v25 = vsel %vm6682_vm14, %v6680_v22, %v6684_v48  ;;  %v9028_v22 = vld [vmem:[%s10764_s5 + $0x58] sm:$0xff]  ;;  %v9030_v48 = vld [vmem:[%s10764_s5 + $0x50] sm:$0xff] }
 0xcfd   :  { %6695 = vrot.lane.b32.xlu0 %v6686_v25, %s9055_s24 }
 0xcff   :  { %6687 = vrot.lane.b32.xlu1 %v6685_v45, %s9054_s23 }
 0xd01   :  { %6689 = vrot.lane.b32.xlu0 %v6686_v25, %s9054_s23 }
 0xd03   :  { %6853 = vrot.lane.b32.xlu1 %v6685_v45, %s9056_s27 }
 0xd05   :  { %6855 = vrot.lane.b32.xlu0 %v6686_v25, %s9056_s27 }
 0xd07   :  { %6938 = vrot.lane.b32.xlu1 %v6685_v45, %s9058_s29 }
 0xd09   :  { %6940 = vrot.lane.b32.xlu0 %v6686_v25, %s9058_s29 }
 0xd0b   :  { %7102 = vrot.lane.b32.xlu1 %v6685_v45, %s9060_s7 }
 0xd0d   :  { %7104 = vrot.lane.b32.xlu0 %v6686_v25, %s9060_s7 }
 0xd0f   :  { %7187 = vrot.lane.b32.xlu1 %v6685_v45, %s10831_s0 }
 0xd11   :  { %7189 = vrot.lane.b32.xlu0 %v6686_v25, %s10831_s0 }
 0xd13   :  { %7272 = vrot.lane.b32.xlu1 %v6685_v45, %s9062_s9 }
 0xd15   :  { %7274 = vrot.lane.b32.xlu0 %v6686_v25, %s9062_s9 }
 0xd17   :  { %7357 = vrot.lane.b32.xlu1 %v6685_v45, %s10832_s28 }
 0xd19   :  { %7359 = vrot.lane.b32.xlu0 %v6686_v25, %s10832_s28 }
 0xd6d   :  { %v6694_v38 = vpop.permute.xlu1 %6693 }
 0xd6f   :  { %v6696_v23 = vpop.permute.xlu0 %6695 }
 0xd70   :  { %v6697_v55 = vsel %vm77_vm1, %v6694_v38, %v6696_v23  ;;  %v6698_v35 = vsel %vm77_vm1, %v6696_v23, %v6694_v38  ;;  %v9032_v38 = vld [vmem:[%s10764_s5 + $0x48] sm:$0xff]  ;;  %v9033_v23 = vld [vmem:[%s10764_s5 + $0xc0] sm:$0xff] }
 0xd71   :  { %v6688_v1 = vpop.permute.xlu1 %6687  ;;  %8654 = vmatprep.subr.msk.mxu1 %vm86_vm3, %v6697_v55  ;;  %v9034_v55 = vld [vmem:[%s10764_s5 + $0x40] sm:$0xff] }
 0xd72   :  { %8655 = vmatpush1.msk.msra.mxu1 %vm86_vm3, %v6698_v35  ;;  %v9035_v35 = vld [vmem:[%s10764_s5 + $0xb8] sm:$0xff] }
 0xd73   :  { %8656 = vmatmul.mubr.msk.f32.vlgmr.msra.gmra.mxu1 %vm83_vm4, %v10847_v56  ;;  %v6690_v59 = vpop.permute.xlu0 %6689  ;;  %v9037_v56 = vld [vmem:[%s10764_s5 + $0xb0] sm:$0xff] }
 0xd74   :  { %v6691_v44 = vsel %vm70_vm2, %v6688_v1, %v6690_v59  ;;  %v6692_v57 = vsel %vm70_vm2, %v6690_v59, %v6688_v1  ;;  %6929 = vmatprep.mubr.f32.mxu1 %v10825_v24  ;;  %v9036_v1 = vld [vmem:[%s10764_s5 + $0x38] sm:$0xff]  ;;  %v9038_v59 = vld [vmem:[%s10764_s5 + $0x30] sm:$0xff] }
 0xd75   :  { %v6854_v29 = vpop.permute.xlu1 %6853  ;;  %8657 = vmatprep.subr.msk.mxu0 %vm86_vm3, %v6691_v44  ;;  %v9039_v44 = vld [vmem:[%s10764_s5 + $0xa8] sm:$0xff] }
 0xd76   :  { %8658 = vmatpush1.msk.msra.mxu0 %vm86_vm3, %v6692_v57  ;;  %v9040_v57 = vld [vmem:[%s10764_s5 + $0x28] sm:$0xff] }
 0xd77   :  { %8659 = vmatmul.mubr.msk.f32.vlgmr.msra.gmra.mxu0 %vm83_vm4, %v10848_v34  ;;  %v6856_v50 = vpop.permute.xlu0 %6855  ;;  %v9042_v34 = vld [vmem:[%s10764_s5 + $0x20] sm:$0xff] }
 0xd78   :  { %v6857_v60 = vsel %vm247_vm5, %v6854_v29, %v6856_v50  ;;  %v6858_v42 = vsel %vm247_vm5, %v6856_v50, %v6854_v29  ;;  %7014 = vmatprep.mubr.f32.mxu0 %v10825_v24  ;;  %v9041_v29 = vld [vmem:[%s10764_s5 + $0xa0] sm:$0xff]  ;;  %v9043_v50 = vld [vmem:[%s10764_s5 + $0x98] sm:$0xff] }
 0xd79   :  { %v6939_v40 = vpop.permute.xlu1 %6938  ;;  %8660 = vmatprep.subr.msk.mxu1 %vm86_vm3, %v6857_v60  ;;  %v9044_v60 = vld [vmem:[%s10764_s5 + $0x18] sm:$0xff] }
 0xd7a   :  { %8661 = vmatpush1.msk.msra.mxu1 %vm86_vm3, %v6858_v42  ;;  %v9045_v42 = vld [vmem:[%s10764_s5 + $0x90] sm:$0xff] }
 0xd7b   :  { %8662 = vmatmul.mubr.msk.f32.vlgmr.msra.gmra.mxu1 %vm83_vm4, %v10849_v0  ;;  %8666 = vmatprep.subr.msk.mxu1 %vm86_vm3, %v6686_v25  ;;  %v6941_v61 = vpop.permute.xlu0 %6940  ;;  %v9031_v25 = vld [vmem:[%s10764_s5 + $0xc8] sm:$0xff] }
 0xd7c   :  { %v6942_v47 = vsel %vm337_vm6, %v6939_v40, %v6941_v61  ;;  %v6943_v6 = vsel %vm337_vm6, %v6941_v61, %v6939_v40  ;;  %8667 = vmatpush1.msk.msra.mxu1 %vm86_vm3, %v6685_v45  ;;  %7093 = vmatprep.mubr.f32.mxu1 %v10825_v24  ;;  %v9029_v45 = vld [vmem:[%s10764_s5 + $0xd0] sm:$0xff]  ;;  %v9047_v0 = vld [vmem:[%s10764_s5 + $0x88] sm:$0xff] }
 0xd7d   :  { %v7103_v7 = vpop.permute.xlu1 %7102  ;;  %8663 = vmatprep.subr.msk.mxu0 %vm86_vm3, %v6942_v47  ;;  %v9046_v40 = vld [vmem:[%s10764_s5 + $0x10] sm:$0xff]  ;;  %v9048_v61 = vld [vmem:[%s10764_s5 + $0x8] sm:$0xff]  ;;  %v9049_v47 = vld [vmem:[%s10764_s5 + $0x80] sm:$0xff] }
 0xd7e   :  { %8664 = vmatpush1.msk.msra.mxu0 %vm86_vm3, %v6943_v6  ;;  %v9050_v6 = vld [vmem:[%s10764_s5] sm:$0xff] }
 0xd7f   :  { %8665 = vmatmul.mubr.msk.f32.vlgmr.msra.gmra.mxu0 %vm83_vm4, %v10850_v62  ;;  %8668 = vmatmul.mubr.msk.f32.vlgmr.msra.gmra.mxu1 %vm83_vm4, %v10851_v63  ;;  %v7105_v58 = vpop.permute.xlu0 %7104 }
 0xd80   :  { %v7106_v43 = vsel %vm508_vm7, %v7103_v7, %v7105_v58  ;;  %v7107_v4 = vsel %vm508_vm7, %v7105_v58, %v7103_v7  ;;  %7178 = vmatprep.mubr.f32.mxu0 %v10825_v24  ;;  %7263 = vmatprep.mubr.f32.mxu1 %v10825_v24 }
 0xd81   :  { %v7188_v36 = vpop.permute.xlu1 %7187  ;;  %8669 = vmatprep.subr.msk.mxu0 %vm86_vm3, %v7107_v4 }
 0xd82   :  { %8670 = vmatpush1.msk.msra.mxu0 %vm86_vm3, %v7106_v43 }
 0xd83   :  { %8671 = vmatmul.mubr.msk.f32.vlgmr.msra.gmra.mxu0 %vm83_vm4, %v10852_v32  ;;  %v7190_v46 = vpop.permute.xlu0 %7189 }
 0xd84   :  { %v7191_v53 = vsel %vm598_vm8, %v7188_v36, %v7190_v46  ;;  %v7192_v28 = vsel %vm598_vm8, %v7190_v46, %v7188_v36  ;;  %7348 = vmatprep.mubr.f32.mxu0 %v10825_v24  ;;  %vm4385_vm8 = vcmask 523264  }
 0xd85   :  { %v7273_v30 = vpop.permute.xlu1 %7272  ;;  %8672 = vmatprep.subr.msk.mxu1 %vm86_vm3, %v7192_v28 }
 0xd86   :  { %8673 = vmatpush1.msk.msra.mxu1 %vm86_vm3, %v7191_v53 }
 0xd87   :  { %8674 = vmatmul.mubr.msk.f32.vlgmr.msra.gmra.mxu1 %vm83_vm4, %v10853_v54  ;;  %v7275_v37 = vpop.permute.xlu0 %7274 }
 0xd88   :  { %v7276_v18 = vsel %vm688_vm9, %v7273_v30, %v7275_v37  ;;  %v7277_v51 = vsel %vm688_vm9, %v7275_v37, %v7273_v30  ;;  %7433 = vmatprep.mubr.f32.mxu1 %v10825_v24  ;;  %vm10870_vm9 = vcmp.eq.s32.totalorder %v9205_v15, 1 }
 0xd89   :  { %8675 = vmatprep.subr.msk.mxu0 %vm86_vm3, %v7277_v51  ;;  %v7358_v39 = vpop.permute.xlu1 %7357 }
 0xd8a   :  { %8676 = vmatpush1.msk.msra.mxu0 %vm86_vm3, %v7276_v18 }
 0xd8b   :  { %8677 = vmatmul.mubr.msk.f32.vlgmr.msra.gmra.mxu0 %vm83_vm4, %v10854_v14  ;;  %v7360_v12 = vpop.permute.xlu0 %7359  ;;  %8765 = vmatprep.subr.mxu0 %v9019_v27 }
 0xd8c   :  { %v7361_v31 = vsel %vm778_vm10, %v7358_v39, %v7360_v12  ;;  %v7362_v13 = vsel %vm778_vm10, %v7360_v12, %v7358_v39  ;;  %8766 = vmatpush3.msra.mxu0 %v9020_v3 }
 0xd8d   :  { %8678 = vmatprep.subr.msk.mxu1 %vm86_vm3, %v7362_v13  ;;  %8767 = vmatprep.subr.mxu0 %v9021_v9 }
 0xd8e   :  { %8679 = vmatpush1.msk.msra.mxu1 %vm86_vm3, %v7361_v31  ;;  %8768 = vmatpush3.msra.mxu0 %v9022_v11 }
 0xd8f   :  { %8680 = vmatmul.mubr.msk.f32.vlgmr.msra.gmra.mxu1 %vm83_vm4, %v10855_v19  ;;  %8769 = vmatprep.subr.mxu0 %v9023_v20 }
 0xd90   :  { %8770 = vmatpush3.msra.mxu0 %v9024_v10  ;;  %8884 = vmatprep.subr.mxu1 %v10825_v24 }
 0xd91   :  { %8771 = vmatprep.subr.mxu0 %v9025_v49  ;;  %8886 = vmatprep.mubr.msk.f32.mxu1 %vm9099_vm13, %v10825_v24 }
 0xd92   :  { %8772 = vmatpush3.msra.mxu0 %v9026_v41 }
 0xd93   :  { %8773 = vmatprep.subr.mxu0 %v9027_v21 }
 0xd94   :  { %8774 = vmatpush3.msra.mxu0 %v9028_v22 }
 0xd95   :  { %8775 = vmatprep.subr.mxu0 %v9029_v45 }
 0xd96   :  { %8776 = vmatpush3.msra.mxu0 %v9030_v48  ;;  %v10856_v48 = vld [vmem:[#allocation16_spill] sm:$0xff] }
 0xd97   :  { %8777 = vmatprep.subr.mxu0 %v9031_v25 }
 0xd98   :  { %8778 = vmatpush3.msra.mxu0 %v9032_v38 }
 0xd99   :  { %8779 = vmatprep.subr.mxu0 %v9033_v23  ;;  %v10857_v23 = vld [vmem:[#allocation17_spill] sm:$0xff] }
 0xd9a   :  { %8780 = vmatpush3.msra.mxu0 %v9034_v55 }
 0xd9b   :  { %8781 = vmatprep.subr.mxu0 %v9035_v35 }
 0xd9c   :  { %8782 = vmatpush3.msra.mxu0 %v9036_v1 }
 0xd9d   :  { %8783 = vmatprep.subr.mxu0 %v9037_v56 }
 0xd9e   :  { %8784 = vmatpush3.msra.mxu0 %v9038_v59 }
 0xd9f   :  { %8785 = vmatprep.subr.mxu0 %v9039_v44 }
 0xda0   :  { %8786 = vmatpush3.msra.mxu0 %v9040_v57 }
 0xda1   :  { %8787 = vmatprep.subr.mxu0 %v9041_v29 }
 0xda2   :  { %8788 = vmatpush3.msra.mxu0 %v9042_v34 }
 0xda3   :  { %8789 = vmatprep.subr.mxu0 %v9043_v50 }
 0xda4   :  { %8790 = vmatpush3.msra.mxu0 %v9044_v60 }
 0xda5   :  { %8791 = vmatprep.subr.mxu0 %v9045_v42 }
 0xda6   :  { %8792 = vmatpush3.msra.mxu0 %v9046_v40 }
 0xda7   :  { %8793 = vmatprep.subr.mxu0 %v9047_v0  ;;  %v10859_v0 = vld [vmem:[#allocation20_spill] sm:$0xff] }
 0xda8   :  { %8794 = vmatpush3.msra.mxu0 %v9048_v61 }
 0xda9   :  { %8795 = vmatprep.subr.mxu0 %v9049_v47 }
 0xdaa   :  { %8796 = vmatpush3.msra.mxu0 %v9050_v6 }
 0xdab   :  { %8924 = vmatprep.subr.mxu0 %v10825_v24 }
 0xe33   :  { %v6771_v7 = vpop.f32.mrf.mxu1 }
 0xe35   :  { %v6773_v62 = vpop.f32.mrf.mxu1 }
 0xe37   :  { %v6848_v63 = vpop.f32.mrf.mxu0 }
 0xe38   :  { %v6849_v36 = vadd.f32 %v6848_v63, %v6771_v7 }
 0xe39   :  { %v6850_v43 = vpop.f32.mrf.mxu0 }
 0xe3a   :  { %v6851_v46 = vadd.f32 %v6850_v43, %v6773_v62  ;;  %v9109_v43 = vmov 11  }
 0xe3b   :  { %v6931_v58 = vpop.f32.mrf.mxu1  ;;  %9013 = vset.pattern.permute.xlu0 %v9109_v43 }
 0xe3c   :  { %v6936_v53 = vadd.f32 %v6931_v58, %v6849_v36  ;;  %v9108_v58 = vmov 12  }
 0xe3d   :  { %v6933_v4 = vpop.f32.mrf.mxu1  ;;  %9012 = vset.pattern.permute.xlu1 %v9108_v58 }
 0xe3e   :  { %v6937_v54 = vadd.f32 %v6933_v4, %v6851_v46 }
 0xe3f   :  { %v7016_v32 = vpop.f32.mrf.mxu0  ;;  %v7095_v28 = vpop.f32.mrf.mxu1 }
 0xe40   :  { %v7021_v37 = vadd.f32 %v7016_v32, %v6936_v53  ;;  %v9052_v32 = vld [vmem:[%s10763_s3] sm:$0xff] }
 0xe41   :  { %v7018_v30 = vpop.f32.mrf.mxu0  ;;  %v7097_v51 = vpop.f32.mrf.mxu1 }
 0xe42   :  { %v7022_v18 = vadd.f32 %v7018_v30, %v6937_v54  ;;  %v7100_v14 = vadd.f32 %v7095_v28, %v7021_v37  ;;  %v10860_v28 = vld [vmem:[#allocation21_spill] sm:$0xff]  ;;  %v10861_v37 = vld [vmem:[#allocation22_spill] sm:$0xff] }
 0xe43   :  { %v7180_v39 = vpop.f32.mrf.mxu0 }
 0xe44   :  { %v7101_v27 = vadd.f32 %v7097_v51, %v7022_v18  ;;  %v7185_v13 = vadd.f32 %v7180_v39, %v7100_v14  ;;  %v10862_v51 = vld [vmem:[#allocation23_spill] sm:$0xff] }
 0xe45   :  { %v7182_v31 = vpop.f32.mrf.mxu0  ;;  %v10863_v39 = vld [vmem:[#allocation27_spill] sm:$0xff] }
 0xe46   :  { %v7186_v11 = vadd.f32 %v7182_v31, %v7101_v27  ;;  %v10865_v27 = vld [vmem:[#allocation29_spill] sm:$0xff] }
 0xe47   :  { %v7265_v12 = vpop.f32.mrf.mxu1 }
 0xe48   :  { %v7270_v19 = vadd.f32 %v7265_v12, %v7185_v13  ;;  %v10864_v12 = vld [vmem:[#allocation24_spill] sm:$0xff]  ;;  %v10866_v13 = vld [vmem:[#allocation25_spill] sm:$0xff] }
 0xe49   :  { %v7267_v3 = vpop.f32.mrf.mxu1 }
 0xe4a   :  { %v7271_v10 = vadd.f32 %v7267_v3, %v7186_v11 }
 0xe4b   :  { %v7350_v9 = vpop.f32.mrf.mxu0 }
 0xe4c   :  { %v7355_v49 = vadd.f32 %v7350_v9, %v7270_v19  ;;  %v10867_v9 = vld [vmem:[#allocation26_spill] sm:$0xff] }
 0xe4d   :  { %v7352_v20 = vpop.f32.mrf.mxu0 }
 0xe4e   :  { %v7356_v21 = vadd.f32 %v7352_v20, %v7271_v10  ;;  %v10868_v10 = vld [vmem:[#allocation19_spill] sm:$0xff] }
 0xe4f   :  { %v7435_v41 = vpop.f32.mrf.mxu1 }
 0xe50   :  { %v7440_v22 = vadd.f32 %v7435_v41, %v7355_v49  ;;  %v10869_v41 = vld [vmem:[#allocation28_spill] sm:$0xff] }
 0xe51   :  { %v7437_v45 = vpop.f32.mrf.mxu1 }
 0xe52   :  { %v7442_v25 = vadd.f32 %v7440_v22, %v10856_v48  ;;  %v7441_v38 = vadd.f32 %v7437_v45, %v7356_v21 }
 0xe54   :  { %v7444_v55 = vsel %vm888_vm11, %v10857_v23, %v7442_v25  ;;  %v7443_v35 = vadd.f32 %v7441_v38, %v10856_v48 }
 0xe55   :  { %v7446_v1 = vadd.f32 %v7444_v55, %v10333_v8 }
 0xe56   :  { %v7445_v56 = vsel %vm9360_vm12, %v10857_v23, %v7443_v35 }
 0xe57   :  { %v7447_v59 = vadd.f32 %v7445_v56, %v10337_v33  ;;  %v7450_v44 = vmul.f32 0.1, %v7446_v1  ;;  %vm7448_vm2 = vcmp.gt.f32.partialorder %v7446_v1, 0.0  ;;  %v9051_v33 = vld [vmem:[%s10765_s2] sm:$0xff] }
 0xe59   :  { %vm7449_vm1 = vcmp.gt.f32.partialorder %v7447_v59, 0.0  ;;  %v7451_v57 = vmul.f32 0.1, %v7447_v59  ;;  %v7452_v34 = vsel %vm7448_vm2, %v7446_v1, %v7450_v44 }
 0xe5b   :  { %v7453_v29 = vsel %vm7449_vm1, %v7447_v59, %v7451_v57 }
 0xe5c   :  { %7518 = vmatprep.mubr.f32.mxu0 %v7453_v29 }
 0xe5d   :  { %7519 = vmatmul.mubr.f32.vlgmr.msra.gmra.mxu0 %v7452_v34 }
 0xe5e   :  { %8926 = vmatprep.mubr.msk.f32.mxu0 %vm9099_vm13, %v10825_v24 }
 0xf1d   :  { %v8797_v16 = vpop.f32.mrf.mxu0 }
 0xf1f   :  { %v8798_v50 = vpop.f32.mrf.mxu0 }
 0xf20   :  { %v8799_v8 = vadd.f32 %v8798_v50, %v8797_v16 }
 0xf22   :  { %8885 = vmatpush3.msk.msra.mxu1 %vm86_vm3, %v8799_v8 }
 0xf23   :  { %8887 = vmatmul.mubr.msk.f32.vlgmr.msra.gmra.mxu1 %vm83_vm4, %v10858_v52  ;;  %8889 = vmatprep.subr.mxu1 %v10825_v24 }
 0xf24   :  { %8890 = vmatpush3.msk.msra.mxu1 %vm86_vm3, %v8799_v8  ;;  %8891 = vmatprep.mubr.msk.f32.mxu1 %vm9099_vm13, %v10825_v24 }
 0xf25   :  { %8894 = vmatprep.subr.mxu1 %v10825_v24 }
 0xf27   :  { %8892 = vmatmul.mubr.msk.f32.vlgmr.msra.gmra.mxu1 %vm83_vm4, %v9051_v33 }
 0xf28   :  { %8896 = vmatprep.mubr.msk.f32.mxu1 %vm9099_vm13, %v10825_v24 }
 0xfe3   :  { %v10673_v60 = vpop.f32.mrf.mxu1 }
 0xfe5   :  { %v8888_v42 = vpop.f32.mrf.mxu1 }
 0xfe7   :  { %v7666_v40 = vpop.f32.mrf.mxu1 }
 0xfe8   :  { %v7667_v61 = vadd.f32 %v7666_v40, %v10859_v0 }
 0xfe9   :  { %v8893_v47 = vpop.f32.mrf.mxu1 }
 0xfea   :  { %vm7670_vm5 = vcmp.gt.f32.partialorder %v7667_v61, 0.0  ;;  %v7671_v6 = vmul.f32 0.1, %v7667_v61 }
 0xfec   :  { %v7672_v7 = vsel %vm7670_vm5, %v7667_v61, %v7671_v6 }
 0xfed   :  { %7673 = vrot.lane.b32.xlu1 %v7672_v7, %s9080_s13 }
0x105f   :  { %v7674_v62 = vpop.permute.xlu1 %7673 }
0x1060   :  { %v7675_v63 = vsel %vm3566_vm15, %v7674_v62, %v7672_v7 }
0x1061   :  { %7676 = vrot.lane.b32.xlu0 %v7675_v63, %s9080_s13 }
0x10d3   :  { %v7677_v4 = vpop.permute.xlu0 %7676 }
0x10d4   :  { %v7678_v36 = vsel %vm3566_vm15, %v7677_v4, %v7672_v7 }
0x10d5   :  { %7754 = vrot.lane.b32.xlu0 %v7678_v36, %s9104_s15  ;;  %7680 = vrot.lane.b32.xlu1 %v7678_v36, %s9076_s26 }
0x10d9   :  { %7903 = vrot.lane.b32.xlu0 %v7678_v36, %s9107_s10  ;;  %7828 = vrot.lane.b32.xlu1 %v7678_v36, %s9105_s14 }
0x10dd   :  { %8127 = vrot.lane.b32.xlu0 %v7678_v36, %s9103_s11  ;;  %8052 = vrot.lane.b32.xlu1 %v7678_v36, %s9060_s7 }
0x10e1   :  { %8277 = vrot.lane.b32.xlu0 %v7678_v36, %s9106_s16  ;;  %8202 = vrot.lane.b32.xlu1 %v7678_v36, %s9059_s30 }
0x10e5   :  { %4301 = vperm.xlu0 %9013, %v9052_v32   ;;  %3403 = vperm.xlu1 %9012, %v9052_v32  }
0x1147   :  { %v7755_v46 = vpop.permute.xlu0 %7754  ;;  %v7681_v53 = vpop.permute.xlu1 %7680 }
0x1148   :  { %8895 = vmatpush3.msk.msra.mxu1 %vm86_vm3, %v7681_v53 }
0x1149   :  { %8897 = vmatmul.mubr.msk.f32.vlgmr.msra.gmra.mxu1 %vm83_vm4, %v10860_v28  ;;  %8899 = vmatprep.subr.mxu1 %v10825_v24 }
0x114a   :  { %8900 = vmatpush3.msk.msra.mxu1 %vm86_vm3, %v7755_v46  ;;  %8901 = vmatprep.mubr.msk.f32.mxu1 %vm9099_vm13, %v10825_v24 }
0x114b   :  { %v7904_v30 = vpop.permute.xlu0 %7903  ;;  %v7829_v54 = vpop.permute.xlu1 %7828  ;;  %8904 = vmatprep.subr.mxu1 %v10825_v24 }
0x114d   :  { %8902 = vmatmul.mubr.msk.f32.vlgmr.msra.gmra.mxu1 %vm83_vm4, %v10861_v37 }
0x114e   :  { %8905 = vmatpush3.msk.msra.mxu1 %vm86_vm3, %v7829_v54  ;;  %8906 = vmatprep.mubr.msk.f32.mxu1 %vm9099_vm13, %v10825_v24 }
0x114f   :  { %v8128_v18 = vpop.permute.xlu0 %8127  ;;  %8909 = vmatprep.subr.mxu1 %v10825_v24  ;;  %v8053_v31 = vpop.permute.xlu1 %8052 }
0x1150   :  { %8925 = vmatpush3.msk.msra.mxu0 %vm86_vm3, %v8128_v18 }
0x1151   :  { %8907 = vmatmul.mubr.msk.f32.vlgmr.msra.gmra.mxu1 %vm83_vm4, %v10862_v51  ;;  %8927 = vmatmul.mubr.msk.f32.vlgmr.msra.gmra.mxu0 %vm83_vm4, %v10863_v39 }
0x1152   :  { %8910 = vmatpush3.msk.msra.mxu1 %vm86_vm3, %v7904_v30  ;;  %8934 = vmatprep.subr.mxu0 %v10825_v24 }
0x1153   :  { %v8278_v14 = vpop.permute.xlu0 %8277  ;;  %8911 = vmatprep.mubr.msk.f32.mxu1 %vm9099_vm13, %v10825_v24  ;;  %8914 = vmatprep.subr.mxu1 %v10825_v24  ;;  %v8203_v3 = vpop.permute.xlu1 %8202 }
0x1154   :  { %8935 = vmatpush3.msk.msra.mxu0 %vm86_vm3, %v8278_v14  ;;  %8936 = vmatprep.mubr.msk.f32.mxu0 %vm9099_vm13, %v10825_v24 }
0x1155   :  { %8912 = vmatmul.mubr.msk.f32.vlgmr.msra.gmra.mxu1 %vm83_vm4, %v10864_v12  ;;  %8937 = vmatmul.mubr.msk.f32.vlgmr.msra.gmra.mxu0 %vm83_vm4, %v10865_v27 }
0x1156   :  { %8915 = vmatpush3.msk.msra.mxu1 %vm86_vm3, %v7672_v7  ;;  %8916 = vmatprep.mubr.msk.f32.mxu1 %vm9099_vm13, %v10825_v24 }
0x1157   :  { %8919 = vmatprep.subr.mxu1 %v10825_v24 }
0x1159   :  { %8917 = vmatmul.mubr.msk.f32.vlgmr.msra.gmra.mxu1 %vm83_vm4, %v10866_v13 }
0x115a   :  { %8920 = vmatpush3.msk.msra.mxu1 %vm86_vm3, %v8053_v31  ;;  %8921 = vmatprep.mubr.msk.f32.mxu1 %vm9099_vm13, %v10825_v24 }
0x115b   :  { %8929 = vmatprep.subr.mxu1 %v10825_v24 }
0x115d   :  { %8922 = vmatmul.mubr.msk.f32.vlgmr.msra.gmra.mxu1 %vm83_vm4, %v10867_v9 }
0x115e   :  { %8930 = vmatpush3.msk.msra.mxu1 %vm86_vm3, %v8203_v3  ;;  %8931 = vmatprep.mubr.msk.f32.mxu1 %vm9099_vm13, %v10825_v24 }
0x115f   :  { %8939 = vmatprep.subr.mxu1 %v10825_v24 }
0x1160   :  { %v4302_v11 = vpop.permute.xlu0 %4301  ;;  %v3404_v19 = vpop.permute.xlu1 %3403 }
0x1161   :  { %v4378_v20 = vadd.f32 %v10220_v2, %v4302_v11  ;;  %v3481_v49 = vadd.f32 %v10868_v10, %v3404_v19  ;;  %8932 = vmatmul.mubr.msk.f32.vlgmr.msra.gmra.mxu1 %vm83_vm4, %v10869_v41  ;;  %v7594_v36 = vadd.f32 %v10673_v60, %v3404_v19 }
0x1162   :  { %8941 = vmatprep.mubr.msk.f32.mxu1 %vm9099_vm13, %v10825_v24 }
0x1163   :  { %vm4381_vm6 = vcmp.gt.f32.partialorder %v4378_v20, 0.0  ;;  %v4382_v21 = vmul.f32 0.1, %v4378_v20  ;;  %vm3484_vm7 = vcmp.gt.f32.partialorder %v3481_v49, 0.0  ;;  %v3485_v22 = vmul.f32 0.1, %v3481_v49 }
0x1164   :  { %v7598_v46 = vmul.f32 0.1, %v7594_v36  ;;  %vm7597_vm11 = vcmp.gt.f32.partialorder %v7594_v36, 0.0 }
0x1165   :  { %v4383_v45 = vsel %vm4381_vm6, %v4378_v20, %v4382_v21  ;;  %v3486_v48 = vsel %vm3484_vm7, %v3481_v49, %v3485_v22 }
0x1166   :  { %v4384_v25 = vadd.f32 %v4383_v45, %v3486_v48  ;;  %v7599_v30 = vsel %vm7597_vm11, %v7594_v36, %v7598_v46 }
0x1168   :  { %4386 = vst.msk [vmem:[%s10766_s6] sm:$0xff] %vm4385_vm8, %v4384_v25 }
0x1209   :  { %v7750_v2 = vpop.f32.mrf.mxu1 }
0x120b   :  { %v8898_v38 = vpop.f32.mrf.mxu1 }
0x120d   :  { %v7824_v23 = vpop.f32.mrf.mxu1 }
0x120e   :  { %v7825_v57 = vadd.f32 %v7824_v23, %v7750_v2 }
0x120f   :  { %v8903_v55 = vpop.f32.mrf.mxu1 }
0x1211   :  { %v7898_v35 = vpop.f32.mrf.mxu1  ;;  %v8197_v1 = vpop.f32.mrf.mxu0 }
0x1212   :  { %v7902_v16 = vadd.f32 %v7898_v35, %v7825_v57 }
0x1213   :  { %v8908_v24 = vpop.f32.mrf.mxu1  ;;  %v8928_v56 = vpop.f32.mrf.mxu0 }
0x1215   :  { %v7973_v59 = vpop.f32.mrf.mxu1  ;;  %v8347_v44 = vpop.f32.mrf.mxu0 }
0x1216   :  { %v7977_v8 = vadd.f32 %v7973_v59, %v7902_v16 }
0x1217   :  { %v8913_v29 = vpop.f32.mrf.mxu1  ;;  %v8938_v34 = vpop.f32.mrf.mxu0 }
0x1219   :  { %v8047_v50 = vpop.f32.mrf.mxu1 }
0x121a   :  { %v8051_v33 = vadd.f32 %v8047_v50, %v7977_v8 }
0x121b   :  { %v8918_v52 = vpop.f32.mrf.mxu1 }
0x121d   :  { %v8122_v42 = vpop.f32.mrf.mxu1 }
0x121e   :  { %v8126_v40 = vadd.f32 %v8122_v42, %v8051_v33 }
0x121f   :  { %v8923_v0 = vpop.f32.mrf.mxu1 }
0x1220   :  { %v8201_v61 = vadd.f32 %v8197_v1, %v8126_v40 }
0x1221   :  { %v8272_v47 = vpop.f32.mrf.mxu1 }
0x1222   :  { %v8276_v6 = vadd.f32 %v8272_v47, %v8201_v61 }
0x1223   :  { %v8933_v7 = vpop.f32.mrf.mxu1 }
0x1224   :  { %v8351_v62 = vadd.f32 %v8347_v44, %v8276_v6 }
0x1226   :  { %v8352_v63 = vadd.f32 %v8351_v62, %v10102_v26 }
0x1228   :  { %v8353_v58 = vsel %vm10870_vm9, %v10122_v17, %v8352_v63 }
0x1229   :  { %vm8354_vm10 = vcmp.gt.f32.partialorder %v8353_v58, 0.0  ;;  %v8355_v43 = vmul.f32 0.1, %v8353_v58 }
0x122b   :  { %v8356_v4 = vsel %vm8354_vm10, %v8353_v58, %v8355_v43 }
0x122c   :  { %8940 = vmatpush3.msk.msra.mxu1 %vm86_vm3, %v8356_v4 }
0x122d   :  { %8942 = vmatmul.mubr.msk.f32.vlgmr.msra.gmra.mxu1 %vm83_vm4, %v10124_v5 }
0x12ed   :  { %v8426_v32 = vpop.f32.mrf.mxu1 }
0x12ee   :  { %v8427_v53 = vadd.f32 %v8426_v32, %v4302_v11 }
0x12ef   :  { %v8943_v28 = vpop.f32.mrf.mxu1 }
0x12f0   :  { %vm8430_vm12 = vcmp.gt.f32.partialorder %v8427_v53, 0.0  ;;  %v8431_v26 = vmul.f32 0.1, %v8427_v53 }
0x12f2   :  { %v8432_v15 = vsel %vm8430_vm12, %v8427_v53, %v8431_v26 }
0x12f3   :  { %v8433_v17 = vadd.f32 %v8432_v15, %v7599_v30 }
0x12f5   :  { %8705 = vst.msk [vmem:[%s10766_s6 + $0x8] sm:$0xff] %vm4385_vm8, %v8433_v17 }

</bundles_post_ra>
